<compile_context>
chip_gen: v7x
topology: tpu7x:2x2x1
jax: 0.10.0
libtpu: 0.0.40
codegen_flags: <defaults>
</compile_context>

<pallas_src>
import functools

import numpy as np
import jax
import jax.numpy as jnp
from jax import lax
from jax.experimental import pallas as pl
from jax.experimental.pallas import tpu as pltpu


# ---------------------------------------------------------------------------
# Small helpers
# ---------------------------------------------------------------------------
def _cdiv(a, b):
    return -(-a // b)


def _round_up(a, m):
    return _cdiv(a, m) * m


def _vmem_limit_bytes():
    """Scoped-VMEM cap scaled to the chip (v5e/v6e: 128MiB, v7x: 64MiB)."""
    try:
        cap = int(pltpu.get_tpu_info().vmem_capacity_bytes)
    except Exception:
        cap = 64 * 1024 * 1024
    return max(32 * 1024 * 1024, min(cap // 2, 96 * 1024 * 1024))


def _largest_tile_divisor(total, target):
    """Largest multiple-of-128 divisor of `total` that is <= target, else total."""
    t = (min(target, total) // 128) * 128
    while t >= 128:
        if total % t == 0:
            return t
        t -= 128
    return total


# ---------------------------------------------------------------------------
# Conv stage: fused conv3x3(pad=1) + bias + ReLU + maxpool2x2, im2col in-kernel
# ---------------------------------------------------------------------------
def conv_relu_pool_kernel(xw_ref, w_ref, b_ref, o_ref, patch_ref, *, wp2):
    """One (image, pixel-tile) step.

    xw_ref:    (1, 4, Cin, TPH) bf16  parity-split padded-input windows
                                       (index 0..3 = (row parity)*2 + col parity)
    w_ref:     (Cout, 9*Cin)    bf16  conv weights in (kh, kw, cin) column order
    b_ref:     (Cout, 1)        f32
    o_ref:     (1, Cout, TP)    bf16  pooled activations, spaced-pixel lane axis
    patch_ref: (9*Cin, 4*TP)    bf16  VMEM scratch: im2col patches, 4 pool offsets
    """
    tp = o_ref.shape[2]
    cin = xw_ref.shape[2]

    # In-kernel im2col: for pool offset (a,b) and tap (kh,kw) the needed slab is a
    # CONTIGUOUS static lane slice of one of the 4 parity windows (offset d).
    for po in range(4):
        a, b = po // 2, po % 2
        for kh in range(3):
            for kw in range(3):
                s, t = a + kh, b + kw
                rc = (s % 2) * 2 + (t % 2)
                d = (s // 2) * wp2 + (t // 2)
                krow = (kh * 3 + kw) * cin
                patch_ref[krow:krow + cin, po * tp:(po + 1) * tp] = (
                    xw_ref[0, rc, :, d:d + tp])

    # Single fused MXU matmul over all 4 pool offsets, f32 accumulation.
    acc = jnp.dot(w_ref[...], patch_ref[...],
                  preferred_element_type=jnp.float32)            # (Cout, 4*TP)

    # maxpool2x2 == elementwise max over the 4 pool-offset lane groups;
    # groups start at multiples of TP (128-aligned -> no relayout).
    m = jnp.maximum(jnp.maximum(acc[:, 0 * tp:1 * tp], acc[:, 1 * tp:2 * tp]),
                    jnp.maximum(acc[:, 2 * tp:3 * tp], acc[:, 3 * tp:4 * tp]))
    o_ref[0] = jnp.maximum(m + b_ref[...], 0.0).astype(o_ref.dtype)


def _build_parity_windows(x_nchw, TP, nt, TPH):
    """(N, Cin, H, W) -> (N*nt, 4, Cin, TPH) bf16 parity-split padded windows.

    Parity array (r, c): xpad[:, :, r::2, c::2] flattened over space; a pooled
    output pixel (oi, oj) lives at spaced index oi*(Wo+1)+oj and every conv tap
    becomes a contiguous slice of one parity array.  Only the raw input is
    touched (1x traffic); the 9x tap expansion happens inside the kernel.
    """
    N, Cin, H, W = x_nchw.shape
    Ho, Wo = H // 2, W // 2
    Hp2, Wp2 = Ho + 1, Wo + 1
    xp = jnp.pad(x_nchw.astype(jnp.bfloat16), ((0, 0), (0, 0), (1, 1), (1, 1)))
    parts = [xp[:, :, r::2, c::2].reshape(N, Cin, Hp2 * Wp2)
             for r in range(2) for c in range(2)]
    xf = jnp.stack(parts, axis=1)                       # (N, 4, Cin, Hp2*Wp2)
    need = (nt - 1) * TP + TPH
    xf = jnp.pad(xf, ((0, 0), (0, 0), (0, 0), (0, need - Hp2 * Wp2)))
    wins = [xf[:, :, :, t * TP: t * TP + TPH] for t in range(nt)]
    xw = jnp.stack(wins, axis=1)                        # (N, nt, 4, Cin, TPH)
    return xw.reshape(N * nt, 4, Cin, TPH)


def conv_relu_pool(x_nchw, w_mat, b_col, *, pix_tile_target=2048):
    """x: (N, Cin, H, W) -> (N, Cout, H//2, W//2) bf16 (channel-major, NCHW)."""
    N, Cin, H, W = x_nchw.shape
    Cout = w_mat.shape[0]
    assert w_mat.shape[1] == 9 * Cin
    assert H % 2 == 0 and W % 2 == 0
    Ho, Wo = H // 2, W // 2
    Wp2 = Wo + 1
    Lp = Ho * Wp2                              # spaced pixel count (1 junk col/row)
    nt = max(1, _cdiv(Lp, pix_tile_target))
    TP = _round_up(_cdiv(Lp, nt), 128)         # lane tile: multiple of 128
    Lp_pad = nt * TP
    halo = _round_up(Wp2 + 2, 128)             # covers max tap offset Wp2+1
    TPH = TP + halo

    xw = _build_parity_windows(x_nchw, TP, nt, TPH)      # (N*nt, 4, Cin, TPH)

    kern = functools.partial(conv_relu_pool_kernel, wp2=Wp2)
    out = pl.pallas_call(
        kern,
        out_shape=jax.ShapeDtypeStruct((N, Cout, Lp_pad), jnp.bfloat16),
        grid_spec=pltpu.PrefetchScalarGridSpec(
            num_scalar_prefetch=0,
            grid=(N, nt),
            in_specs=[
                pl.BlockSpec((1, 4, Cin, TPH), lambda n, t: (n * nt + t, 0, 0, 0)),
                pl.BlockSpec((Cout, 9 * Cin), lambda n, t: (0, 0)),
                pl.BlockSpec((Cout, 1), lambda n, t: (0, 0)),
            ],
            out_specs=pl.BlockSpec((1, Cout, TP), lambda n, t: (n, 0, t)),
            scratch_shapes=[pltpu.VMEM((9 * Cin, 4 * TP), jnp.bfloat16)],
        ),
        compiler_params=pltpu.CompilerParams(
            dimension_semantics=("parallel", "parallel"),
            vmem_limit_bytes=_vmem_limit_bytes()),
        cost_estimate=pl.CostEstimate(
            flops=2 * N * Cout * (9 * Cin) * (4 * Lp_pad),
            transcendentals=0,
            bytes_accessed=(int(xw.size) + w_mat.size + N * Cout * Lp_pad) * 2
                           + b_col.size * 4),
    )(xw, w_mat, b_col)

    # Strip the spacing/padding: (N, Cout, Lp_pad) -> (N, Cout, Ho, Wo).
    y = out[:, :, :Lp].reshape(N, Cout, Ho, Wp2)[:, :, :, :Wo]
    return y


# ---------------------------------------------------------------------------
# FC head: fc1 (tiled over F, HID split in two parallel halves) + ReLU + fc2
# ---------------------------------------------------------------------------
def mlp_kernel(x_ref, w1_ref, b1_ref, w2_ref, o_ref, acc_ref):
    """Grid = (hid_half [parallel], k [arbitrary reduction over F]).

    x_ref:  (N, TK)      bf16     w1_ref: (HB, TK) bf16
    b1_ref: (1, 1, HB)   f32      w2_ref: (HB, C)  f32
    o_ref:  (1, N, C)    f32 partial logits      acc_ref: (N, HB) f32 scratch
    """
    k = pl.program_id(1)

    @pl.when(k == 0)
    def _():
        acc_ref[...] = jnp.zeros_like(acc_ref)

    acc_ref[...] += lax.dot_general(
        x_ref[...], w1_ref[...],
        dimension_numbers=(((1,), (1,)), ((), ())),
        preferred_element_type=jnp.float32)                      # (N, HB)

    @pl.when(k == pl.num_programs(1) - 1)
    def _():
        h = jnp.maximum(acc_ref[...] + b1_ref[0], 0.0)
        o_ref[0] = jnp.dot(h, w2_ref[...], preferred_element_type=jnp.float32)


def fc_head(x_flat, w1, b1_split, w2t, b2_row):
    """x_flat: (N, F) bf16; w1: (HID, F) bf16; b1_split: (2,1,HID/2) f32;
    w2t: (HID, C) f32; b2_row: (1, C) f32 -> (N, C) f32."""
    N, F = x_flat.shape
    HID = w1.shape[0]
    assert HID % 2 == 0
    HB = HID // 2
    C = w2t.shape[1]
    TK = _largest_tile_divisor(F, 16384)       # (HB, TK) bf16 tile <= ~2 MiB
    nk = F // TK if F % TK == 0 else 1

    partials = pl.pallas_call(
        mlp_kernel,
        out_shape=jax.ShapeDtypeStruct((2, N, C), jnp.float32),
        grid_spec=pltpu.PrefetchScalarGridSpec(
            num_scalar_prefetch=0,
            grid=(2, nk),
            in_specs=[
                pl.BlockSpec((N, TK), lambda h, k: (0, k)),
                pl.BlockSpec((HB, TK), lambda h, k: (h, k)),
                pl.BlockSpec((1, 1, HB), lambda h, k: (h, 0, 0)),
                pl.BlockSpec((HB, C), lambda h, k: (h, 0)),
            ],
            out_specs=pl.BlockSpec((1, N, C), lambda h, k: (h, 0, 0)),
            scratch_shapes=[pltpu.VMEM((N, HB), jnp.float32)],
        ),
        compiler_params=pltpu.CompilerParams(
            dimension_semantics=("parallel", "arbitrary"),
            vmem_limit_bytes=_vmem_limit_bytes()),
        cost_estimate=pl.CostEstimate(
            flops=2 * N * F * HID + 2 * N * HID * C,
            transcendentals=0,
            bytes_accessed=(N * F + HID * F) * 2
                           + (HID * C + HID + 2 * N * C + C) * 4),
    )(x_flat, w1, b1_split, w2t)

    return partials[0] + partials[1] + b2_row


# ---------------------------------------------------------------------------
# Full forward pass
# ---------------------------------------------------------------------------
def brain_tumor_net(x_nchw, prm):
    """Forward pass matching the PyTorch BrainTumorNet module."""
    N = x_nchw.shape[0]
    y1 = conv_relu_pool(x_nchw, prm["conv1_wm"], prm["conv1_b"])   # (N,16,H/2,W/2)
    y2 = conv_relu_pool(y1, prm["conv2_wm"], prm["conv2_b"])       # (N,32,H/4,W/4)
    # channel-major NCHW flatten == PyTorch x.view(N, -1); no transpose needed.
    x_flat = y2.reshape(N, -1)
    return fc_head(x_flat, prm["fc1_w"], prm["fc1_b"], prm["fc2_wt"], prm["fc2_b"])


# ---------------------------------------------------------------------------
# Parameters (PyTorch layouts) and one-time packing (outside jit)
# ---------------------------------------------------------------------------
def init_params(key, H, W, num_classes):
    c1, c2, hid = 16, 32, 128
    F = c2 * (H // 4) * (W // 4)   # == 32*56*56 when H=W=224 (as in the module)
    ks = jax.random.split(key, 8)
    return {
        "conv1_w": jax.random.normal(ks[0], (c1, 3, 3, 3), jnp.float32) * 0.10,
        "conv1_b": jax.random.normal(ks[1], (c1,), jnp.float32) * 0.10,
        "conv2_w": jax.random.normal(ks[2], (c2, c1, 3, 3), jnp.float32) * 0.05,
        "conv2_b": jax.random.normal(ks[3], (c2,), jnp.float32) * 0.05,
        "fc1_w": jax.random.normal(ks[4], (hid, F), jnp.float32) * 0.01,
        "fc1_b": jax.random.normal(ks[5], (hid,), jnp.float32) * 0.01,
        "fc2_w": jax.random.normal(ks[6], (num_classes, hid), jnp.float32) * 0.01,
        "fc2_b": jax.random.normal(ks[7], (num_classes,), jnp.float32) * 0.01,
    }


def prepare_params(p):
    """One-time packing/casting OUTSIDE jit."""
    def pack_conv(w):  # (Cout, Cin, kh, kw) -> (Cout, 9*Cin) in (kh, kw, cin) order
        cout = w.shape[0]
        return jnp.transpose(w, (0, 2, 3, 1)).reshape(cout, -1).astype(jnp.bfloat16)
    return {
        "conv1_wm": pack_conv(p["conv1_w"]),
        "conv1_b": p["conv1_b"].reshape(-1, 1).astype(jnp.float32),
        "conv2_wm": pack_conv(p["conv2_w"]),
        "conv2_b": p["conv2_b"].reshape(-1, 1).astype(jnp.float32),
        "fc1_w": p["fc1_w"].astype(jnp.bfloat16),            # native (HID, F) layout
        "fc1_b": p["fc1_b"].reshape(2, 1, -1).astype(jnp.float32),  # 2 HID halves
        "fc2_wt": p["fc2_w"].T.astype(jnp.float32),           # (HID, C), tiny
        "fc2_b": p["fc2_b"].reshape(1, -1).astype(jnp.float32),
    }


# ---------------------------------------------------------------------------
# Pure-JAX reference (matches the kernel's bf16 casting points; f32 accumulation)
# ---------------------------------------------------------------------------
def reference_forward(x, p):
    f32 = jnp.float32

    def conv_block(x, w, b):
        xb = x.astype(jnp.bfloat16).astype(f32)
        wb = w.astype(jnp.bfloat16).astype(f32)
        y = lax.conv_general_dilated(xb, wb, window_strides=(1, 1),
                                     padding=((1, 1), (1, 1)),
                                     dimension_numbers=("NCHW", "OIHW", "NCHW"))
        y = jnp.maximum(y + b[None, :, None, None], 0.0)
        y = lax.reduce_window(y, -jnp.inf, lax.max,
                              (1, 1, 2, 2), (1, 1, 2, 2), "VALID")
        return y.astype(jnp.bfloat16).astype(f32)

    y = conv_block(x, p["conv1_w"], p["conv1_b"])
    y = conv_block(y, p["conv2_w"], p["conv2_b"])
    xf = y.reshape(y.shape[0], -1)
    w1b = p["fc1_w"].astype(jnp.bfloat16).astype(f32)
    h = jnp.maximum(xf @ w1b.T + p["fc1_b"][None, :], 0.0)
    return h @ p["fc2_w"].T + p["fc2_b"][None, :]


if __name__ == "__main__":
    key = jax.random.PRNGKey(0)
    kx, kp = jax.random.split(key)

    N, Cin, H, W = 2, 3, 32, 32        # small instance (PyTorch default is 3x224x224)
    num_classes = 4

    x = jax.random.normal(kx, (N, Cin, H, W), jnp.float32)
    raw = init_params(kp, H, W, num_classes)
    params = prepare_params(raw)

    fwd = jax.jit(brain_tumor_net)
    out = fwd(x, params)
    jax.block_until_ready(out)
    assert out.shape == (N, num_classes) and out.dtype == jnp.float32

    # Correctness vs a bf16-matched pure-JAX reference (documents bf16 drift).
    ref = jax.jit(reference_forward)(x, raw)
    np.testing.assert_allclose(np.asarray(out), np.asarray(ref),
                               rtol=2e-2, atol=2e-3)

    print("KERNEL_OK")
</pallas_src>

<mosaic_0001>
module attributes {stable_mosaic.version = 11 : i64} {
  func.func @conv_relu_pool_kernel(%arg0: i32, %arg1: i32, %arg2: memref<1x4x3x512xbf16, #tpu.memory_space<vmem>>, %arg3: memref<16x27xbf16, #tpu.memory_space<vmem>>, %arg4: memref<16x1xf32, #tpu.memory_space<vmem>>, %arg5: memref<1x16x384xbf16, #tpu.memory_space<vmem>>, %arg6: memref<27x1536xbf16, #tpu.memory_space<vmem>>) attributes {dimension_semantics = [#tpu.dimension_semantics<parallel>, #tpu.dimension_semantics<parallel>], iteration_bounds = array<i64: 2, 1>, scalar_prefetch = 0 : i64, scratch_operands = 1 : i64, tpu.core_type = #tpu.core_type<tc>, window_params = [{transform_indices = @transform_0, window_bounds = array<i64: 1, 4, 3, 512>}, {pipeline_mode = #tpu.pipeline_mode<synchronous>, transform_indices = @transform_1, window_bounds = array<i64: 16, 27>}, {pipeline_mode = #tpu.pipeline_mode<synchronous>, transform_indices = @transform_2, window_bounds = array<i64: 16, 1>}, {transform_indices = @transform_3, window_bounds = array<i64: 1, 16, 384>}]} {
    %c0 = arith.constant 0 : index
    %c0_0 = arith.constant 0 : index
    %c0_1 = arith.constant 0 : index
    %c0_2 = arith.constant 0 : index
    %0 = vector.load %arg2[%c0, %c0_0, %c0_1, %c0_2] : memref<1x4x3x512xbf16, #tpu.memory_space<vmem>>, vector<1x1x3x384xbf16>
    %1 = vector.shape_cast %0 : vector<1x1x3x384xbf16> to vector<3x384xbf16>
    %c0_3 = arith.constant 0 : index
    %c0_4 = arith.constant 0 : index
    %2 = vector.load %arg6[%c0_3, %c0_4] : memref<27x1536xbf16, #tpu.memory_space<vmem>>, vector<3x384xbf16>
    tpu.vector_store %arg6[%c0_3, %c0_4], %1 {strides = array<i32>} : memref<27x1536xbf16, #tpu.memory_space<vmem>>, vector<3x384xbf16>,
    %c0_5 = arith.constant 0 : index
    %c1 = arith.constant 1 : index
    %c0_6 = arith.constant 0 : index
    %c0_7 = arith.constant 0 : index
    %3 = vector.load %arg2[%c0_5, %c1, %c0_6, %c0_7] : memref<1x4x3x512xbf16, #tpu.memory_space<vmem>>, vector<1x1x3x384xbf16>
    %4 = vector.shape_cast %3 : vector<1x1x3x384xbf16> to vector<3x384xbf16>
    %c3 = arith.constant 3 : index
    %c0_8 = arith.constant 0 : index
    %5 = vector.load %arg6[%c3, %c0_8] : memref<27x1536xbf16, #tpu.memory_space<vmem>>, vector<3x384xbf16>
    tpu.vector_store %arg6[%c3, %c0_8], %4 {strides = array<i32>} : memref<27x1536xbf16, #tpu.memory_space<vmem>>, vector<3x384xbf16>,
    %c0_9 = arith.constant 0 : index
    %c0_10 = arith.constant 0 : index
    %c0_11 = arith.constant 0 : index
    %c1_12 = arith.constant 1 : index
    %6 = vector.load %arg2[%c0_9, %c0_10, %c0_11, %c1_12] : memref<1x4x3x512xbf16, #tpu.memory_space<vmem>>, vector<1x1x3x384xbf16>
    %7 = vector.shape_cast %6 : vector<1x1x3x384xbf16> to vector<3x384xbf16>
    %c6 = arith.constant 6 : index
    %c0_13 = arith.constant 0 : index
    %8 = vector.load %arg6[%c6, %c0_13] : memref<27x1536xbf16, #tpu.memory_space<vmem>>, vector<3x384xbf16>
    tpu.vector_store %arg6[%c6, %c0_13], %7 {strides = array<i32>} : memref<27x1536xbf16, #tpu.memory_space<vmem>>, vector<3x384xbf16>,
    %c0_14 = arith.constant 0 : index
    %c2 = arith.constant 2 : index
    %c0_15 = arith.constant 0 : index
    %c0_16 = arith.constant 0 : index
    %9 = vector.load %arg2[%c0_14, %c2, %c0_15, %c0_16] : memref<1x4x3x512xbf16, #tpu.memory_space<vmem>>, vector<1x1x3x384xbf16>
    %10 = vector.shape_cast %9 : vector<1x1x3x384xbf16> to vector<3x384xbf16>
    %c9 = arith.constant 9 : index
    %c0_17 = arith.constant 0 : index
    %11 = vector.load %arg6[%c9, %c0_17] : memref<27x1536xbf16, #tpu.memory_space<vmem>>, vector<3x384xbf16>
    tpu.vector_store %arg6[%c9, %c0_17], %10 {strides = array<i32>} : memref<27x1536xbf16, #tpu.memory_space<vmem>>, vector<3x384xbf16>,
    %c0_18 = arith.constant 0 : index
    %c3_19 = arith.constant 3 : index
    %c0_20 = arith.constant 0 : index
    %c0_21 = arith.constant 0 : index
    %12 = vector.load %arg2[%c0_18, %c3_19, %c0_20, %c0_21] : memref<1x4x3x512xbf16, #tpu.memory_space<vmem>>, vector<1x1x3x384xbf16>
    %13 = vector.shape_cast %12 : vector<1x1x3x384xbf16> to vector<3x384xbf16>
    %c12 = arith.constant 12 : index
    %c0_22 = arith.constant 0 : index
    %14 = vector.load %arg6[%c12, %c0_22] : memref<27x1536xbf16, #tpu.memory_space<vmem>>, vector<3x384xbf16>
    tpu.vector_store %arg6[%c12, %c0_22], %13 {strides = array<i32>} : memref<27x1536xbf16, #tpu.memory_space<vmem>>, vector<3x384xbf16>,
    %c0_23 = arith.constant 0 : index
    %c2_24 = arith.constant 2 : index
    %c0_25 = arith.constant 0 : index
    %c1_26 = arith.constant 1 : index
    %15 = vector.load %arg2[%c0_23, %c2_24, %c0_25, %c1_26] : memref<1x4x3x512xbf16, #tpu.memory_space<vmem>>, vector<1x1x3x384xbf16>
    %16 = vector.shape_cast %15 : vector<1x1x3x384xbf16> to vector<3x384xbf16>
    %c15 = arith.constant 15 : index
    %c0_27 = arith.constant 0 : index
    %17 = vector.load %arg6[%c15, %c0_27] : memref<27x1536xbf16, #tpu.memory_space<vmem>>, vector<3x384xbf16>
    tpu.vector_store %arg6[%c15, %c0_27], %16 {strides = array<i32>} : memref<27x1536xbf16, #tpu.memory_space<vmem>>, vector<3x384xbf16>,
    %c0_28 = arith.constant 0 : index
    %c0_29 = arith.constant 0 : index
    %c0_30 = arith.constant 0 : index
    %c17 = arith.constant 17 : index
    %18 = vector.load %arg2[%c0_28, %c0_29, %c0_30, %c17] : memref<1x4x3x512xbf16, #tpu.memory_space<vmem>>, vector<1x1x3x384xbf16>
    %19 = vector.shape_cast %18 : vector<1x1x3x384xbf16> to vector<3x384xbf16>
    %c18 = arith.constant 18 : index
    %c0_31 = arith.constant 0 : index
    %20 = vector.load %arg6[%c18, %c0_31] : memref<27x1536xbf16, #tpu.memory_space<vmem>>, vector<3x384xbf16>
    tpu.vector_store %arg6[%c18, %c0_31], %19 {strides = array<i32>} : memref<27x1536xbf16, #tpu.memory_space<vmem>>, vector<3x384xbf16>,
    %c0_32 = arith.constant 0 : index
    %c1_33 = arith.constant 1 : index
    %c0_34 = arith.constant 0 : index
    %c17_35 = arith.constant 17 : index
    %21 = vector.load %arg2[%c0_32, %c1_33, %c0_34, %c17_35] : memref<1x4x3x512xbf16, #tpu.memory_space<vmem>>, vector<1x1x3x384xbf16>
    %22 = vector.shape_cast %21 : vector<1x1x3x384xbf16> to vector<3x384xbf16>
    %c21 = arith.constant 21 : index
    %c0_36 = arith.constant 0 : index
    %23 = vector.load %arg6[%c21, %c0_36] : memref<27x1536xbf16, #tpu.memory_space<vmem>>, vector<3x384xbf16>
    tpu.vector_store %arg6[%c21, %c0_36], %22 {strides = array<i32>} : memref<27x1536xbf16, #tpu.memory_space<vmem>>, vector<3x384xbf16>,
    %c0_37 = arith.constant 0 : index
    %c0_38 = arith.constant 0 : index
    %c0_39 = arith.constant 0 : index
    %c18_40 = arith.constant 18 : index
    %24 = vector.load %arg2[%c0_37, %c0_38, %c0_39, %c18_40] : memref<1x4x3x512xbf16, #tpu.memory_space<vmem>>, vector<1x1x3x384xbf16>
    %25 = vector.shape_cast %24 : vector<1x1x3x384xbf16> to vector<3x384xbf16>
    %c24 = arith.constant 24 : index
    %c0_41 = arith.constant 0 : index
    %26 = vector.load %arg6[%c24, %c0_41] : memref<27x1536xbf16, #tpu.memory_space<vmem>>, vector<3x384xbf16>
    tpu.vector_store %arg6[%c24, %c0_41], %25 {strides = array<i32>} : memref<27x1536xbf16, #tpu.memory_space<vmem>>, vector<3x384xbf16>,
    %c0_42 = arith.constant 0 : index
    %c1_43 = arith.constant 1 : index
    %c0_44 = arith.constant 0 : index
    %c0_45 = arith.constant 0 : index
    %27 = vector.load %arg2[%c0_42, %c1_43, %c0_44, %c0_45] : memref<1x4x3x512xbf16, #tpu.memory_space<vmem>>, vector<1x1x3x384xbf16>
    %28 = vector.shape_cast %27 : vector<1x1x3x384xbf16> to vector<3x384xbf16>
    %c0_46 = arith.constant 0 : index
    %c384 = arith.constant 384 : index
    %29 = vector.load %arg6[%c0_46, %c384] : memref<27x1536xbf16, #tpu.memory_space<vmem>>, vector<3x384xbf16>
    tpu.vector_store %arg6[%c0_46, %c384], %28 {strides = array<i32>} : memref<27x1536xbf16, #tpu.memory_space<vmem>>, vector<3x384xbf16>,
    %c0_47 = arith.constant 0 : index
    %c0_48 = arith.constant 0 : index
    %c0_49 = arith.constant 0 : index
    %c1_50 = arith.constant 1 : index
    %30 = vector.load %arg2[%c0_47, %c0_48, %c0_49, %c1_50] : memref<1x4x3x512xbf16, #tpu.memory_space<vmem>>, vector<1x1x3x384xbf16>
    %31 = vector.shape_cast %30 : vector<1x1x3x384xbf16> to vector<3x384xbf16>
    %c3_51 = arith.constant 3 : index
    %c384_52 = arith.constant 384 : index
    %32 = vector.load %arg6[%c3_51, %c384_52] : memref<27x1536xbf16, #tpu.memory_space<vmem>>, vector<3x384xbf16>
    tpu.vector_store %arg6[%c3_51, %c384_52], %31 {strides = array<i32>} : memref<27x1536xbf16, #tpu.memory_space<vmem>>, vector<3x384xbf16>,
    %c0_53 = arith.constant 0 : index
    %c1_54 = arith.constant 1 : index
    %c0_55 = arith.constant 0 : index
    %c1_56 = arith.constant 1 : index
    %33 = vector.load %arg2[%c0_53, %c1_54, %c0_55, %c1_56] : memref<1x4x3x512xbf16, #tpu.memory_space<vmem>>, vector<1x1x3x384xbf16>
    %34 = vector.shape_cast %33 : vector<1x1x3x384xbf16> to vector<3x384xbf16>
    %c6_57 = arith.constant 6 : index
    %c384_58 = arith.constant 384 : index
    %35 = vector.load %arg6[%c6_57, %c384_58] : memref<27x1536xbf16, #tpu.memory_space<vmem>>, vector<3x384xbf16>
    tpu.vector_store %arg6[%c6_57, %c384_58], %34 {strides = array<i32>} : memref<27x1536xbf16, #tpu.memory_space<vmem>>, vector<3x384xbf16>,
    %c0_59 = arith.constant 0 : index
    %c3_60 = arith.constant 3 : index
    %c0_61 = arith.constant 0 : index
    %c0_62 = arith.constant 0 : index
    %36 = vector.load %arg2[%c0_59, %c3_60, %c0_61, %c0_62] : memref<1x4x3x512xbf16, #tpu.memory_space<vmem>>, vector<1x1x3x384xbf16>
    %37 = vector.shape_cast %36 : vector<1x1x3x384xbf16> to vector<3x384xbf16>
    %c9_63 = arith.constant 9 : index
    %c384_64 = arith.constant 384 : index
    %38 = vector.load %arg6[%c9_63, %c384_64] : memref<27x1536xbf16, #tpu.memory_space<vmem>>, vector<3x384xbf16>
    tpu.vector_store %arg6[%c9_63, %c384_64], %37 {strides = array<i32>} : memref<27x1536xbf16, #tpu.memory_space<vmem>>, vector<3x384xbf16>,
    %c0_65 = arith.constant 0 : index
    %c2_66 = arith.constant 2 : index
    %c0_67 = arith.constant 0 : index
    %c1_68 = arith.constant 1 : index
    %39 = vector.load %arg2[%c0_65, %c2_66, %c0_67, %c1_68] : memref<1x4x3x512xbf16, #tpu.memory_space<vmem>>, vector<1x1x3x384xbf16>
    %40 = vector.shape_cast %39 : vector<1x1x3x384xbf16> to vector<3x384xbf16>
    %c12_69 = arith.constant 12 : index
    %c384_70 = arith.constant 384 : index
    %41 = vector.load %arg6[%c12_69, %c384_70] : memref<27x1536xbf16, #tpu.memory_space<vmem>>, vector<3x384xbf16>
    tpu.vector_store %arg6[%c12_69, %c384_70], %40 {strides = array<i32>} : memref<27x1536xbf16, #tpu.memory_space<vmem>>, vector<3x384xbf16>,
    %c0_71 = arith.constant 0 : index
    %c3_72 = arith.constant 3 : index
    %c0_73 = arith.constant 0 : index
    %c1_74 = arith.constant 1 : index
    %42 = vector.load %arg2[%c0_71, %c3_72, %c0_73, %c1_74] : memref<1x4x3x512xbf16, #tpu.memory_space<vmem>>, vector<1x1x3x384xbf16>
    %43 = vector.shape_cast %42 : vector<1x1x3x384xbf16> to vector<3x384xbf16>
    %c15_75 = arith.constant 15 : index
    %c384_76 = arith.constant 384 : index
    %44 = vector.load %arg6[%c15_75, %c384_76] : memref<27x1536xbf16, #tpu.memory_space<vmem>>, vector<3x384xbf16>
    tpu.vector_store %arg6[%c15_75, %c384_76], %43 {strides = array<i32>} : memref<27x1536xbf16, #tpu.memory_space<vmem>>, vector<3x384xbf16>,
    %c0_77 = arith.constant 0 : index
    %c1_78 = arith.constant 1 : index
    %c0_79 = arith.constant 0 : index
    %c17_80 = arith.constant 17 : index
    %45 = vector.load %arg2[%c0_77, %c1_78, %c0_79, %c17_80] : memref<1x4x3x512xbf16, #tpu.memory_space<vmem>>, vector<1x1x3x384xbf16>
    %46 = vector.shape_cast %45 : vector<1x1x3x384xbf16> to vector<3x384xbf16>
    %c18_81 = arith.constant 18 : index
    %c384_82 = arith.constant 384 : index
    %47 = vector.load %arg6[%c18_81, %c384_82] : memref<27x1536xbf16, #tpu.memory_space<vmem>>, vector<3x384xbf16>
    tpu.vector_store %arg6[%c18_81, %c384_82], %46 {strides = array<i32>} : memref<27x1536xbf16, #tpu.memory_space<vmem>>, vector<3x384xbf16>,
    %c0_83 = arith.constant 0 : index
    %c0_84 = arith.constant 0 : index
    %c0_85 = arith.constant 0 : index
    %c18_86 = arith.constant 18 : index
    %48 = vector.load %arg2[%c0_83, %c0_84, %c0_85, %c18_86] : memref<1x4x3x512xbf16, #tpu.memory_space<vmem>>, vector<1x1x3x384xbf16>
    %49 = vector.shape_cast %48 : vector<1x1x3x384xbf16> to vector<3x384xbf16>
    %c21_87 = arith.constant 21 : index
    %c384_88 = arith.constant 384 : index
    %50 = vector.load %arg6[%c21_87, %c384_88] : memref<27x1536xbf16, #tpu.memory_space<vmem>>, vector<3x384xbf16>
    tpu.vector_store %arg6[%c21_87, %c384_88], %49 {strides = array<i32>} : memref<27x1536xbf16, #tpu.memory_space<vmem>>, vector<3x384xbf16>,
    %c0_89 = arith.constant 0 : index
    %c1_90 = arith.constant 1 : index
    %c0_91 = arith.constant 0 : index
    %c18_92 = arith.constant 18 : index
    %51 = vector.load %arg2[%c0_89, %c1_90, %c0_91, %c18_92] : memref<1x4x3x512xbf16, #tpu.memory_space<vmem>>, vector<1x1x3x384xbf16>
    %52 = vector.shape_cast %51 : vector<1x1x3x384xbf16> to vector<3x384xbf16>
    %c24_93 = arith.constant 24 : index
    %c384_94 = arith.constant 384 : index
    %53 = vector.load %arg6[%c24_93, %c384_94] : memref<27x1536xbf16, #tpu.memory_space<vmem>>, vector<3x384xbf16>
    tpu.vector_store %arg6[%c24_93, %c384_94], %52 {strides = array<i32>} : memref<27x1536xbf16, #tpu.memory_space<vmem>>, vector<3x384xbf16>,
    %c0_95 = arith.constant 0 : index
    %c2_96 = arith.constant 2 : index
    %c0_97 = arith.constant 0 : index
    %c0_98 = arith.constant 0 : index
    %54 = vector.load %arg2[%c0_95, %c2_96, %c0_97, %c0_98] : memref<1x4x3x512xbf16, #tpu.memory_space<vmem>>, vector<1x1x3x384xbf16>
    %55 = vector.shape_cast %54 : vector<1x1x3x384xbf16> to vector<3x384xbf16>
    %c0_99 = arith.constant 0 : index
    %c768 = arith.constant 768 : index
    %56 = vector.load %arg6[%c0_99, %c768] : memref<27x1536xbf16, #tpu.memory_space<vmem>>, vector<3x384xbf16>
    tpu.vector_store %arg6[%c0_99, %c768], %55 {strides = array<i32>} : memref<27x1536xbf16, #tpu.memory_space<vmem>>, vector<3x384xbf16>,
    %c0_100 = arith.constant 0 : index
    %c3_101 = arith.constant 3 : index
    %c0_102 = arith.constant 0 : index
    %c0_103 = arith.constant 0 : index
    %57 = vector.load %arg2[%c0_100, %c3_101, %c0_102, %c0_103] : memref<1x4x3x512xbf16, #tpu.memory_space<vmem>>, vector<1x1x3x384xbf16>
    %58 = vector.shape_cast %57 : vector<1x1x3x384xbf16> to vector<3x384xbf16>
    %c3_104 = arith.constant 3 : index
    %c768_105 = arith.constant 768 : index
    %59 = vector.load %arg6[%c3_104, %c768_105] : memref<27x1536xbf16, #tpu.memory_space<vmem>>, vector<3x384xbf16>
    tpu.vector_store %arg6[%c3_104, %c768_105], %58 {strides = array<i32>} : memref<27x1536xbf16, #tpu.memory_space<vmem>>, vector<3x384xbf16>,
    %c0_106 = arith.constant 0 : index
    %c2_107 = arith.constant 2 : index
    %c0_108 = arith.constant 0 : index
    %c1_109 = arith.constant 1 : index
    %60 = vector.load %arg2[%c0_106, %c2_107, %c0_108, %c1_109] : memref<1x4x3x512xbf16, #tpu.memory_space<vmem>>, vector<1x1x3x384xbf16>
    %61 = vector.shape_cast %60 : vector<1x1x3x384xbf16> to vector<3x384xbf16>
    %c6_110 = arith.constant 6 : index
    %c768_111 = arith.constant 768 : index
    %62 = vector.load %arg6[%c6_110, %c768_111] : memref<27x1536xbf16, #tpu.memory_space<vmem>>, vector<3x384xbf16>
    tpu.vector_store %arg6[%c6_110, %c768_111], %61 {strides = array<i32>} : memref<27x1536xbf16, #tpu.memory_space<vmem>>, vector<3x384xbf16>,
    %c0_112 = arith.constant 0 : index
    %c0_113 = arith.constant 0 : index
    %c0_114 = arith.constant 0 : index
    %c17_115 = arith.constant 17 : index
    %63 = vector.load %arg2[%c0_112, %c0_113, %c0_114, %c17_115] : memref<1x4x3x512xbf16, #tpu.memory_space<vmem>>, vector<1x1x3x384xbf16>
    %64 = vector.shape_cast %63 : vector<1x1x3x384xbf16> to vector<3x384xbf16>
    %c9_116 = arith.constant 9 : index
    %c768_117 = arith.constant 768 : index
    %65 = vector.load %arg6[%c9_116, %c768_117] : memref<27x1536xbf16, #tpu.memory_space<vmem>>, vector<3x384xbf16>
    tpu.vector_store %arg6[%c9_116, %c768_117], %64 {strides = array<i32>} : memref<27x1536xbf16, #tpu.memory_space<vmem>>, vector<3x384xbf16>,
    %c0_118 = arith.constant 0 : index
    %c1_119 = arith.constant 1 : index
    %c0_120 = arith.constant 0 : index
    %c17_121 = arith.constant 17 : index
    %66 = vector.load %arg2[%c0_118, %c1_119, %c0_120, %c17_121] : memref<1x4x3x512xbf16, #tpu.memory_space<vmem>>, vector<1x1x3x384xbf16>
    %67 = vector.shape_cast %66 : vector<1x1x3x384xbf16> to vector<3x384xbf16>
    %c12_122 = arith.constant 12 : index
    %c768_123 = arith.constant 768 : index
    %68 = vector.load %arg6[%c12_122, %c768_123] : memref<27x1536xbf16, #tpu.memory_space<vmem>>, vector<3x384xbf16>
    tpu.vector_store %arg6[%c12_122, %c768_123], %67 {strides = array<i32>} : memref<27x1536xbf16, #tpu.memory_space<vmem>>, vector<3x384xbf16>,
    %c0_124 = arith.constant 0 : index
    %c0_125 = arith.constant 0 : index
    %c0_126 = arith.constant 0 : index
    %c18_127 = arith.constant 18 : index
    %69 = vector.load %arg2[%c0_124, %c0_125, %c0_126, %c18_127] : memref<1x4x3x512xbf16, #tpu.memory_space<vmem>>, vector<1x1x3x384xbf16>
    %70 = vector.shape_cast %69 : vector<1x1x3x384xbf16> to vector<3x384xbf16>
    %c15_128 = arith.constant 15 : index
    %c768_129 = arith.constant 768 : index
    %71 = vector.load %arg6[%c15_128, %c768_129] : memref<27x1536xbf16, #tpu.memory_space<vmem>>, vector<3x384xbf16>
    tpu.vector_store %arg6[%c15_128, %c768_129], %70 {strides = array<i32>} : memref<27x1536xbf16, #tpu.memory_space<vmem>>, vector<3x384xbf16>,
    %c0_130 = arith.constant 0 : index
    %c2_131 = arith.constant 2 : index
    %c0_132 = arith.constant 0 : index
    %c17_133 = arith.constant 17 : index
    %72 = vector.load %arg2[%c0_130, %c2_131, %c0_132, %c17_133] : memref<1x4x3x512xbf16, #tpu.memory_space<vmem>>, vector<1x1x3x384xbf16>
    %73 = vector.shape_cast %72 : vector<1x1x3x384xbf16> to vector<3x384xbf16>
    %c18_134 = arith.constant 18 : index
    %c768_135 = arith.constant 768 : index
    %74 = vector.load %arg6[%c18_134, %c768_135] : memref<27x1536xbf16, #tpu.memory_space<vmem>>, vector<3x384xbf16>
    tpu.vector_store %arg6[%c18_134, %c768_135], %73 {strides = array<i32>} : memref<27x1536xbf16, #tpu.memory_space<vmem>>, vector<3x384xbf16>,
    %c0_136 = arith.constant 0 : index
    %c3_137 = arith.constant 3 : index
    %c0_138 = arith.constant 0 : index
    %c17_139 = arith.constant 17 : index
    %75 = vector.load %arg2[%c0_136, %c3_137, %c0_138, %c17_139] : memref<1x4x3x512xbf16, #tpu.memory_space<vmem>>, vector<1x1x3x384xbf16>
    %76 = vector.shape_cast %75 : vector<1x1x3x384xbf16> to vector<3x384xbf16>
    %c21_140 = arith.constant 21 : index
    %c768_141 = arith.constant 768 : index
    %77 = vector.load %arg6[%c21_140, %c768_141] : memref<27x1536xbf16, #tpu.memory_space<vmem>>, vector<3x384xbf16>
    tpu.vector_store %arg6[%c21_140, %c768_141], %76 {strides = array<i32>} : memref<27x1536xbf16, #tpu.memory_space<vmem>>, vector<3x384xbf16>,
    %c0_142 = arith.constant 0 : index
    %c2_143 = arith.constant 2 : index
    %c0_144 = arith.constant 0 : index
    %c18_145 = arith.constant 18 : index
    %78 = vector.load %arg2[%c0_142, %c2_143, %c0_144, %c18_145] : memref<1x4x3x512xbf16, #tpu.memory_space<vmem>>, vector<1x1x3x384xbf16>
    %79 = vector.shape_cast %78 : vector<1x1x3x384xbf16> to vector<3x384xbf16>
    %c24_146 = arith.constant 24 : index
    %c768_147 = arith.constant 768 : index
    %80 = vector.load %arg6[%c24_146, %c768_147] : memref<27x1536xbf16, #tpu.memory_space<vmem>>, vector<3x384xbf16>
    tpu.vector_store %arg6[%c24_146, %c768_147], %79 {strides = array<i32>} : memref<27x1536xbf16, #tpu.memory_space<vmem>>, vector<3x384xbf16>,
    %c0_148 = arith.constant 0 : index
    %c3_149 = arith.constant 3 : index
    %c0_150 = arith.constant 0 : index
    %c0_151 = arith.constant 0 : index
    %81 = vector.load %arg2[%c0_148, %c3_149, %c0_150, %c0_151] : memref<1x4x3x512xbf16, #tpu.memory_space<vmem>>, vector<1x1x3x384xbf16>
    %82 = vector.shape_cast %81 : vector<1x1x3x384xbf16> to vector<3x384xbf16>
    %c0_152 = arith.constant 0 : index
    %c1152 = arith.constant 1152 : index
    %83 = vector.load %arg6[%c0_152, %c1152] : memref<27x1536xbf16, #tpu.memory_space<vmem>>, vector<3x384xbf16>
    tpu.vector_store %arg6[%c0_152, %c1152], %82 {strides = array<i32>} : memref<27x1536xbf16, #tpu.memory_space<vmem>>, vector<3x384xbf16>,
    %c0_153 = arith.constant 0 : index
    %c2_154 = arith.constant 2 : index
    %c0_155 = arith.constant 0 : index
    %c1_156 = arith.constant 1 : index
    %84 = vector.load %arg2[%c0_153, %c2_154, %c0_155, %c1_156] : memref<1x4x3x512xbf16, #tpu.memory_space<vmem>>, vector<1x1x3x384xbf16>
    %85 = vector.shape_cast %84 : vector<1x1x3x384xbf16> to vector<3x384xbf16>
    %c3_157 = arith.constant 3 : index
    %c1152_158 = arith.constant 1152 : index
    %86 = vector.load %arg6[%c3_157, %c1152_158] : memref<27x1536xbf16, #tpu.memory_space<vmem>>, vector<3x384xbf16>
    tpu.vector_store %arg6[%c3_157, %c1152_158], %85 {strides = array<i32>} : memref<27x1536xbf16, #tpu.memory_space<vmem>>, vector<3x384xbf16>,
    %c0_159 = arith.constant 0 : index
    %c3_160 = arith.constant 3 : index
    %c0_161 = arith.constant 0 : index
    %c1_162 = arith.constant 1 : index
    %87 = vector.load %arg2[%c0_159, %c3_160, %c0_161, %c1_162] : memref<1x4x3x512xbf16, #tpu.memory_space<vmem>>, vector<1x1x3x384xbf16>
    %88 = vector.shape_cast %87 : vector<1x1x3x384xbf16> to vector<3x384xbf16>
    %c6_163 = arith.constant 6 : index
    %c1152_164 = arith.constant 1152 : index
    %89 = vector.load %arg6[%c6_163, %c1152_164] : memref<27x1536xbf16, #tpu.memory_space<vmem>>, vector<3x384xbf16>
    tpu.vector_store %arg6[%c6_163, %c1152_164], %88 {strides = array<i32>} : memref<27x1536xbf16, #tpu.memory_space<vmem>>, vector<3x384xbf16>,
    %c0_165 = arith.constant 0 : index
    %c1_166 = arith.constant 1 : index
    %c0_167 = arith.constant 0 : index
    %c17_168 = arith.constant 17 : index
    %90 = vector.load %arg2[%c0_165, %c1_166, %c0_167, %c17_168] : memref<1x4x3x512xbf16, #tpu.memory_space<vmem>>, vector<1x1x3x384xbf16>
    %91 = vector.shape_cast %90 : vector<1x1x3x384xbf16> to vector<3x384xbf16>
    %c9_169 = arith.constant 9 : index
    %c1152_170 = arith.constant 1152 : index
    %92 = vector.load %arg6[%c9_169, %c1152_170] : memref<27x1536xbf16, #tpu.memory_space<vmem>>, vector<3x384xbf16>
    tpu.vector_store %arg6[%c9_169, %c1152_170], %91 {strides = array<i32>} : memref<27x1536xbf16, #tpu.memory_space<vmem>>, vector<3x384xbf16>,
    %c0_171 = arith.constant 0 : index
    %c0_172 = arith.constant 0 : index
    %c0_173 = arith.constant 0 : index
    %c18_174 = arith.constant 18 : index
    %93 = vector.load %arg2[%c0_171, %c0_172, %c0_173, %c18_174] : memref<1x4x3x512xbf16, #tpu.memory_space<vmem>>, vector<1x1x3x384xbf16>
    %94 = vector.shape_cast %93 : vector<1x1x3x384xbf16> to vector<3x384xbf16>
    %c12_175 = arith.constant 12 : index
    %c1152_176 = arith.constant 1152 : index
    %95 = vector.load %arg6[%c12_175, %c1152_176] : memref<27x1536xbf16, #tpu.memory_space<vmem>>, vector<3x384xbf16>
    tpu.vector_store %arg6[%c12_175, %c1152_176], %94 {strides = array<i32>} : memref<27x1536xbf16, #tpu.memory_space<vmem>>, vector<3x384xbf16>,
    %c0_177 = arith.constant 0 : index
    %c1_178 = arith.constant 1 : index
    %c0_179 = arith.constant 0 : index
    %c18_180 = arith.constant 18 : index
    %96 = vector.load %arg2[%c0_177, %c1_178, %c0_179, %c18_180] : memref<1x4x3x512xbf16, #tpu.memory_space<vmem>>, vector<1x1x3x384xbf16>
    %97 = vector.shape_cast %96 : vector<1x1x3x384xbf16> to vector<3x384xbf16>
    %c15_181 = arith.constant 15 : index
    %c1152_182 = arith.constant 1152 : index
    %98 = vector.load %arg6[%c15_181, %c1152_182] : memref<27x1536xbf16, #tpu.memory_space<vmem>>, vector<3x384xbf16>
    tpu.vector_store %arg6[%c15_181, %c1152_182], %97 {strides = array<i32>} : memref<27x1536xbf16, #tpu.memory_space<vmem>>, vector<3x384xbf16>,
    %c0_183 = arith.constant 0 : index
    %c3_184 = arith.constant 3 : index
    %c0_185 = arith.constant 0 : index
    %c17_186 = arith.constant 17 : index
    %99 = vector.load %arg2[%c0_183, %c3_184, %c0_185, %c17_186] : memref<1x4x3x512xbf16, #tpu.memory_space<vmem>>, vector<1x1x3x384xbf16>
    %100 = vector.shape_cast %99 : vector<1x1x3x384xbf16> to vector<3x384xbf16>
    %c18_187 = arith.constant 18 : index
    %c1152_188 = arith.constant 1152 : index
    %101 = vector.load %arg6[%c18_187, %c1152_188] : memref<27x1536xbf16, #tpu.memory_space<vmem>>, vector<3x384xbf16>
    tpu.vector_store %arg6[%c18_187, %c1152_188], %100 {strides = array<i32>} : memref<27x1536xbf16, #tpu.memory_space<vmem>>, vector<3x384xbf16>,
    %c0_189 = arith.constant 0 : index
    %c2_190 = arith.constant 2 : index
    %c0_191 = arith.constant 0 : index
    %c18_192 = arith.constant 18 : index
    %102 = vector.load %arg2[%c0_189, %c2_190, %c0_191, %c18_192] : memref<1x4x3x512xbf16, #tpu.memory_space<vmem>>, vector<1x1x3x384xbf16>
    %103 = vector.shape_cast %102 : vector<1x1x3x384xbf16> to vector<3x384xbf16>
    %c21_193 = arith.constant 21 : index
    %c1152_194 = arith.constant 1152 : index
    %104 = vector.load %arg6[%c21_193, %c1152_194] : memref<27x1536xbf16, #tpu.memory_space<vmem>>, vector<3x384xbf16>
    tpu.vector_store %arg6[%c21_193, %c1152_194], %103 {strides = array<i32>} : memref<27x1536xbf16, #tpu.memory_space<vmem>>, vector<3x384xbf16>,
    %c0_195 = arith.constant 0 : index
    %c3_196 = arith.constant 3 : index
    %c0_197 = arith.constant 0 : index
    %c18_198 = arith.constant 18 : index
    %105 = vector.load %arg2[%c0_195, %c3_196, %c0_197, %c18_198] : memref<1x4x3x512xbf16, #tpu.memory_space<vmem>>, vector<1x1x3x384xbf16>
    %106 = vector.shape_cast %105 : vector<1x1x3x384xbf16> to vector<3x384xbf16>
    %c24_199 = arith.constant 24 : index
    %c1152_200 = arith.constant 1152 : index
    %107 = vector.load %arg6[%c24_199, %c1152_200] : memref<27x1536xbf16, #tpu.memory_space<vmem>>, vector<3x384xbf16>
    tpu.vector_store %arg6[%c24_199, %c1152_200], %106 {strides = array<i32>} : memref<27x1536xbf16, #tpu.memory_space<vmem>>, vector<3x384xbf16>,
    %c0_201 = arith.constant 0 : index
    %c0_202 = arith.constant 0 : index
    %108 = vector.load %arg3[%c0_201, %c0_202] : memref<16x27xbf16, #tpu.memory_space<vmem>>, vector<16x27xbf16>
    %c0_203 = arith.constant 0 : index
    %c0_204 = arith.constant 0 : index
    %109 = vector.load %arg6[%c0_203, %c0_204] : memref<27x1536xbf16, #tpu.memory_space<vmem>>, vector<27x1536xbf16>
    %cst = arith.constant dense<0.000000e+00> : vector<16x1536xf32>
    %110 = tpu.matmul %108, %109, %cst {dimension_numbers = #tpu.dot_dimension_numbers<[1], [0], [0], [1], [0, 0, 1, 1], [], []>} : vector<16x27xbf16>, vector<27x1536xbf16>, vector<16x1536xf32> -> vector<16x1536xf32>
    %111 = vector.extract_strided_slice %110 {offsets = [0, 0], sizes = [16, 384], strides = [1, 1]} : vector<16x1536xf32> to vector<16x384xf32>
    %112 = vector.extract_strided_slice %110 {offsets = [0, 384], sizes = [16, 384], strides = [1, 1]} : vector<16x1536xf32> to vector<16x384xf32>
    %113 = arith.maximumf %111, %112 : vector<16x384xf32>
    %114 = vector.extract_strided_slice %110 {offsets = [0, 768], sizes = [16, 384], strides = [1, 1]} : vector<16x1536xf32> to vector<16x384xf32>
    %115 = vector.extract_strided_slice %110 {offsets = [0, 1152], sizes = [16, 384], strides = [1, 1]} : vector<16x1536xf32> to vector<16x384xf32>
    %116 = arith.maximumf %114, %115 : vector<16x384xf32>
    %117 = arith.maximumf %113, %116 : vector<16x384xf32>
    %c0_205 = arith.constant 0 : index
    %c0_206 = arith.constant 0 : index
    %118 = vector.load %arg4[%c0_205, %c0_206] : memref<16x1xf32, #tpu.memory_space<vmem>>, vector<16x1xf32>
    %119 = vector.broadcast %118 : vector<16x1xf32> to vector<16x384xf32>
    %120 = arith.addf %117, %119 : vector<16x384xf32>
    %cst_207 = arith.constant 0.000000e+00 : f32
    %121 = vector.broadcast %cst_207 : f32 to vector<16x384xf32>
    %122 = arith.maximumf %120, %121 : vector<16x384xf32>
    %123 = arith.truncf %122 : vector<16x384xf32> to vector<16x384xbf16>
    %c0_208 = arith.constant 0 : index
    %c0_209 = arith.constant 0 : index
    %c0_210 = arith.constant 0 : index
    %124 = vector.load %arg5[%c0_208, %c0_209, %c0_210] : memref<1x16x384xbf16, #tpu.memory_space<vmem>>, vector<1x16x384xbf16>
    %125 = vector.shape_cast %124 : vector<1x16x384xbf16> to vector<16x384xbf16>
    %126 = vector.shape_cast %123 : vector<16x384xbf16> to vector<1x16x384xbf16>
    tpu.vector_store %arg5[%c0_208, %c0_209, %c0_210], %126 {strides = array<i32>} : memref<1x16x384xbf16, #tpu.memory_space<vmem>>, vector<1x16x384xbf16>,
    return
  }
  func.func @transform_0(%arg0: i32, %arg1: i32) -> (i32, i32, i32, i32) {
    %c1_i32 = arith.constant 1 : i32
    %0 = arith.muli %arg0, %c1_i32 : i32
    %1 = arith.addi %0, %arg1 : i32
    %c0_i32 = arith.constant 0 : i32
    %c0_i32_0 = arith.constant 0 : i32
    %c0_i32_1 = arith.constant 0 : i32
    %c0_i32_2 = arith.constant 0 : i32
    return %1, %c0_i32, %c0_i32_0, %c0_i32_1 : i32, i32, i32, i32
  }
  func.func @transform_1(%arg0: i32, %arg1: i32) -> (i32, i32) {
    %c0_i32 = arith.constant 0 : i32
    %c0_i32_0 = arith.constant 0 : i32
    %c0_i32_1 = arith.constant 0 : i32
    return %c0_i32, %c0_i32_0 : i32, i32
  }
  func.func @transform_2(%arg0: i32, %arg1: i32) -> (i32, i32) {
    %c0_i32 = arith.constant 0 : i32
    %c0_i32_0 = arith.constant 0 : i32
    %c0_i32_1 = arith.constant 0 : i32
    return %c0_i32, %c0_i32_0 : i32, i32
  }
  func.func @transform_3(%arg0: i32, %arg1: i32) -> (i32, i32, i32) {
    %c0_i32 = arith.constant 0 : i32
    %c0_i32_0 = arith.constant 0 : i32
    return %arg0, %c0_i32, %arg1 : i32, i32, i32
  }
}

module attributes {stable_mosaic.version = 11 : i64} {
  func.func @conv_relu_pool_kernel(%arg0: i32, %arg1: i32, %arg2: memref<1x4x16x256xbf16, #tpu.memory_space<vmem>>, %arg3: memref<32x144xbf16, #tpu.memory_space<vmem>>, %arg4: memref<32x1xf32, #tpu.memory_space<vmem>>, %arg5: memref<1x32x128xbf16, #tpu.memory_space<vmem>>, %arg6: memref<144x512xbf16, #tpu.memory_space<vmem>>) attributes {dimension_semantics = [#tpu.dimension_semantics<parallel>, #tpu.dimension_semantics<parallel>], iteration_bounds = array<i64: 2, 1>, scalar_prefetch = 0 : i64, scratch_operands = 1 : i64, tpu.core_type = #tpu.core_type<tc>, window_params = [{transform_indices = @transform_0, window_bounds = array<i64: 1, 4, 16, 256>}, {pipeline_mode = #tpu.pipeline_mode<synchronous>, transform_indices = @transform_1, window_bounds = array<i64: 32, 144>}, {pipeline_mode = #tpu.pipeline_mode<synchronous>, transform_indices = @transform_2, window_bounds = array<i64: 32, 1>}, {transform_indices = @transform_3, window_bounds = array<i64: 1, 32, 128>}]} {
    %c0 = arith.constant 0 : index
    %c0_0 = arith.constant 0 : index
    %c0_1 = arith.constant 0 : index
    %c0_2 = arith.constant 0 : index
    %0 = vector.load %arg2[%c0, %c0_0, %c0_1, %c0_2] : memref<1x4x16x256xbf16, #tpu.memory_space<vmem>>, vector<1x1x16x128xbf16>
    %1 = vector.shape_cast %0 : vector<1x1x16x128xbf16> to vector<16x128xbf16>
    %c0_3 = arith.constant 0 : index
    %c0_4 = arith.constant 0 : index
    %2 = vector.load %arg6[%c0_3, %c0_4] : memref<144x512xbf16, #tpu.memory_space<vmem>>, vector<16x128xbf16>
    tpu.vector_store %arg6[%c0_3, %c0_4], %1 {strides = array<i32>} : memref<144x512xbf16, #tpu.memory_space<vmem>>, vector<16x128xbf16>,
    %c0_5 = arith.constant 0 : index
    %c1 = arith.constant 1 : index
    %c0_6 = arith.constant 0 : index
    %c0_7 = arith.constant 0 : index
    %3 = vector.load %arg2[%c0_5, %c1, %c0_6, %c0_7] : memref<1x4x16x256xbf16, #tpu.memory_space<vmem>>, vector<1x1x16x128xbf16>
    %4 = vector.shape_cast %3 : vector<1x1x16x128xbf16> to vector<16x128xbf16>
    %c16 = arith.constant 16 : index
    %c0_8 = arith.constant 0 : index
    %5 = vector.load %arg6[%c16, %c0_8] : memref<144x512xbf16, #tpu.memory_space<vmem>>, vector<16x128xbf16>
    tpu.vector_store %arg6[%c16, %c0_8], %4 {strides = array<i32>} : memref<144x512xbf16, #tpu.memory_space<vmem>>, vector<16x128xbf16>,
    %c0_9 = arith.constant 0 : index
    %c0_10 = arith.constant 0 : index
    %c0_11 = arith.constant 0 : index
    %c1_12 = arith.constant 1 : index
    %6 = vector.load %arg2[%c0_9, %c0_10, %c0_11, %c1_12] : memref<1x4x16x256xbf16, #tpu.memory_space<vmem>>, vector<1x1x16x128xbf16>
    %7 = vector.shape_cast %6 : vector<1x1x16x128xbf16> to vector<16x128xbf16>
    %c32 = arith.constant 32 : index
    %c0_13 = arith.constant 0 : index
    %8 = vector.load %arg6[%c32, %c0_13] : memref<144x512xbf16, #tpu.memory_space<vmem>>, vector<16x128xbf16>
    tpu.vector_store %arg6[%c32, %c0_13], %7 {strides = array<i32>} : memref<144x512xbf16, #tpu.memory_space<vmem>>, vector<16x128xbf16>,
    %c0_14 = arith.constant 0 : index
    %c2 = arith.constant 2 : index
    %c0_15 = arith.constant 0 : index
    %c0_16 = arith.constant 0 : index
    %9 = vector.load %arg2[%c0_14, %c2, %c0_15, %c0_16] : memref<1x4x16x256xbf16, #tpu.memory_space<vmem>>, vector<1x1x16x128xbf16>
    %10 = vector.shape_cast %9 : vector<1x1x16x128xbf16> to vector<16x128xbf16>
    %c48 = arith.constant 48 : index
    %c0_17 = arith.constant 0 : index
    %11 = vector.load %arg6[%c48, %c0_17] : memref<144x512xbf16, #tpu.memory_space<vmem>>, vector<16x128xbf16>
    tpu.vector_store %arg6[%c48, %c0_17], %10 {strides = array<i32>} : memref<144x512xbf16, #tpu.memory_space<vmem>>, vector<16x128xbf16>,
    %c0_18 = arith.constant 0 : index
    %c3 = arith.constant 3 : index
    %c0_19 = arith.constant 0 : index
    %c0_20 = arith.constant 0 : index
    %12 = vector.load %arg2[%c0_18, %c3, %c0_19, %c0_20] : memref<1x4x16x256xbf16, #tpu.memory_space<vmem>>, vector<1x1x16x128xbf16>
    %13 = vector.shape_cast %12 : vector<1x1x16x128xbf16> to vector<16x128xbf16>
    %c64 = arith.constant 64 : index
    %c0_21 = arith.constant 0 : index
    %14 = vector.load %arg6[%c64, %c0_21] : memref<144x512xbf16, #tpu.memory_space<vmem>>, vector<16x128xbf16>
    tpu.vector_store %arg6[%c64, %c0_21], %13 {strides = array<i32>} : memref<144x512xbf16, #tpu.memory_space<vmem>>, vector<16x128xbf16>,
    %c0_22 = arith.constant 0 : index
    %c2_23 = arith.constant 2 : index
    %c0_24 = arith.constant 0 : index
    %c1_25 = arith.constant 1 : index
    %15 = vector.load %arg2[%c0_22, %c2_23, %c0_24, %c1_25] : memref<1x4x16x256xbf16, #tpu.memory_space<vmem>>, vector<1x1x16x128xbf16>
    %16 = vector.shape_cast %15 : vector<1x1x16x128xbf16> to vector<16x128xbf16>
    %c80 = arith.constant 80 : index
    %c0_26 = arith.constant 0 : index
    %17 = vector.load %arg6[%c80, %c0_26] : memref<144x512xbf16, #tpu.memory_space<vmem>>, vector<16x128xbf16>
    tpu.vector_store %arg6[%c80, %c0_26], %16 {strides = array<i32>} : memref<144x512xbf16, #tpu.memory_space<vmem>>, vector<16x128xbf16>,
    %c0_27 = arith.constant 0 : index
    %c0_28 = arith.constant 0 : index
    %c0_29 = arith.constant 0 : index
    %c9 = arith.constant 9 : index
    %18 = vector.load %arg2[%c0_27, %c0_28, %c0_29, %c9] : memref<1x4x16x256xbf16, #tpu.memory_space<vmem>>, vector<1x1x16x128xbf16>
    %19 = vector.shape_cast %18 : vector<1x1x16x128xbf16> to vector<16x128xbf16>
    %c96 = arith.constant 96 : index
    %c0_30 = arith.constant 0 : index
    %20 = vector.load %arg6[%c96, %c0_30] : memref<144x512xbf16, #tpu.memory_space<vmem>>, vector<16x128xbf16>
    tpu.vector_store %arg6[%c96, %c0_30], %19 {strides = array<i32>} : memref<144x512xbf16, #tpu.memory_space<vmem>>, vector<16x128xbf16>,
    %c0_31 = arith.constant 0 : index
    %c1_32 = arith.constant 1 : index
    %c0_33 = arith.constant 0 : index
    %c9_34 = arith.constant 9 : index
    %21 = vector.load %arg2[%c0_31, %c1_32, %c0_33, %c9_34] : memref<1x4x16x256xbf16, #tpu.memory_space<vmem>>, vector<1x1x16x128xbf16>
    %22 = vector.shape_cast %21 : vector<1x1x16x128xbf16> to vector<16x128xbf16>
    %c112 = arith.constant 112 : index
    %c0_35 = arith.constant 0 : index
    %23 = vector.load %arg6[%c112, %c0_35] : memref<144x512xbf16, #tpu.memory_space<vmem>>, vector<16x128xbf16>
    tpu.vector_store %arg6[%c112, %c0_35], %22 {strides = array<i32>} : memref<144x512xbf16, #tpu.memory_space<vmem>>, vector<16x128xbf16>,
    %c0_36 = arith.constant 0 : index
    %c0_37 = arith.constant 0 : index
    %c0_38 = arith.constant 0 : index
    %c10 = arith.constant 10 : index
    %24 = vector.load %arg2[%c0_36, %c0_37, %c0_38, %c10] : memref<1x4x16x256xbf16, #tpu.memory_space<vmem>>, vector<1x1x16x128xbf16>
    %25 = vector.shape_cast %24 : vector<1x1x16x128xbf16> to vector<16x128xbf16>
    %c128 = arith.constant 128 : index
    %c0_39 = arith.constant 0 : index
    %26 = vector.load %arg6[%c128, %c0_39] : memref<144x512xbf16, #tpu.memory_space<vmem>>, vector<16x128xbf16>
    tpu.vector_store %arg6[%c128, %c0_39], %25 {strides = array<i32>} : memref<144x512xbf16, #tpu.memory_space<vmem>>, vector<16x128xbf16>,
    %c0_40 = arith.constant 0 : index
    %c1_41 = arith.constant 1 : index
    %c0_42 = arith.constant 0 : index
    %c0_43 = arith.constant 0 : index
    %27 = vector.load %arg2[%c0_40, %c1_41, %c0_42, %c0_43] : memref<1x4x16x256xbf16, #tpu.memory_space<vmem>>, vector<1x1x16x128xbf16>
    %28 = vector.shape_cast %27 : vector<1x1x16x128xbf16> to vector<16x128xbf16>
    %c0_44 = arith.constant 0 : index
    %c128_45 = arith.constant 128 : index
    %29 = vector.load %arg6[%c0_44, %c128_45] : memref<144x512xbf16, #tpu.memory_space<vmem>>, vector<16x128xbf16>
    tpu.vector_store %arg6[%c0_44, %c128_45], %28 {strides = array<i32>} : memref<144x512xbf16, #tpu.memory_space<vmem>>, vector<16x128xbf16>,
    %c0_46 = arith.constant 0 : index
    %c0_47 = arith.constant 0 : index
    %c0_48 = arith.constant 0 : index
    %c1_49 = arith.constant 1 : index
    %30 = vector.load %arg2[%c0_46, %c0_47, %c0_48, %c1_49] : memref<1x4x16x256xbf16, #tpu.memory_space<vmem>>, vector<1x1x16x128xbf16>
    %31 = vector.shape_cast %30 : vector<1x1x16x128xbf16> to vector<16x128xbf16>
    %c16_50 = arith.constant 16 : index
    %c128_51 = arith.constant 128 : index
    %32 = vector.load %arg6[%c16_50, %c128_51] : memref<144x512xbf16, #tpu.memory_space<vmem>>, vector<16x128xbf16>
    tpu.vector_store %arg6[%c16_50, %c128_51], %31 {strides = array<i32>} : memref<144x512xbf16, #tpu.memory_space<vmem>>, vector<16x128xbf16>,
    %c0_52 = arith.constant 0 : index
    %c1_53 = arith.constant 1 : index
    %c0_54 = arith.constant 0 : index
    %c1_55 = arith.constant 1 : index
    %33 = vector.load %arg2[%c0_52, %c1_53, %c0_54, %c1_55] : memref<1x4x16x256xbf16, #tpu.memory_space<vmem>>, vector<1x1x16x128xbf16>
    %34 = vector.shape_cast %33 : vector<1x1x16x128xbf16> to vector<16x128xbf16>
    %c32_56 = arith.constant 32 : index
    %c128_57 = arith.constant 128 : index
    %35 = vector.load %arg6[%c32_56, %c128_57] : memref<144x512xbf16, #tpu.memory_space<vmem>>, vector<16x128xbf16>
    tpu.vector_store %arg6[%c32_56, %c128_57], %34 {strides = array<i32>} : memref<144x512xbf16, #tpu.memory_space<vmem>>, vector<16x128xbf16>,
    %c0_58 = arith.constant 0 : index
    %c3_59 = arith.constant 3 : index
    %c0_60 = arith.constant 0 : index
    %c0_61 = arith.constant 0 : index
    %36 = vector.load %arg2[%c0_58, %c3_59, %c0_60, %c0_61] : memref<1x4x16x256xbf16, #tpu.memory_space<vmem>>, vector<1x1x16x128xbf16>
    %37 = vector.shape_cast %36 : vector<1x1x16x128xbf16> to vector<16x128xbf16>
    %c48_62 = arith.constant 48 : index
    %c128_63 = arith.constant 128 : index
    %38 = vector.load %arg6[%c48_62, %c128_63] : memref<144x512xbf16, #tpu.memory_space<vmem>>, vector<16x128xbf16>
    tpu.vector_store %arg6[%c48_62, %c128_63], %37 {strides = array<i32>} : memref<144x512xbf16, #tpu.memory_space<vmem>>, vector<16x128xbf16>,
    %c0_64 = arith.constant 0 : index
    %c2_65 = arith.constant 2 : index
    %c0_66 = arith.constant 0 : index
    %c1_67 = arith.constant 1 : index
    %39 = vector.load %arg2[%c0_64, %c2_65, %c0_66, %c1_67] : memref<1x4x16x256xbf16, #tpu.memory_space<vmem>>, vector<1x1x16x128xbf16>
    %40 = vector.shape_cast %39 : vector<1x1x16x128xbf16> to vector<16x128xbf16>
    %c64_68 = arith.constant 64 : index
    %c128_69 = arith.constant 128 : index
    %41 = vector.load %arg6[%c64_68, %c128_69] : memref<144x512xbf16, #tpu.memory_space<vmem>>, vector<16x128xbf16>
    tpu.vector_store %arg6[%c64_68, %c128_69], %40 {strides = array<i32>} : memref<144x512xbf16, #tpu.memory_space<vmem>>, vector<16x128xbf16>,
    %c0_70 = arith.constant 0 : index
    %c3_71 = arith.constant 3 : index
    %c0_72 = arith.constant 0 : index
    %c1_73 = arith.constant 1 : index
    %42 = vector.load %arg2[%c0_70, %c3_71, %c0_72, %c1_73] : memref<1x4x16x256xbf16, #tpu.memory_space<vmem>>, vector<1x1x16x128xbf16>
    %43 = vector.shape_cast %42 : vector<1x1x16x128xbf16> to vector<16x128xbf16>
    %c80_74 = arith.constant 80 : index
    %c128_75 = arith.constant 128 : index
    %44 = vector.load %arg6[%c80_74, %c128_75] : memref<144x512xbf16, #tpu.memory_space<vmem>>, vector<16x128xbf16>
    tpu.vector_store %arg6[%c80_74, %c128_75], %43 {strides = array<i32>} : memref<144x512xbf16, #tpu.memory_space<vmem>>, vector<16x128xbf16>,
    %c0_76 = arith.constant 0 : index
    %c1_77 = arith.constant 1 : index
    %c0_78 = arith.constant 0 : index
    %c9_79 = arith.constant 9 : index
    %45 = vector.load %arg2[%c0_76, %c1_77, %c0_78, %c9_79] : memref<1x4x16x256xbf16, #tpu.memory_space<vmem>>, vector<1x1x16x128xbf16>
    %46 = vector.shape_cast %45 : vector<1x1x16x128xbf16> to vector<16x128xbf16>
    %c96_80 = arith.constant 96 : index
    %c128_81 = arith.constant 128 : index
    %47 = vector.load %arg6[%c96_80, %c128_81] : memref<144x512xbf16, #tpu.memory_space<vmem>>, vector<16x128xbf16>
    tpu.vector_store %arg6[%c96_80, %c128_81], %46 {strides = array<i32>} : memref<144x512xbf16, #tpu.memory_space<vmem>>, vector<16x128xbf16>,
    %c0_82 = arith.constant 0 : index
    %c0_83 = arith.constant 0 : index
    %c0_84 = arith.constant 0 : index
    %c10_85 = arith.constant 10 : index
    %48 = vector.load %arg2[%c0_82, %c0_83, %c0_84, %c10_85] : memref<1x4x16x256xbf16, #tpu.memory_space<vmem>>, vector<1x1x16x128xbf16>
    %49 = vector.shape_cast %48 : vector<1x1x16x128xbf16> to vector<16x128xbf16>
    %c112_86 = arith.constant 112 : index
    %c128_87 = arith.constant 128 : index
    %50 = vector.load %arg6[%c112_86, %c128_87] : memref<144x512xbf16, #tpu.memory_space<vmem>>, vector<16x128xbf16>
    tpu.vector_store %arg6[%c112_86, %c128_87], %49 {strides = array<i32>} : memref<144x512xbf16, #tpu.memory_space<vmem>>, vector<16x128xbf16>,
    %c0_88 = arith.constant 0 : index
    %c1_89 = arith.constant 1 : index
    %c0_90 = arith.constant 0 : index
    %c10_91 = arith.constant 10 : index
    %51 = vector.load %arg2[%c0_88, %c1_89, %c0_90, %c10_91] : memref<1x4x16x256xbf16, #tpu.memory_space<vmem>>, vector<1x1x16x128xbf16>
    %52 = vector.shape_cast %51 : vector<1x1x16x128xbf16> to vector<16x128xbf16>
    %c128_92 = arith.constant 128 : index
    %c128_93 = arith.constant 128 : index
    %53 = vector.load %arg6[%c128_92, %c128_93] : memref<144x512xbf16, #tpu.memory_space<vmem>>, vector<16x128xbf16>
    tpu.vector_store %arg6[%c128_92, %c128_93], %52 {strides = array<i32>} : memref<144x512xbf16, #tpu.memory_space<vmem>>, vector<16x128xbf16>,
    %c0_94 = arith.constant 0 : index
    %c2_95 = arith.constant 2 : index
    %c0_96 = arith.constant 0 : index
    %c0_97 = arith.constant 0 : index
    %54 = vector.load %arg2[%c0_94, %c2_95, %c0_96, %c0_97] : memref<1x4x16x256xbf16, #tpu.memory_space<vmem>>, vector<1x1x16x128xbf16>
    %55 = vector.shape_cast %54 : vector<1x1x16x128xbf16> to vector<16x128xbf16>
    %c0_98 = arith.constant 0 : index
    %c256 = arith.constant 256 : index
    %56 = vector.load %arg6[%c0_98, %c256] : memref<144x512xbf16, #tpu.memory_space<vmem>>, vector<16x128xbf16>
    tpu.vector_store %arg6[%c0_98, %c256], %55 {strides = array<i32>} : memref<144x512xbf16, #tpu.memory_space<vmem>>, vector<16x128xbf16>,
    %c0_99 = arith.constant 0 : index
    %c3_100 = arith.constant 3 : index
    %c0_101 = arith.constant 0 : index
    %c0_102 = arith.constant 0 : index
    %57 = vector.load %arg2[%c0_99, %c3_100, %c0_101, %c0_102] : memref<1x4x16x256xbf16, #tpu.memory_space<vmem>>, vector<1x1x16x128xbf16>
    %58 = vector.shape_cast %57 : vector<1x1x16x128xbf16> to vector<16x128xbf16>
    %c16_103 = arith.constant 16 : index
    %c256_104 = arith.constant 256 : index
    %59 = vector.load %arg6[%c16_103, %c256_104] : memref<144x512xbf16, #tpu.memory_space<vmem>>, vector<16x128xbf16>
    tpu.vector_store %arg6[%c16_103, %c256_104], %58 {strides = array<i32>} : memref<144x512xbf16, #tpu.memory_space<vmem>>, vector<16x128xbf16>,
    %c0_105 = arith.constant 0 : index
    %c2_106 = arith.constant 2 : index
    %c0_107 = arith.constant 0 : index
    %c1_108 = arith.constant 1 : index
    %60 = vector.load %arg2[%c0_105, %c2_106, %c0_107, %c1_108] : memref<1x4x16x256xbf16, #tpu.memory_space<vmem>>, vector<1x1x16x128xbf16>
    %61 = vector.shape_cast %60 : vector<1x1x16x128xbf16> to vector<16x128xbf16>
    %c32_109 = arith.constant 32 : index
    %c256_110 = arith.constant 256 : index
    %62 = vector.load %arg6[%c32_109, %c256_110] : memref<144x512xbf16, #tpu.memory_space<vmem>>, vector<16x128xbf16>
    tpu.vector_store %arg6[%c32_109, %c256_110], %61 {strides = array<i32>} : memref<144x512xbf16, #tpu.memory_space<vmem>>, vector<16x128xbf16>,
    %c0_111 = arith.constant 0 : index
    %c0_112 = arith.constant 0 : index
    %c0_113 = arith.constant 0 : index
    %c9_114 = arith.constant 9 : index
    %63 = vector.load %arg2[%c0_111, %c0_112, %c0_113, %c9_114] : memref<1x4x16x256xbf16, #tpu.memory_space<vmem>>, vector<1x1x16x128xbf16>
    %64 = vector.shape_cast %63 : vector<1x1x16x128xbf16> to vector<16x128xbf16>
    %c48_115 = arith.constant 48 : index
    %c256_116 = arith.constant 256 : index
    %65 = vector.load %arg6[%c48_115, %c256_116] : memref<144x512xbf16, #tpu.memory_space<vmem>>, vector<16x128xbf16>
    tpu.vector_store %arg6[%c48_115, %c256_116], %64 {strides = array<i32>} : memref<144x512xbf16, #tpu.memory_space<vmem>>, vector<16x128xbf16>,
    %c0_117 = arith.constant 0 : index
    %c1_118 = arith.constant 1 : index
    %c0_119 = arith.constant 0 : index
    %c9_120 = arith.constant 9 : index
    %66 = vector.load %arg2[%c0_117, %c1_118, %c0_119, %c9_120] : memref<1x4x16x256xbf16, #tpu.memory_space<vmem>>, vector<1x1x16x128xbf16>
    %67 = vector.shape_cast %66 : vector<1x1x16x128xbf16> to vector<16x128xbf16>
    %c64_121 = arith.constant 64 : index
    %c256_122 = arith.constant 256 : index
    %68 = vector.load %arg6[%c64_121, %c256_122] : memref<144x512xbf16, #tpu.memory_space<vmem>>, vector<16x128xbf16>
    tpu.vector_store %arg6[%c64_121, %c256_122], %67 {strides = array<i32>} : memref<144x512xbf16, #tpu.memory_space<vmem>>, vector<16x128xbf16>,
    %c0_123 = arith.constant 0 : index
    %c0_124 = arith.constant 0 : index
    %c0_125 = arith.constant 0 : index
    %c10_126 = arith.constant 10 : index
    %69 = vector.load %arg2[%c0_123, %c0_124, %c0_125, %c10_126] : memref<1x4x16x256xbf16, #tpu.memory_space<vmem>>, vector<1x1x16x128xbf16>
    %70 = vector.shape_cast %69 : vector<1x1x16x128xbf16> to vector<16x128xbf16>
    %c80_127 = arith.constant 80 : index
    %c256_128 = arith.constant 256 : index
    %71 = vector.load %arg6[%c80_127, %c256_128] : memref<144x512xbf16, #tpu.memory_space<vmem>>, vector<16x128xbf16>
    tpu.vector_store %arg6[%c80_127, %c256_128], %70 {strides = array<i32>} : memref<144x512xbf16, #tpu.memory_space<vmem>>, vector<16x128xbf16>,
    %c0_129 = arith.constant 0 : index
    %c2_130 = arith.constant 2 : index
    %c0_131 = arith.constant 0 : index
    %c9_132 = arith.constant 9 : index
    %72 = vector.load %arg2[%c0_129, %c2_130, %c0_131, %c9_132] : memref<1x4x16x256xbf16, #tpu.memory_space<vmem>>, vector<1x1x16x128xbf16>
    %73 = vector.shape_cast %72 : vector<1x1x16x128xbf16> to vector<16x128xbf16>
    %c96_133 = arith.constant 96 : index
    %c256_134 = arith.constant 256 : index
    %74 = vector.load %arg6[%c96_133, %c256_134] : memref<144x512xbf16, #tpu.memory_space<vmem>>, vector<16x128xbf16>
    tpu.vector_store %arg6[%c96_133, %c256_134], %73 {strides = array<i32>} : memref<144x512xbf16, #tpu.memory_space<vmem>>, vector<16x128xbf16>,
    %c0_135 = arith.constant 0 : index
    %c3_136 = arith.constant 3 : index
    %c0_137 = arith.constant 0 : index
    %c9_138 = arith.constant 9 : index
    %75 = vector.load %arg2[%c0_135, %c3_136, %c0_137, %c9_138] : memref<1x4x16x256xbf16, #tpu.memory_space<vmem>>, vector<1x1x16x128xbf16>
    %76 = vector.shape_cast %75 : vector<1x1x16x128xbf16> to vector<16x128xbf16>
    %c112_139 = arith.constant 112 : index
    %c256_140 = arith.constant 256 : index
    %77 = vector.load %arg6[%c112_139, %c256_140] : memref<144x512xbf16, #tpu.memory_space<vmem>>, vector<16x128xbf16>
    tpu.vector_store %arg6[%c112_139, %c256_140], %76 {strides = array<i32>} : memref<144x512xbf16, #tpu.memory_space<vmem>>, vector<16x128xbf16>,
    %c0_141 = arith.constant 0 : index
    %c2_142 = arith.constant 2 : index
    %c0_143 = arith.constant 0 : index
    %c10_144 = arith.constant 10 : index
    %78 = vector.load %arg2[%c0_141, %c2_142, %c0_143, %c10_144] : memref<1x4x16x256xbf16, #tpu.memory_space<vmem>>, vector<1x1x16x128xbf16>
    %79 = vector.shape_cast %78 : vector<1x1x16x128xbf16> to vector<16x128xbf16>
    %c128_145 = arith.constant 128 : index
    %c256_146 = arith.constant 256 : index
    %80 = vector.load %arg6[%c128_145, %c256_146] : memref<144x512xbf16, #tpu.memory_space<vmem>>, vector<16x128xbf16>
    tpu.vector_store %arg6[%c128_145, %c256_146], %79 {strides = array<i32>} : memref<144x512xbf16, #tpu.memory_space<vmem>>, vector<16x128xbf16>,
    %c0_147 = arith.constant 0 : index
    %c3_148 = arith.constant 3 : index
    %c0_149 = arith.constant 0 : index
    %c0_150 = arith.constant 0 : index
    %81 = vector.load %arg2[%c0_147, %c3_148, %c0_149, %c0_150] : memref<1x4x16x256xbf16, #tpu.memory_space<vmem>>, vector<1x1x16x128xbf16>
    %82 = vector.shape_cast %81 : vector<1x1x16x128xbf16> to vector<16x128xbf16>
    %c0_151 = arith.constant 0 : index
    %c384 = arith.constant 384 : index
    %83 = vector.load %arg6[%c0_151, %c384] : memref<144x512xbf16, #tpu.memory_space<vmem>>, vector<16x128xbf16>
    tpu.vector_store %arg6[%c0_151, %c384], %82 {strides = array<i32>} : memref<144x512xbf16, #tpu.memory_space<vmem>>, vector<16x128xbf16>,
    %c0_152 = arith.constant 0 : index
    %c2_153 = arith.constant 2 : index
    %c0_154 = arith.constant 0 : index
    %c1_155 = arith.constant 1 : index
    %84 = vector.load %arg2[%c0_152, %c2_153, %c0_154, %c1_155] : memref<1x4x16x256xbf16, #tpu.memory_space<vmem>>, vector<1x1x16x128xbf16>
    %85 = vector.shape_cast %84 : vector<1x1x16x128xbf16> to vector<16x128xbf16>
    %c16_156 = arith.constant 16 : index
    %c384_157 = arith.constant 384 : index
    %86 = vector.load %arg6[%c16_156, %c384_157] : memref<144x512xbf16, #tpu.memory_space<vmem>>, vector<16x128xbf16>
    tpu.vector_store %arg6[%c16_156, %c384_157], %85 {strides = array<i32>} : memref<144x512xbf16, #tpu.memory_space<vmem>>, vector<16x128xbf16>,
    %c0_158 = arith.constant 0 : index
    %c3_159 = arith.constant 3 : index
    %c0_160 = arith.constant 0 : index
    %c1_161 = arith.constant 1 : index
    %87 = vector.load %arg2[%c0_158, %c3_159, %c0_160, %c1_161] : memref<1x4x16x256xbf16, #tpu.memory_space<vmem>>, vector<1x1x16x128xbf16>
    %88 = vector.shape_cast %87 : vector<1x1x16x128xbf16> to vector<16x128xbf16>
    %c32_162 = arith.constant 32 : index
    %c384_163 = arith.constant 384 : index
    %89 = vector.load %arg6[%c32_162, %c384_163] : memref<144x512xbf16, #tpu.memory_space<vmem>>, vector<16x128xbf16>
    tpu.vector_store %arg6[%c32_162, %c384_163], %88 {strides = array<i32>} : memref<144x512xbf16, #tpu.memory_space<vmem>>, vector<16x128xbf16>,
    %c0_164 = arith.constant 0 : index
    %c1_165 = arith.constant 1 : index
    %c0_166 = arith.constant 0 : index
    %c9_167 = arith.constant 9 : index
    %90 = vector.load %arg2[%c0_164, %c1_165, %c0_166, %c9_167] : memref<1x4x16x256xbf16, #tpu.memory_space<vmem>>, vector<1x1x16x128xbf16>
    %91 = vector.shape_cast %90 : vector<1x1x16x128xbf16> to vector<16x128xbf16>
    %c48_168 = arith.constant 48 : index
    %c384_169 = arith.constant 384 : index
    %92 = vector.load %arg6[%c48_168, %c384_169] : memref<144x512xbf16, #tpu.memory_space<vmem>>, vector<16x128xbf16>
    tpu.vector_store %arg6[%c48_168, %c384_169], %91 {strides = array<i32>} : memref<144x512xbf16, #tpu.memory_space<vmem>>, vector<16x128xbf16>,
    %c0_170 = arith.constant 0 : index
    %c0_171 = arith.constant 0 : index
    %c0_172 = arith.constant 0 : index
    %c10_173 = arith.constant 10 : index
    %93 = vector.load %arg2[%c0_170, %c0_171, %c0_172, %c10_173] : memref<1x4x16x256xbf16, #tpu.memory_space<vmem>>, vector<1x1x16x128xbf16>
    %94 = vector.shape_cast %93 : vector<1x1x16x128xbf16> to vector<16x128xbf16>
    %c64_174 = arith.constant 64 : index
    %c384_175 = arith.constant 384 : index
    %95 = vector.load %arg6[%c64_174, %c384_175] : memref<144x512xbf16, #tpu.memory_space<vmem>>, vector<16x128xbf16>
    tpu.vector_store %arg6[%c64_174, %c384_175], %94 {strides = array<i32>} : memref<144x512xbf16, #tpu.memory_space<vmem>>, vector<16x128xbf16>,
    %c0_176 = arith.constant 0 : index
    %c1_177 = arith.constant 1 : index
    %c0_178 = arith.constant 0 : index
    %c10_179 = arith.constant 10 : index
    %96 = vector.load %arg2[%c0_176, %c1_177, %c0_178, %c10_179] : memref<1x4x16x256xbf16, #tpu.memory_space<vmem>>, vector<1x1x16x128xbf16>
    %97 = vector.shape_cast %96 : vector<1x1x16x128xbf16> to vector<16x128xbf16>
    %c80_180 = arith.constant 80 : index
    %c384_181 = arith.constant 384 : index
    %98 = vector.load %arg6[%c80_180, %c384_181] : memref<144x512xbf16, #tpu.memory_space<vmem>>, vector<16x128xbf16>
    tpu.vector_store %arg6[%c80_180, %c384_181], %97 {strides = array<i32>} : memref<144x512xbf16, #tpu.memory_space<vmem>>, vector<16x128xbf16>,
    %c0_182 = arith.constant 0 : index
    %c3_183 = arith.constant 3 : index
    %c0_184 = arith.constant 0 : index
    %c9_185 = arith.constant 9 : index
    %99 = vector.load %arg2[%c0_182, %c3_183, %c0_184, %c9_185] : memref<1x4x16x256xbf16, #tpu.memory_space<vmem>>, vector<1x1x16x128xbf16>
    %100 = vector.shape_cast %99 : vector<1x1x16x128xbf16> to vector<16x128xbf16>
    %c96_186 = arith.constant 96 : index
    %c384_187 = arith.constant 384 : index
    %101 = vector.load %arg6[%c96_186, %c384_187] : memref<144x512xbf16, #tpu.memory_space<vmem>>, vector<16x128xbf16>
    tpu.vector_store %arg6[%c96_186, %c384_187], %100 {strides = array<i32>} : memref<144x512xbf16, #tpu.memory_space<vmem>>, vector<16x128xbf16>,
    %c0_188 = arith.constant 0 : index
    %c2_189 = arith.constant 2 : index
    %c0_190 = arith.constant 0 : index
    %c10_191 = arith.constant 10 : index
    %102 = vector.load %arg2[%c0_188, %c2_189, %c0_190, %c10_191] : memref<1x4x16x256xbf16, #tpu.memory_space<vmem>>, vector<1x1x16x128xbf16>
    %103 = vector.shape_cast %102 : vector<1x1x16x128xbf16> to vector<16x128xbf16>
    %c112_192 = arith.constant 112 : index
    %c384_193 = arith.constant 384 : index
    %104 = vector.load %arg6[%c112_192, %c384_193] : memref<144x512xbf16, #tpu.memory_space<vmem>>, vector<16x128xbf16>
    tpu.vector_store %arg6[%c112_192, %c384_193], %103 {strides = array<i32>} : memref<144x512xbf16, #tpu.memory_space<vmem>>, vector<16x128xbf16>,
    %c0_194 = arith.constant 0 : index
    %c3_195 = arith.constant 3 : index
    %c0_196 = arith.constant 0 : index
    %c10_197 = arith.constant 10 : index
    %105 = vector.load %arg2[%c0_194, %c3_195, %c0_196, %c10_197] : memref<1x4x16x256xbf16, #tpu.memory_space<vmem>>, vector<1x1x16x128xbf16>
    %106 = vector.shape_cast %105 : vector<1x1x16x128xbf16> to vector<16x128xbf16>
    %c128_198 = arith.constant 128 : index
    %c384_199 = arith.constant 384 : index
    %107 = vector.load %arg6[%c128_198, %c384_199] : memref<144x512xbf16, #tpu.memory_space<vmem>>, vector<16x128xbf16>
    tpu.vector_store %arg6[%c128_198, %c384_199], %106 {strides = array<i32>} : memref<144x512xbf16, #tpu.memory_space<vmem>>, vector<16x128xbf16>,
    %c0_200 = arith.constant 0 : index
    %c0_201 = arith.constant 0 : index
    %108 = vector.load %arg3[%c0_200, %c0_201] : memref<32x144xbf16, #tpu.memory_space<vmem>>, vector<32x144xbf16>
    %c0_202 = arith.constant 0 : index
    %c0_203 = arith.constant 0 : index
    %109 = vector.load %arg6[%c0_202, %c0_203] : memref<144x512xbf16, #tpu.memory_space<vmem>>, vector<144x512xbf16>
    %cst = arith.constant dense<0.000000e+00> : vector<32x512xf32>
    %110 = tpu.matmul %108, %109, %cst {dimension_numbers = #tpu.dot_dimension_numbers<[1], [0], [0], [1], [0, 0, 1, 1], [], []>} : vector<32x144xbf16>, vector<144x512xbf16>, vector<32x512xf32> -> vector<32x512xf32>
    %111 = vector.extract_strided_slice %110 {offsets = [0, 0], sizes = [32, 128], strides = [1, 1]} : vector<32x512xf32> to vector<32x128xf32>
    %112 = vector.extract_strided_slice %110 {offsets = [0, 128], sizes = [32, 128], strides = [1, 1]} : vector<32x512xf32> to vector<32x128xf32>
    %113 = arith.maximumf %111, %112 : vector<32x128xf32>
    %114 = vector.extract_strided_slice %110 {offsets = [0, 256], sizes = [32, 128], strides = [1, 1]} : vector<32x512xf32> to vector<32x128xf32>
    %115 = vector.extract_strided_slice %110 {offsets = [0, 384], sizes = [32, 128], strides = [1, 1]} : vector<32x512xf32> to vector<32x128xf32>
    %116 = arith.maximumf %114, %115 : vector<32x128xf32>
    %117 = arith.maximumf %113, %116 : vector<32x128xf32>
    %c0_204 = arith.constant 0 : index
    %c0_205 = arith.constant 0 : index
    %118 = vector.load %arg4[%c0_204, %c0_205] : memref<32x1xf32, #tpu.memory_space<vmem>>, vector<32x1xf32>
    %119 = vector.broadcast %118 : vector<32x1xf32> to vector<32x128xf32>
    %120 = arith.addf %117, %119 : vector<32x128xf32>
    %cst_206 = arith.constant 0.000000e+00 : f32
    %121 = vector.broadcast %cst_206 : f32 to vector<32x128xf32>
    %122 = arith.maximumf %120, %121 : vector<32x128xf32>
    %123 = arith.truncf %122 : vector<32x128xf32> to vector<32x128xbf16>
    %c0_207 = arith.constant 0 : index
    %c0_208 = arith.constant 0 : index
    %c0_209 = arith.constant 0 : index
    %124 = vector.load %arg5[%c0_207, %c0_208, %c0_209] : memref<1x32x128xbf16, #tpu.memory_space<vmem>>, vector<1x32x128xbf16>
    %125 = vector.shape_cast %124 : vector<1x32x128xbf16> to vector<32x128xbf16>
    %126 = vector.shape_cast %123 : vector<32x128xbf16> to vector<1x32x128xbf16>
    tpu.vector_store %arg5[%c0_207, %c0_208, %c0_209], %126 {strides = array<i32>} : memref<1x32x128xbf16, #tpu.memory_space<vmem>>, vector<1x32x128xbf16>,
    return
  }
  func.func @transform_0(%arg0: i32, %arg1: i32) -> (i32, i32, i32, i32) {
    %c1_i32 = arith.constant 1 : i32
    %0 = arith.muli %arg0, %c1_i32 : i32
    %1 = arith.addi %0, %arg1 : i32
    %c0_i32 = arith.constant 0 : i32
    %c0_i32_0 = arith.constant 0 : i32
    %c0_i32_1 = arith.constant 0 : i32
    %c0_i32_2 = arith.constant 0 : i32
    return %1, %c0_i32, %c0_i32_0, %c0_i32_1 : i32, i32, i32, i32
  }
  func.func @transform_1(%arg0: i32, %arg1: i32) -> (i32, i32) {
    %c0_i32 = arith.constant 0 : i32
    %c0_i32_0 = arith.constant 0 : i32
    %c0_i32_1 = arith.constant 0 : i32
    return %c0_i32, %c0_i32_0 : i32, i32
  }
  func.func @transform_2(%arg0: i32, %arg1: i32) -> (i32, i32) {
    %c0_i32 = arith.constant 0 : i32
    %c0_i32_0 = arith.constant 0 : i32
    %c0_i32_1 = arith.constant 0 : i32
    return %c0_i32, %c0_i32_0 : i32, i32
  }
  func.func @transform_3(%arg0: i32, %arg1: i32) -> (i32, i32, i32) {
    %c0_i32 = arith.constant 0 : i32
    %c0_i32_0 = arith.constant 0 : i32
    return %arg0, %c0_i32, %arg1 : i32, i32, i32
  }
}

module attributes {stable_mosaic.version = 11 : i64} {
  func.func @mlp_kernel(%arg0: i32, %arg1: i32, %arg2: memref<2x2048xbf16, #tpu.memory_space<vmem>>, %arg3: memref<64x2048xbf16, #tpu.memory_space<vmem>>, %arg4: memref<1x1x64xf32, #tpu.memory_space<vmem>>, %arg5: memref<64x4xf32, #tpu.memory_space<vmem>>, %arg6: memref<1x2x4xf32, #tpu.memory_space<vmem>>, %arg7: memref<2x64xf32, #tpu.memory_space<vmem>>) attributes {dimension_semantics = [#tpu.dimension_semantics<parallel>, #tpu.dimension_semantics<arbitrary>], iteration_bounds = array<i64: 2, 1>, scalar_prefetch = 0 : i64, scratch_operands = 1 : i64, tpu.core_type = #tpu.core_type<tc>, window_params = [{transform_indices = @transform_0, window_bounds = array<i64: 2, 2048>}, {transform_indices = @transform_1, window_bounds = array<i64: 64, 2048>}, {transform_indices = @transform_2, window_bounds = array<i64: 1, 1, 64>}, {transform_indices = @transform_3, window_bounds = array<i64: 64, 4>}, {transform_indices = @transform_4, window_bounds = array<i64: 1, 2, 4>}]} {
    %c0_i32 = arith.constant 0 : i32
    %0 = arith.cmpi eq, %arg1, %c0_i32 : i32
    %1 = arith.extui %0 : i1 to i32
    %c0_i32_0 = arith.constant 0 : i32
    %2 = arith.cmpi ne, %1, %c0_i32_0 : i32
    scf.if %2 {
      %cst_10 = arith.constant 0.000000e+00 : f32
      %12 = vector.broadcast %cst_10 : f32 to vector<2x64xf32>
      %c0_11 = arith.constant 0 : index
      %c0_12 = arith.constant 0 : index
      %13 = vector.load %arg7[%c0_11, %c0_12] : memref<2x64xf32, #tpu.memory_space<vmem>>, vector<2x64xf32>
      tpu.vector_store %arg7[%c0_11, %c0_12], %12 {strides = array<i32>} : memref<2x64xf32, #tpu.memory_space<vmem>>, vector<2x64xf32>,
    } else {
    }
    %c0 = arith.constant 0 : index
    %c0_1 = arith.constant 0 : index
    %3 = vector.load %arg7[%c0, %c0_1] : memref<2x64xf32, #tpu.memory_space<vmem>>, vector<2x64xf32>
    %c0_2 = arith.constant 0 : index
    %c0_3 = arith.constant 0 : index
    %4 = vector.load %arg2[%c0_2, %c0_3] : memref<2x2048xbf16, #tpu.memory_space<vmem>>, vector<2x2048xbf16>
    %c0_4 = arith.constant 0 : index
    %c0_5 = arith.constant 0 : index
    %5 = vector.load %arg3[%c0_4, %c0_5] : memref<64x2048xbf16, #tpu.memory_space<vmem>>, vector<64x2048xbf16>
    %cst = arith.constant dense<0.000000e+00> : vector<2x64xf32>
    %6 = tpu.matmul %4, %5, %cst {dimension_numbers = #tpu.dot_dimension_numbers<[1], [1], [0], [0], [0, 0, 1, 0], [], []>} : vector<2x2048xbf16>, vector<64x2048xbf16>, vector<2x64xf32> -> vector<2x64xf32>
    %7 = arith.addf %3, %6 : vector<2x64xf32>
    %c0_6 = arith.constant 0 : index
    %c0_7 = arith.constant 0 : index
    %8 = vector.load %arg7[%c0_6, %c0_7] : memref<2x64xf32, #tpu.memory_space<vmem>>, vector<2x64xf32>
    tpu.vector_store %arg7[%c0_6, %c0_7], %7 {strides = array<i32>} : memref<2x64xf32, #tpu.memory_space<vmem>>, vector<2x64xf32>,
    %c0_i32_8 = arith.constant 0 : i32
    %9 = arith.cmpi eq, %arg1, %c0_i32_8 : i32
    %10 = arith.extui %9 : i1 to i32
    %c0_i32_9 = arith.constant 0 : i32
    %11 = arith.cmpi ne, %10, %c0_i32_9 : i32
    scf.if %11 {
      %c0_10 = arith.constant 0 : index
      %c0_11 = arith.constant 0 : index
      %12 = vector.load %arg7[%c0_10, %c0_11] : memref<2x64xf32, #tpu.memory_space<vmem>>, vector<2x64xf32>
      %c0_12 = arith.constant 0 : index
      %c0_13 = arith.constant 0 : index
      %c0_14 = arith.constant 0 : index
      %13 = vector.load %arg4[%c0_12, %c0_13, %c0_14] : memref<1x1x64xf32, #tpu.memory_space<vmem>>, vector<1x1x64xf32>
      %14 = vector.shape_cast %13 : vector<1x1x64xf32> to vector<1x64xf32>
      %15 = vector.broadcast %14 : vector<1x64xf32> to vector<2x64xf32>
      %16 = arith.addf %12, %15 : vector<2x64xf32>
      %cst_15 = arith.constant 0.000000e+00 : f32
      %17 = vector.broadcast %cst_15 : f32 to vector<2x64xf32>
      %18 = arith.maximumf %16, %17 : vector<2x64xf32>
      %c0_16 = arith.constant 0 : index
      %c0_17 = arith.constant 0 : index
      %19 = vector.load %arg5[%c0_16, %c0_17] : memref<64x4xf32, #tpu.memory_space<vmem>>, vector<64x4xf32>
      %cst_18 = arith.constant dense<0.000000e+00> : vector<2x4xf32>
      %20 = tpu.matmul %18, %19, %cst_18 {dimension_numbers = #tpu.dot_dimension_numbers<[1], [0], [0], [1], [0, 0, 1, 1], [], []>} : vector<2x64xf32>, vector<64x4xf32>, vector<2x4xf32> -> vector<2x4xf32>
      %c0_19 = arith.constant 0 : index
      %c0_20 = arith.constant 0 : index
      %c0_21 = arith.constant 0 : index
      %21 = vector.load %arg6[%c0_19, %c0_20, %c0_21] : memref<1x2x4xf32, #tpu.memory_space<vmem>>, vector<1x2x4xf32>
      %22 = vector.shape_cast %21 : vector<1x2x4xf32> to vector<2x4xf32>
      %23 = vector.shape_cast %20 : vector<2x4xf32> to vector<1x2x4xf32>
      tpu.vector_store %arg6[%c0_19, %c0_20, %c0_21], %23 {strides = array<i32>} : memref<1x2x4xf32, #tpu.memory_space<vmem>>, vector<1x2x4xf32>,
    } else {
    }
    return
  }
  func.func @transform_0(%arg0: i32, %arg1: i32) -> (i32, i32) {
    %c0_i32 = arith.constant 0 : i32
    %c0_i32_0 = arith.constant 0 : i32
    return %c0_i32, %arg1 : i32, i32
  }
  func.func @transform_1(%arg0: i32, %arg1: i32) -> (i32, i32) {
    %c0_i32 = arith.constant 0 : i32
    return %arg0, %arg1 : i32, i32
  }
  func.func @transform_2(%arg0: i32, %arg1: i32) -> (i32, i32, i32) {
    %c0_i32 = arith.constant 0 : i32
    %c0_i32_0 = arith.constant 0 : i32
    %c0_i32_1 = arith.constant 0 : i32
    return %arg0, %c0_i32, %c0_i32_0 : i32, i32, i32
  }
  func.func @transform_3(%arg0: i32, %arg1: i32) -> (i32, i32) {
    %c0_i32 = arith.constant 0 : i32
    %c0_i32_0 = arith.constant 0 : i32
    return %arg0, %c0_i32 : i32, i32
  }
  func.func @transform_4(%arg0: i32, %arg1: i32) -> (i32, i32, i32) {
    %c0_i32 = arith.constant 0 : i32
    %c0_i32_0 = arith.constant 0 : i32
    %c0_i32_1 = arith.constant 0 : i32
    return %arg0, %c0_i32, %c0_i32_0 : i32, i32, i32
  }
}

</mosaic_0001>

<bundles_post_ra>
// kernel: brain_tumor_net.4
= control target key start
LH: loop header
LB: loop body
LE: loop exit
PB: predicated region body
PF: predicated region fallthrough
CT: control target
= control target key end

     0   :  { %s1319_s12 = smov 0   ;;  %s1321_s13 = smov 0   ;;  %s1522_s0 = inlined_call_operand.vmem [shape: bf16[2,4,16,256], index: 0, kind: input, shape index: {}]   ;;  %s1523_s1 = inlined_call_operand.vmem [shape: bf16[32,144], index: 1, kind: input, shape index: {}]   ;;  %s1524_s2 = inlined_call_operand.vmem [shape: f32[32,1], index: 2, kind: input, shape index: {}]   ;;  %s1525_s3 = inlined_call_operand.vmem [shape: bf16[2,32,128], index: 3, kind: output, shape index: {}]  }
   0x1   :  { %s1323_s14 = smov 0  }
   0x2 LB: > { %s25_s15 = sadd.s32 1, %s1289_s13  ;;  %p1061_p0 = scmp.ge.s32.totalorder %s1293_s14, 1  ;;  %s1293_s14 = sphi %s1323_s14, %s13_s14   ;;  %s1289_s13 = sphi %s1321_s13, %s1527_s13   ;;  %s1285_s12 = sphi %s1319_s12, %s1526_s12  }
   0x3   : > { %p27_p1 = scmp.ge.s32.totalorder %s25_s15, 2  ;;  %p155_p2 = scmp.lt.s32.totalorder %s1293_s14, 3 }
   0x5   : > { %s1529_s15 = smov (%p27_p1, %s25_s15), 0  ;;  %p156_p3 = pnand %p1061_p0, %p155_p2 }
   0x6   : > { %p184_p4 = scmp.lt.s32.totalorder (!%p156_p3), %s1285_s12, 1  ;;  %s1295_s20 = smov (!%p156_p3), 127   ;;  %v1267_v12 = vld [vmem:[%s1523_s1 + $0x4] ss:$8 sps:$4 sm:$0xff] (!%p156_p3)   ;;  %vm803_vm0 = vcmask (!%p156_p3), 130048   ;;  %v1298_v14 = vmov (!%p156_p3), 0  }
   0x7   : > { %159 = sbr.rel (%p156_p3) target bundleno = 476 (0x1dc), region = 32  ;;  %s1296_s21 = smov (!%p156_p3), 119   ;;  %1187 = vmatprep.mubr.msk.bf16.mxu0 (!%p156_p3), %vm803_vm0, %v1267_v12  ;;  %1189 = vmatprep.mubr.msk.bf16.mxu1 (!%p156_p3), %vm803_vm0, %v1267_v12  ;;  %v929_v13 = vld [vmem:[%s1524_s2 + $0x8] sm:$0xff] (!%p156_p3)  ;;  %v928_v15 = vld [vmem:[%s1524_s2] sm:$0xff] (!%p156_p3)  ;;  %v930_v16 = vld [vmem:[%s1524_s2 + $0x10] sm:$0xff] (!%p156_p3)  ;;  %vm232_vm1 = vcmask (!%p156_p3), 1039360  }
   0x8   : > { %s1297_s22 = smov (!%p156_p3), 118   ;;  %1243 = vset.pattern.permute.xlu1 (!%p156_p3), %v1298_v14  ;;  %1242 = vset.pattern.permute.xlu0 (!%p156_p3), %v1298_v14  ;;  %v931_v17 = vld [vmem:[%s1524_s2 + $0x18] sm:$0xff] (!%p156_p3)  ;;  %vm287_vm2 = vcmask (!%p156_p3), 973824   ;;  %vm322_vm3 = vcmask (!%p156_p3), 965632  }
   0xe   : > { %s1531_s12 = smov (!%p184_p4, %s1285_s12), 1 }
   0xf   : > { %s1197_s16 = sshll.u32 %s1531_s12, 6 }
  0x10   : > { %s1343_s19 = scalar_lea.vmem %s1522_s0, %s1197_s16  ;;  %s1198_s16 = sshll.u32 %s1531_s12, 4 }
  0x11   : > { %v1346_v0 = vld [vmem:[%s1343_s19 + $0x20] ss:$8 sps:$4 sm:$0xff]   ;;  %v1349_v1 = vld [vmem:[%s1343_s19 + $0x24] ss:$8 sps:$4 sm:$0xff]   ;;  %v1250_v4 = vld [vmem:[%s1343_s19 + $0x14] ss:$8 sps:$4 sm:$0xff]  }
  0x12   : > { %619 = vrot.lane.b32.xlu1 %v1346_v0, %s1295_s20  ;;  %v1354_v2 = vld [vmem:[%s1343_s19] ss:$8 sps:$4 sm:$0xff]   ;;  %v1357_v3 = vld [vmem:[%s1343_s19 + $0x4] ss:$8 sps:$4 sm:$0xff]   ;;  %v1252_v5 = vld [vmem:[%s1343_s19 + $0x10] ss:$8 sps:$4 sm:$0xff]  }
  0x13   : > { %345 = vrot.lane.b32.xlu0 %v1354_v2, %s1295_s20  ;;  %v1256_v6 = vld [vmem:[%s1343_s19 + $0x30] ss:$8 sps:$4 sm:$0xff]   ;;  %v1258_v8 = vld [vmem:[%s1343_s19] ss:$8 sps:$4 sm:$0xff]   ;;  %v1253_v10 = vld [vmem:[%s1343_s19 + $0x34] ss:$8 sps:$4 sm:$0xff]  }
  0x14   : > { %v1257_v7 = vld [vmem:[%s1343_s19 + $0x10] ss:$8 sps:$4 sm:$0xff]   ;;  %863 = vmatprep.subr.bf16.mxu1 %v1256_v6  ;;  %v1259_v9 = vld [vmem:[%s1343_s19 + $0x20] ss:$8 sps:$4 sm:$0xff]  }
  0x15   : > { %810 = vmatprep.subr.bf16.mxu0 %v1257_v7  ;;  %v1255_v11 = vld [vmem:[%s1343_s19 + $0x30] ss:$8 sps:$4 sm:$0xff]   ;;  %864 = vmatpush1.bf16.msra.mxu1 %v1259_v9  ;;  %v1263_v37 = vld [vmem:[%s1343_s19 + $0x20] ss:$8 sps:$4 sm:$0xff]  }
  0x16   : > { %621 = vrot.lane.b32.xlu1 %v1349_v1, %s1295_s20  ;;  %811 = vmatpush1.bf16.msra.mxu0 %v1258_v8  ;;  %v1261_v20 = vld [vmem:[%s1343_s19 + $0x30] ss:$8 sps:$4 sm:$0xff]  }
  0x17   : > { %347 = vrot.lane.b32.xlu0 %v1357_v3, %s1295_s20  ;;  %v1260_v23 = vld [vmem:[%s1343_s19 + $0x10] ss:$8 sps:$4 sm:$0xff]  }
  0x18   : > { %v1262_v33 = vld [vmem:[%s1343_s19 + $0x30] ss:$8 sps:$4 sm:$0xff]  }
  0x19   : > { %v1264_v47 = vld [vmem:[%s1343_s19 + $0x30] ss:$8 sps:$4 sm:$0xff]   ;;  %s197_s19 = scalar_lea.vmem %s1525_s3, %s1198_s16 }
  0x1a   : > { %364 = vrot.lane.b32.xlu1 %v1250_v4, %s1295_s20 }
  0x1b   : > { %362 = vrot.lane.b32.xlu0 %v1252_v5, %s1295_s20 }
  0x1e   : > { %638 = vrot.lane.b32.xlu1 %v1253_v10, %s1295_s20 }
  0x1f   : > { %636 = vrot.lane.b32.xlu0 %v1255_v11, %s1295_s20 }
  0x22   : > { %230 = vrot.lane.b32.xlu1 %v1357_v3, %s1295_s20 }
  0x23   : > { %228 = vrot.lane.b32.xlu0 %v1354_v2, %s1295_s20 }
  0x26   : > { %493 = vrot.lane.b32.xlu1 %v1349_v1, %s1295_s20 }
  0x27   : > { %491 = vrot.lane.b32.xlu0 %v1346_v0, %s1295_s20 }
  0x2a   : > { %655 = vrot.lane.b32.xlu1 %v1250_v4, %s1296_s21 }
  0x2b   : > { %653 = vrot.lane.b32.xlu0 %v1252_v5, %s1296_s21 }
  0x2e   : > { %510 = vrot.lane.b32.xlu1 %v1357_v3, %s1296_s21 }
  0x2f   : > { %508 = vrot.lane.b32.xlu0 %v1354_v2, %s1296_s21 }
  0x32   : > { %390 = vrot.lane.b32.xlu1 %v1349_v1, %s1295_s20 }
  0x33   : > { %388 = vrot.lane.b32.xlu0 %v1346_v0, %s1295_s20 }
  0x36   : > { %672 = vrot.lane.b32.xlu1 %v1357_v3, %s1297_s22 }
  0x37   : > { %670 = vrot.lane.b32.xlu0 %v1354_v2, %s1297_s22 }
  0x3a   : > { %527 = vrot.lane.b32.xlu1 %v1250_v4, %s1296_s21 }
  0x3b   : > { %525 = vrot.lane.b32.xlu0 %v1252_v5, %s1296_s21 }
  0x3e   : > { %407 = vrot.lane.b32.xlu1 %v1253_v10, %s1295_s20 }
  0x3f   : > { %405 = vrot.lane.b32.xlu0 %v1255_v11, %s1295_s20 }
  0x42   : > { %689 = vrot.lane.b32.xlu1 %v1250_v4, %s1297_s22 }
  0x43   : > { %687 = vrot.lane.b32.xlu0 %v1252_v5, %s1297_s22 }
  0x46   : > { %268 = vrot.lane.b32.xlu1 %v1349_v1, %s1295_s20 }
  0x47   : > { %266 = vrot.lane.b32.xlu0 %v1346_v0, %s1295_s20 }
  0x4a   : > { %544 = vrot.lane.b32.xlu1 %v1357_v3, %s1297_s22 }
  0x4b   : > { %542 = vrot.lane.b32.xlu0 %v1354_v2, %s1297_s22 }
  0x4e   : > { %424 = vrot.lane.b32.xlu1 %v1250_v4, %s1296_s21 }
  0x4f   : > { %422 = vrot.lane.b32.xlu0 %v1252_v5, %s1296_s21 }
  0x52   : > { %706 = vrot.lane.b32.xlu1 %v1253_v10, %s1296_s21 }
  0x53   : > { %704 = vrot.lane.b32.xlu0 %v1255_v11, %s1296_s21 }
  0x56   : > { %285 = vrot.lane.b32.xlu1 %v1357_v3, %s1296_s21 }
  0x57   : > { %283 = vrot.lane.b32.xlu0 %v1354_v2, %s1296_s21 }
  0x5a   : > { %561 = vrot.lane.b32.xlu1 %v1349_v1, %s1296_s21 }
  0x5b   : > { %559 = vrot.lane.b32.xlu0 %v1346_v0, %s1296_s21 }
  0x5e   : > { %441 = vrot.lane.b32.xlu1 %v1357_v3, %s1297_s22 }
  0x5f   : > { %439 = vrot.lane.b32.xlu0 %v1354_v2, %s1297_s22 }
  0x62   : > { %723 = vrot.lane.b32.xlu1 %v1349_v1, %s1297_s22 }
  0x63   : > { %721 = vrot.lane.b32.xlu0 %v1346_v0, %s1297_s22 }
  0x66   : > { %303 = vrot.lane.b32.xlu1 %v1250_v4, %s1296_s21 }
  0x67   : > { %301 = vrot.lane.b32.xlu0 %v1252_v5, %s1296_s21 }
  0x6a   : > { %578 = vrot.lane.b32.xlu1 %v1253_v10, %s1296_s21 }
  0x6b   : > { %576 = vrot.lane.b32.xlu0 %v1255_v11, %s1296_s21 }
  0x6e   : > { %458 = vrot.lane.b32.xlu1 %v1250_v4, %s1297_s22 }
  0x6f   : > { %456 = vrot.lane.b32.xlu0 %v1252_v5, %s1297_s22 }
  0x72   : > { %740 = vrot.lane.b32.xlu1 %v1253_v10, %s1297_s22 }
  0x73   : > { %738 = vrot.lane.b32.xlu0 %v1255_v11, %s1297_s22 }
  0x76   : > { %320 = vrot.lane.b32.xlu1 %v1357_v3, %s1297_s22 }
  0x77   : > { %318 = vrot.lane.b32.xlu0 %v1354_v2, %s1297_s22 }
  0x7a   : > { %595 = vrot.lane.b32.xlu1 %v1349_v1, %s1297_s22 }
  0x7b   : > { %593 = vrot.lane.b32.xlu0 %v1346_v0, %s1297_s22 }
  0x7e   : > { %939 = vperm.xlu1 %1243, %v929_v13  }
  0x7f   : > { %934 = vperm.xlu0 %1242, %v928_v15  }
  0x82   : > { %944 = vperm.xlu1 %1243, %v930_v16  }
  0x83   : > { %949 = vperm.xlu0 %1242, %v931_v17  }
  0x84   : > { %v620_v18 = vpop.permute.xlu1 %619 }
  0x85   : > { %v346_v19 = vpop.permute.xlu0 %345 }
  0x88   : > { %v622_v21 = vpop.permute.xlu1 %621 }
  0x89   : > { %v623_v22 = vsel %vm232_vm1, %v620_v18, %v622_v21  ;;  %v348_v24 = vpop.permute.xlu0 %347 }
  0x8a   : > { %865 = vmatprep.subr.bf16.mxu1 %v623_v22  ;;  %v349_v25 = vsel %vm232_vm1, %v346_v19, %v348_v24 }
  0x8b   : > { %866 = vmatpush1.bf16.msra.mxu1 %v1261_v20  ;;  %812 = vmatprep.subr.bf16.mxu0 %v349_v25 }
  0x8c   : > { %v365_v26 = vpop.permute.xlu1 %364  ;;  %813 = vmatpush1.bf16.msra.mxu0 %v1260_v23 }
  0x8d   : > { %v363_v27 = vpop.permute.xlu0 %362 }
  0x8e   : > { %v366_v28 = vsel %vm232_vm1, %v363_v27, %v365_v26 }
  0x8f   : > { %814 = vmatprep.subr.bf16.mxu0 %v366_v28 }
  0x90   : > { %v639_v29 = vpop.permute.xlu1 %638 }
  0x91   : > { %v637_v30 = vpop.permute.xlu0 %636 }
  0x92   : > { %v640_v31 = vsel %vm232_vm1, %v637_v30, %v639_v29 }
  0x93   : > { %867 = vmatprep.subr.bf16.mxu1 %v640_v31 }
  0x94   : > { %v231_v32 = vpop.permute.xlu1 %230 }
  0x95   : > { %v229_v34 = vpop.permute.xlu0 %228 }
  0x96   : > { %v233_v35 = vsel %vm232_vm1, %v229_v34, %v231_v32 }
  0x97   : > { %815 = vmatpush1.bf16.msra.mxu0 %v233_v35 }
  0x98   : > { %v494_v36 = vpop.permute.xlu1 %493  ;;  %816 = vmatprep.subr.bf16.mxu0 %v1262_v33 }
  0x99   : > { %v492_v38 = vpop.permute.xlu0 %491 }
  0x9a   : > { %v495_v39 = vsel %vm232_vm1, %v492_v38, %v494_v36 }
  0x9b   : > { %868 = vmatpush1.bf16.msra.mxu1 %v495_v39  ;;  %817 = vmatpush1.bf16.msra.mxu0 %v1263_v37  ;;  %v1265_v37 = vld [vmem:[%s1523_s1] ss:$8 sps:$4 sm:$0xff]   ;;  %v1268_v39 = vld [vmem:[%s1523_s1 + $0x14] ss:$8 sps:$4 sm:$0xff]  }
  0x9c   : > { %v656_v40 = vpop.permute.xlu1 %655 }
  0x9d   : > { %v654_v41 = vpop.permute.xlu0 %653 }
  0x9e   : > { %v657_v42 = vsel %vm287_vm2, %v654_v41, %v656_v40 }
  0x9f   : > { %869 = vmatprep.subr.bf16.mxu1 %v657_v42  ;;  %v1270_v42 = vld [vmem:[%s1523_s1 + $0x10] ss:$8 sps:$4 sm:$0xff]  }
  0xa0   : > { %v511_v43 = vpop.permute.xlu1 %510 }
  0xa1   : > { %v509_v44 = vpop.permute.xlu0 %508 }
  0xa2   : > { %v512_v45 = vsel %vm287_vm2, %v509_v44, %v511_v43 }
  0xa3   : > { %870 = vmatpush1.bf16.msra.mxu1 %v512_v45 }
  0xa4   : > { %v391_v46 = vpop.permute.xlu1 %390 }
  0xa5   : > { %v389_v48 = vpop.permute.xlu0 %388 }
  0xa6   : > { %v392_v49 = vsel %vm232_vm1, %v389_v48, %v391_v46 }
  0xa7   : > { %818 = vmatprep.subr.bf16.mxu0 %v392_v49 }
  0xa8   : > { %v673_v50 = vpop.permute.xlu1 %672  ;;  %819 = vmatpush1.bf16.msra.mxu0 %v1264_v47 }
  0xa9   : > { %v671_v51 = vpop.permute.xlu0 %670 }
  0xaa   : > { %v674_v52 = vsel %vm322_vm3, %v671_v51, %v673_v50 }
  0xab   : > { %871 = vmatprep.subr.bf16.mxu1 %v674_v52 }
  0xac   : > { %v528_v53 = vpop.permute.xlu1 %527 }
  0xad   : > { %v526_v54 = vpop.permute.xlu0 %525 }
  0xae   : > { %v529_v55 = vsel %vm287_vm2, %v526_v54, %v528_v53 }
  0xaf   : > { %872 = vmatpush1.bf16.msra.mxu1 %v529_v55 }
  0xb0   : > { %v408_v56 = vpop.permute.xlu1 %407 }
  0xb1   : > { %v406_v57 = vpop.permute.xlu0 %405 }
  0xb2   : > { %v409_v58 = vsel %vm232_vm1, %v406_v57, %v408_v56 }
  0xb3   : > { %820 = vmatprep.subr.bf16.mxu0 %v409_v58 }
  0xb4   : > { %v690_v59 = vpop.permute.xlu1 %689 }
  0xb5   : > { %v688_v60 = vpop.permute.xlu0 %687 }
  0xb6   : > { %v691_v61 = vsel %vm322_vm3, %v688_v60, %v690_v59 }
  0xb7   : > { %873 = vmatprep.subr.bf16.mxu1 %v691_v61 }
  0xb8   : > { %v269_v62 = vpop.permute.xlu1 %268 }
  0xb9   : > { %v267_v63 = vpop.permute.xlu0 %266 }
  0xba   : > { %v270_v0 = vsel %vm232_vm1, %v267_v63, %v269_v62 }
  0xbb   : > { %821 = vmatpush1.bf16.msra.mxu0 %v270_v0 }
  0xbc   : > { %v545_v1 = vpop.permute.xlu1 %544 }
  0xbd   : > { %v543_v2 = vpop.permute.xlu0 %542 }
  0xbe   : > { %v546_v3 = vsel %vm322_vm3, %v543_v2, %v545_v1 }
  0xbf   : > { %874 = vmatpush1.bf16.msra.mxu1 %v546_v3 }
  0xc0   : > { %v425_v4 = vpop.permute.xlu1 %424 }
  0xc1   : > { %v423_v5 = vpop.permute.xlu0 %422 }
  0xc2   : > { %v426_v6 = vsel %vm287_vm2, %v423_v5, %v425_v4 }
  0xc3   : > { %822 = vmatprep.subr.bf16.mxu0 %v426_v6 }
  0xc4   : > { %v707_v7 = vpop.permute.xlu1 %706 }
  0xc5   : > { %v705_v8 = vpop.permute.xlu0 %704 }
  0xc6   : > { %v708_v9 = vsel %vm287_vm2, %v705_v8, %v707_v7 }
  0xc7   : > { %875 = vmatprep.subr.bf16.mxu1 %v708_v9 }
  0xc8   : > { %v286_v10 = vpop.permute.xlu1 %285 }
  0xc9   : > { %v284_v11 = vpop.permute.xlu0 %283 }
  0xca   : > { %v288_v12 = vsel %vm287_vm2, %v284_v11, %v286_v10 }
  0xcb   : > { %823 = vmatpush1.bf16.msra.mxu0 %v288_v12 }
  0xcc   : > { %v562_v13 = vpop.permute.xlu1 %561 }
  0xcd   : > { %v560_v14 = vpop.permute.xlu0 %559 }
  0xce   : > { %v563_v15 = vsel %vm287_vm2, %v560_v14, %v562_v13 }
  0xcf   : > { %876 = vmatpush1.bf16.msra.mxu1 %v563_v15 }
  0xd0   : > { %v442_v16 = vpop.permute.xlu1 %441 }
  0xd1   : > { %v440_v17 = vpop.permute.xlu0 %439 }
  0xd2   : > { %v443_v18 = vsel %vm322_vm3, %v440_v17, %v442_v16 }
  0xd3   : > { %824 = vmatprep.subr.bf16.mxu0 %v443_v18 }
  0xd4   : > { %v724_v19 = vpop.permute.xlu1 %723 }
  0xd5   : > { %v722_v20 = vpop.permute.xlu0 %721 }
  0xd6   : > { %v725_v21 = vsel %vm322_vm3, %v722_v20, %v724_v19 }
  0xd7   : > { %877 = vmatprep.subr.bf16.mxu1 %v725_v21 }
  0xd8   : > { %v304_v22 = vpop.permute.xlu1 %303 }
  0xd9   : > { %v302_v23 = vpop.permute.xlu0 %301 }
  0xda   : > { %v305_v24 = vsel %vm287_vm2, %v302_v23, %v304_v22 }
  0xdb   : > { %825 = vmatpush1.bf16.msra.mxu0 %v305_v24 }
  0xdc   : > { %v579_v25 = vpop.permute.xlu1 %578 }
  0xdd   : > { %v577_v26 = vpop.permute.xlu0 %576 }
  0xde   : > { %v580_v27 = vsel %vm287_vm2, %v577_v26, %v579_v25 }
  0xdf   : > { %878 = vmatpush1.bf16.msra.mxu1 %v580_v27 }
  0xe0   : > { %v459_v28 = vpop.permute.xlu1 %458 }
  0xe1   : > { %v457_v29 = vpop.permute.xlu0 %456 }
  0xe2   : > { %v460_v30 = vsel %vm322_vm3, %v457_v29, %v459_v28 }
  0xe3   : > { %826 = vmatprep.subr.bf16.mxu0 %v460_v30 }
  0xe4   : > { %v741_v31 = vpop.permute.xlu1 %740 }
  0xe5   : > { %v739_v32 = vpop.permute.xlu0 %738 }
  0xe6   : > { %v742_v33 = vsel %vm322_vm3, %v739_v32, %v741_v31 }
  0xe7   : > { %879 = vmatprep.subr.bf16.mxu1 %v742_v33 }
  0xe8   : > { %v321_v34 = vpop.permute.xlu1 %320 }
  0xe9   : > { %v319_v35 = vpop.permute.xlu0 %318 }
  0xea   : > { %v323_v36 = vsel %vm322_vm3, %v319_v35, %v321_v34 }
  0xeb   : > { %827 = vmatpush1.bf16.msra.mxu0 %v323_v36 }
  0xec   : > { %v596_v38 = vpop.permute.xlu1 %595 }
  0xed   : > { %v594_v40 = vpop.permute.xlu0 %593 }
  0xee   : > { %843 = vmatmul.mubr.bf16.vlgmr.msra.gmra.mrb[0].mxu0 %v1265_v37  ;;  %v597_v41 = vsel %vm322_vm3, %v594_v40, %v596_v38 }
  0xef   : > { %880 = vmatpush1.bf16.msra.mxu1 %v597_v41  ;;  %1188 = vmatprep.mubr.msk.bf16.mxu0 %vm803_vm0, %v1268_v39 }
  0xf2   : > { %896 = vmatmul.mubr.bf16.vlgmr.msra.gmra.mrb[0].mxu1 %v1265_v37 }
  0xf3   : > { %1190 = vmatprep.mubr.msk.bf16.mxu1 %vm803_vm0, %v1268_v39 }
  0xf6   : > { %853 = vmatmul.mubr.bf16.gmra.mrb[4].mxu0 %v1270_v42 }
  0xfa   : > { %906 = vmatmul.mubr.bf16.gmra.mrb[4].mxu1 %v1270_v42 }
  0xfd   : > { %v940_v59 = vpop.permute.xlu1 %939 }
  0xfe   : > { %v935_v54 = vpop.permute.xlu0 %934 }
 0x101   : > { %v945_v13 = vpop.permute.xlu1 %944 }
 0x102   : > { %v950_v16 = vpop.permute.xlu0 %949 }
 0x1c1   : > { %v844_v43 = vpop.f32.mrb[0].mxu0 }
 0x1c2   : > { %v846_v44 = vpop.f32.mrb[1].mxu0 }
 0x1c3   : > { %v916_v45 = vmax.f32 %v844_v43, %v846_v44  ;;  %v848_v46 = vpop.f32.mrb[2].mxu0 }
 0x1c4   : > { %v850_v47 = vpop.f32.mrb[3].mxu0 }
 0x1c5   : > { %v917_v48 = vmax.f32 %v848_v46, %v850_v47  ;;  %v897_v49 = vpop.f32.mrb[0].mxu1 }
 0x1c6   : > { %v899_v50 = vpop.f32.mrb[1].mxu1 }
 0x1c7   : > { %v920_v51 = vmax.f32 %v897_v49, %v899_v50  ;;  %v901_v52 = vpop.f32.mrb[2].mxu1 }
 0x1c8   : > { %v903_v53 = vpop.f32.mrb[3].mxu1 }
 0x1c9   : > { %v921_v55 = vmax.f32 %v901_v52, %v903_v53  ;;  %v924_v56 = vmax.f32 %v916_v45, %v920_v51  ;;  %v854_v57 = vpop.f32.mrb[4].mxu0 }
 0x1ca   : > { %v856_v58 = vpop.f32.mrb[5].mxu0 }
 0x1cb   : > { %v952_v60 = vadd.f32 %v935_v54, %v924_v56  ;;  %v918_v61 = vmax.f32 %v854_v57, %v856_v58  ;;  %v925_v62 = vmax.f32 %v917_v48, %v921_v55  ;;  %v858_v63 = vpop.f32.mrb[6].mxu0 }
 0x1cc   : > { %v860_v0 = vpop.f32.mrb[7].mxu0 }
 0x1cd   : > { %v953_v1 = vadd.f32 %v940_v59, %v925_v62  ;;  %v919_v2 = vmax.f32 %v858_v63, %v860_v0  ;;  %v907_v3 = vpop.f32.mrb[4].mxu1  ;;  %v956_v5 = vmax.f32 %v952_v60, 0.0 }
 0x1ce   : > { %v909_v4 = vpop.f32.mrb[5].mxu1 }
 0x1cf   : > { %v957_v6 = vmax.f32 %v953_v1, 0.0  ;;  %v922_v7 = vmax.f32 %v907_v3, %v909_v4  ;;  %v911_v8 = vpop.f32.mrb[6].mxu1 }
 0x1d0   : > { %v913_v9 = vpop.f32.mrb[7].mxu1 }
 0x1d1   : > { %v1206_v10 = vpack.c.bf16 %v957_v6, %v956_v5  ;;  %v926_v11 = vmax.f32 %v918_v61, %v922_v7  ;;  %v923_v12 = vmax.f32 %v911_v8, %v913_v9 }
 0x1d3   : > { %1207 = vst [vmem:[%s197_s19] sm:$0xff] %v1206_v10   ;;  %v954_v14 = vadd.f32 %v945_v13, %v926_v11  ;;  %v927_v15 = vmax.f32 %v919_v2, %v923_v12 }
 0x1d5   : > { %v955_v17 = vadd.f32 %v950_v16, %v927_v15  ;;  %v958_v18 = vmax.f32 %v954_v14, 0.0 }
 0x1d7   : > { %v959_v19 = vmax.f32 %v955_v17, 0.0 }
 0x1d9   : > { %v1211_v20 = vpack.c.bf16 %v959_v19, %v958_v18 }
 0x1db   : > { %1213 = vst [vmem:[%s197_s19 + $0x8] sm:$0xff] %v1211_v20  }
 0x1dc PF: > { %s13_s14 = sadd.s32 1, %s1293_s14   ;;  %s1526_s12 = smov %s1289_s13 }
 0x1dd   : > { %p10_p5 = scmp.ge.s32.totalorder %s13_s14, 4   ;;  %s1527_s13 = smov %s1529_s15 }
 0x1df   :  { %12 = sbr.rel (!%p10_p5) target bundleno = 2 (0x2), region = 65 }

// kernel: brain_tumor_net.3
= control target key start
LH: loop header
LB: loop body
LE: loop exit
PB: predicated region body
PF: predicated region fallthrough
CT: control target
= control target key end

     0   :  { %s2607_s12 = smov 0   ;;  %s2609_s13 = smov 0   ;;  %s3400_s0 = inlined_call_operand.vmem [shape: bf16[2,4,3,512], index: 0, kind: input, shape index: {}]   ;;  %s3401_s1 = inlined_call_operand.vmem [shape: bf16[16,27], index: 1, kind: input, shape index: {}]   ;;  %s3402_s2 = inlined_call_operand.vmem [shape: f32[16,1], index: 2, kind: input, shape index: {}]   ;;  %s3403_s3 = inlined_call_operand.vmem [shape: bf16[2,16,384], index: 3, kind: output, shape index: {}]  }
   0x1   :  { %s2611_s14 = smov 0  }
   0x2 LB: > { %s25_s15 = sadd.s32 1, %s2575_s13  ;;  %p2378_p0 = scmp.ge.s32.totalorder %s2579_s14, 1  ;;  %s2579_s14 = sphi %s2611_s14, %s13_s14   ;;  %s2575_s13 = sphi %s2609_s13, %s3560_s13   ;;  %s2571_s12 = sphi %s2607_s12, %s3559_s12  }
   0x3   : > { %p27_p1 = scmp.ge.s32.totalorder %s25_s15, 2  ;;  %p155_p2 = scmp.lt.s32.totalorder %s2579_s14, 3 }
   0x5   : > { %s3562_s15 = smov (%p27_p1, %s25_s15), 0  ;;  %p156_p3 = pnand %p2378_p0, %p155_p2 }
   0x6   : > { %p185_p4 = scmp.lt.s32.totalorder (!%p156_p3), %s2571_s12, 1  ;;  %v208_v0 = vlaneseq (!%p156_p3)  ;;  %v2581_v1 = vmov (!%p156_p3), 1983009808   ;;  %s2582_s20 = smov (!%p156_p3), 127   ;;  %vm3406_vm0 = vcmask (!%p156_p3), 1043458   ;;  %vm3405_vm2 = vcmask (!%p156_p3), 1047558  }
   0x7   : > { %159 = sbr.rel (%p156_p3) target bundleno = 509 (0x1fd), region = 32  ;;  %v206_v2 = vunpack.c.l.s4 (!%p156_p3), %v2581_v1  ;;  %s2583_s21 = smov (!%p156_p3), 111   ;;  %vm409_vm1 = vsmask.f32 (!%p156_p3), 3328  ;;  %vm412_vm3 = vsmask.f32 (!%p156_p3), 7424 }
   0x8   : > { %v209_v3 = vshrl.u32 (!%p156_p3), %v208_v0, 7  ;;  %vm2761_vm4 = vmand (!%p156_p3), %vm3406_vm0, %vm409_vm1  ;;  %vm222_vm7 = vsmask.f32 (!%p156_p3), 1280  ;;  %vm3408_vm8 = vcmask (!%p156_p3), 1041408   ;;  %vm225_vm9 = vsmask.f32 (!%p156_p3), 5376 }
   0x9   : > { %v207_v4 = vunpack.c.0.s8 (!%p156_p3), %v206_v2  ;;  %v418_v2 = vld [vmem:[#allocation2 + $0x38] sm:$0xc] (!%p156_p3)  ;;  %vm413_vm5 = vmand (!%p156_p3), %vm3405_vm2, %vm412_vm3  ;;  %vm3407_vm11 = vcmask (!%p156_p3), 1045508   ;;  %vm273_vm13 = vcmask (!%p156_p3), 1046533   ;;  %vm270_vm14 = vcmask (!%p156_p3), 1042433   ;;  %s2584_s22 = smov (!%p156_p3), 110  }
   0xa   : > { %vm2785_vm6 = vmor (!%p156_p3), %vm413_vm5, %vm2761_vm4  ;;  %vm274_vm1 = vsmask.f32 (!%p156_p3), 7958  ;;  %vm271_vm3 = vsmask.f32 (!%p156_p3), 7942 }
   0xb   : > { %v2633_v5 = vsub.s32 (!%p156_p3), %v207_v4, %v209_v3  ;;  %vm2822_vm10 = vmand (!%p156_p3), %vm3408_vm8, %vm222_vm7 }
   0xc   : > { %vm226_vm12 = vmand (!%p156_p3), %vm3407_vm11, %vm225_vm9  ;;  %vm331_vm11 = vsmask.f32 (!%p156_p3), 256 }
   0xd   : > { %vm2841_vm15 = vmor (!%p156_p3), %vm226_vm12, %vm2822_vm10  ;;  %vm3409_vm12 = vcmask (!%p156_p3), 1039360  }
   0xe   : > { %s3564_s12 = smov (!%p185_p4, %s2571_s12), 1  ;;  %vm2880_vm5 = vmand %vm273_vm13, %vm274_vm1  ;;  %vm3412_vm1 = vcmask 1043456  }
   0xf   : > { %s2446_s16 = sshll.u32 %s3564_s12, 5  ;;  %vm2890_vm7 = vmand %vm270_vm14, %vm271_vm3  ;;  %vm524_vm3 = vsmask.f32 2304  ;;  %s2451_s29 = smul.u32 24, %s3564_s12 }
  0x10   : > { %s2631_s19 = scalar_lea.vmem %s3400_s0, %s2446_s16  ;;  %vm2902_vm9 = vmor %vm2880_vm5, %vm2890_vm7  ;;  %vm526_vm5 = vsmask.f32 6400 }
  0x11   : > { %v2390_v6 = vld [vmem:[%s2631_s19 + $0x10] sm:$0xff]  ;;  %v2388_v7 = vld [vmem:[%s2631_s19 + $0x8] sm:$0xff]  ;;  %v2638_v8 = vld [vmem:[%s2631_s19] sm:$0xff]  ;;  %s199_s5 = scalar_lea.vmem %s3403_s3, %s2451_s29 }
  0x12   : > { %v2641_v9 = vrot.slane %v2390_v6, %v2633_v5  ;;  %v792_v10 = vcombine.low %v2390_v6, %v2390_v6  ;;  %v2644_v11 = vrot.slane %v2388_v7, %v2633_v5  ;;  %v2648_v12 = vrot.slane %v2638_v8, %v2633_v5  ;;  %v2391_v29 = vld [vmem:[%s2631_s19 + $0x18] sm:$0xff]  ;;  %vm3019_vm2 = vmand %vm270_vm14, %vm524_vm3 }
  0x13   : > { %v495_v13 = vcombine.high %v2638_v8, %v2638_v8  ;;  %v702_v14 = vcombine.high %v2388_v7, %v2388_v7  ;;  %v1077_v24 = vcombine.high %v2390_v6, %v2390_v6  ;;  %v826_v33 = vcombine.high %v2391_v29, %v2391_v29  ;;  %v2384_v63 = vld [vmem:[%s2631_s19 + $0x18] sm:$0x3f]  ;;  %vm3029_vm0 = vmand %vm273_vm13, %vm526_vm5 }
  0x14   : > { %809 = vrot.lane.b32.xlu1 %v2641_v9, %s2582_s20  ;;  %v799_v15 = vrot.slane %v792_v10, %v2633_v5  ;;  %v717_v16 = vrot.slane %v2644_v11, 5  ;;  %v510_v20 = vrot.slane %v2648_v12, 7  ;;  %v300_v21 = vrot.slane %v2648_v12, 5  ;;  %vm3048_vm8 = vmor %vm3029_vm0, %vm3019_vm2 }
  0x15   : > { %v2657_v17 = vrot.slane %v495_v13, %v2633_v5  ;;  %v2660_v18 = vrot.slane %v702_v14, %v2633_v5  ;;  %v2678_v28 = vrot.slane %v1077_v24, %v2633_v5  ;;  %v906_v34 = vrot.slane %v2644_v11, 7 }
  0x16   : > { %807 = vrot.lane.b32.xlu0 %v799_v15, %s2582_s20  ;;  %v719_v19 = vrot.slane %v717_v16, 4  ;;  %v302_v25 = vrot.slane %v300_v21, 4  ;;  %v1092_v35 = vrot.slane %v2641_v9, 5  ;;  %v2691_v36 = vshrl.u32 %v2648_v12, 16  ;;  %v415_v15 = vld [vmem:[#allocation2 + $0x30] sm:$0xcc] }
  0x17   : > { %v511_v22 = vrot.slane %v2657_v17, 7  ;;  %v718_v23 = vrot.slane %v2660_v18, 5  ;;  %v301_v26 = vrot.slane %v2657_v17, 5  ;;  %v907_v31 = vrot.slane %v2660_v18, 7 }
  0x18   : > { %725 = vrot.lane.b32.xlu1 %v719_v19, %s2582_s20  ;;  %v1093_v32 = vrot.slane %v2678_v28, 5  ;;  %v2697_v38 = vshll.u32 %v2648_v12, 16  ;;  %v2700_v39 = vrot.slane %v2391_v29, %v2633_v5  ;;  %v2703_v40 = vrot.slane %v826_v33, %v2633_v5 }
  0x19   : > { %v720_v27 = vrot.slane %v718_v23, 4  ;;  %v303_v30 = vrot.slane %v301_v26, 4  ;;  %v1176_v41 = vcombine.low %v2388_v7, %v2388_v7  ;;  %v1094_v42 = vrot.slane %v1092_v35, 4 }
  0x1a   : > { %512 = vrot.lane.b32.xlu0 %v510_v20, %s2583_s21  ;;  %v1095_v37 = vrot.slane %v1093_v32, 4  ;;  %v2709_v43 = vshll.u32 %v2641_v9, 16  ;;  %v2712_v44 = vshll.u32 %v2678_v28, 16  ;;  %v670_v45 = vrot.slane %v2691_v36, 6 }
  0x1b   : > { %v673_v46 = vrot.slane %v2697_v38, 7  ;;  %v842_v47 = vshll.u32 %v2700_v39, 16  ;;  %v846_v48 = vshll.u32 %v2703_v40, 16  ;;  %v1183_v49 = vrot.slane %v1176_v41, %v2633_v5 }
  0x1c   : > { %514 = vrot.lane.b32.xlu1 %v511_v22, %s2583_s21  ;;  %v441_v50 = vrot.slane %v2709_v43, 5  ;;  %v445_v51 = vrot.slane %v2712_v44, 5  ;;  %v2724_v52 = vshrl.u32 %v2657_v17, 16  ;;  %v2727_v53 = vshll.u32 %v2657_v17, 16 }
  0x1d   : > { %v674_v54 = vor.u32 %v673_v46, %v670_v45  ;;  %v2733_v55 = vrot.slane %v842_v47, 5  ;;  %v2737_v56 = vrot.slane %v846_v48, 5  ;;  %v2751_v62 = vshll.u32 %v2644_v11, 16 }
  0x1e   : > { %308 = vrot.lane.b32.xlu0 %v302_v25, %s2582_s20  ;;  %v2482_v57 = vpack.i.bf16 %v445_v51, %v441_v50  ;;  %v678_v58 = vrot.slane %v2724_v52, 6  ;;  %v681_v59 = vrot.slane %v2727_v53, 7  ;;  %v2755_v0 = vshll.u32 %v2660_v18, 16 }
  0x1f   : > { %v2487_v60 = vpack.i.bf16 %v2737_v56, %v2733_v55  ;;  %v3404_v1 = vrot.slane %v2751_v62, 5  ;;  %v405_v6 = vrot.slane %v2384_v63, %v2633_v5  ;;  %v391_v7 = vcombine.low %v2384_v63, %v2384_v63 }
  0x20   : > { %727 = vrot.lane.b32.xlu1 %v720_v27, %s2582_s20  ;;  %v682_v61 = vor.u32 %v681_v59, %v678_v58  ;;  %v1625_v3 = vrot.slane %v2755_v0, 5  ;;  %v2769_v10 = vshrl.u32 %v2660_v18, 16  ;;  %v2793_v22 = vshrl.u32 %v2644_v11, 16  ;;  %v647_v59 = vld [vmem:[#allocation2 + $0x14] sm:$0x3] }
  0x21   : > { %v419_v14 = vsel %vm2761_vm4, %v405_v6, %v418_v2  ;;  %v398_v19 = vrot.slane %v391_v7, %v2633_v5  ;;  %v1291_v27 = vrot.slane %v2678_v28, 7  ;;  %v953_v33 = vrot.slane %v2724_v52, 5 }
  0x22   : > { %310 = vrot.lane.b32.xlu0 %v303_v30, %s2582_s20  ;;  %v2775_v13 = vpack.i.bf16 %v1625_v3, %v3404_v1  ;;  %420 = vst [vmem:[#allocation2 + $0x38] sm:$0xc] %v419_v14  ;;  %v563_v25 = vrot.slane %v2769_v10, 5  ;;  %v555_v29 = vrot.slane %v2793_v22, 5  ;;  %v558_v30 = vrot.slane %v2751_v62, 6 }
  0x23   : > { %v416_v24 = vsel %vm2785_vm6, %v398_v19, %v415_v15  ;;  %v948_v41 = vrot.slane %v2697_v38, 6  ;;  %v3431_v45 = vmov 0  ;;  %v849_v58 = vshrl.u32 %v2700_v39, 16  ;;  %v644_v15 = vld [vmem:[#allocation2 + $0xc] sm:$0x33] }
  0x24   : > { %910 = vrot.lane.b32.xlu1 %v907_v31, %s2583_s21  ;;  %417 = vst [vmem:[#allocation2 + $0x30] sm:$0xcc] %v416_v24  ;;  %v3432_v45 = vsel %vm2822_vm10, 4294967295, %v3431_v45  ;;  %v559_v46 = vor.u32 %v558_v30, %v555_v29  ;;  %v3433_v7 = vmov 0  ;;  %v202_v19 = vld [vmem:[%s2631_s19] sm:$0x3f] }
  0x25   : > { %v3434_v7 = vsel %vm2841_vm15, 4294967295, %v3433_v7  ;;  %v1031_v30 = vld [vmem:[#allocation2 + $0x20] sm:$0x3]  ;;  %vm3419_vm14 = vcmask 908288   ;;  %vm330_vm3 = vcmask 1040384   ;;  %vm333_vm13 = vcmask 1044484  }
  0x26   : > { %908 = vrot.lane.b32.xlu0 %v906_v34, %s2583_s21  ;;  %v956_v34 = vrot.slane %v2727_v53, 6  ;;  %vm334_vm5 = vsmask.f32 4352  ;;  %vm377_vm0 = vsmask.f32 7938 }
  0x28   : > { %1102 = vrot.lane.b32.xlu1 %v1095_v37, %s2582_s20  ;;  %v945_v37 = vrot.slane %v2691_v36, 5 }
  0x2a   : > { %1100 = vrot.lane.b32.xlu0 %v1094_v42, %s2582_s20  ;;  %v854_v42 = vshrl.u32 %v2703_v40, 16  ;;  %v949_v63 = vor.u32 %v948_v41, %v945_v37  ;;  %v204_v41 = vcombine.high %v202_v19, %v202_v19 }
  0x2c   : > { %1193 = vrot.lane.b32.xlu1 %v2644_v11, %s2583_s21  ;;  %v2837_v6 = vrot.slane %v854_v42, 4 }
  0x2e   : > { %1191 = vrot.lane.b32.xlu0 %v1183_v49, %s2583_s21  ;;  %v2387_v49 = vld [vmem:[%s2631_s19 + $0x8] sm:$0x3f] }
  0x2f   : > { %v627_v14 = vcombine.high %v2387_v49, %v2387_v49  ;;  %v634_v24 = vrot.slane %v2387_v49, %v2633_v5  ;;  %v231_v49 = vld [vmem:[#allocation2 + $0x8] sm:$0x3] }
  0x30   : > { %683 = vrot.lane.b32.xlu1 %v674_v54, %s2582_s20  ;;  %v957_v54 = vor.u32 %v956_v34, %v953_v33 }
  0x31   : > { %v645_v34 = vsel %vm2841_vm15, %v634_v24, %v644_v15  ;;  %v218_v24 = vrot.slane %v204_v41, %v2633_v5  ;;  %v3437_v41 = vmov 0 }
  0x32   : > { %2483 = vrot.lane.b32.xlu0 %v2482_v57, %s2582_s20  ;;  %646 = vst [vmem:[#allocation2 + $0xc] sm:$0x33] %v645_v34  ;;  %v3438_v41 = vsel %vm2890_vm7, 4294967295, %v3437_v41 }
  0x34   : > { %2488 = vrot.lane.b32.xlu1 %v2487_v60, %s2582_s20  ;;  %v2394_v60 = vld [vmem:[%s2631_s19 + $0x10] sm:$0x3f] }
  0x35   : > { %v1018_v29 = vrot.slane %v2394_v60, %v2633_v5 }
  0x36   : > { %685 = vrot.lane.b32.xlu0 %v682_v61, %s2582_s20  ;;  %v2395_v61 = vld [vmem:[%s2631_s19 + $0x18] sm:$0x3f] }
  0x37   : > { %v1043_v33 = vrot.slane %v2395_v61, %v2633_v5 }
  0x38   : > { %306 = vrot.lane.b32.xlu1 %v301_v26, %s2582_s20  ;;  %v566_v26 = vrot.slane %v2755_v0, 6 }
  0x39   : > { %v1052_v1 = vshrl.u32 %v1043_v33, 16 }
  0x3a   : > { %304 = vrot.lane.b32.xlu0 %v300_v21, %s2582_s20  ;;  %v1290_v21 = vrot.slane %v2641_v9, 7  ;;  %v567_v31 = vor.u32 %v566_v26, %v563_v25  ;;  %v1011_v25 = vcombine.high %v2394_v60, %v2394_v60  ;;  %v1028_v26 = vld [vmem:[#allocation2 + $0x18] sm:$0x33] }
  0x3c   : > { %723 = vrot.lane.b32.xlu1 %v718_v23, %s2582_s20  ;;  %v2813_v23 = vshrl.u32 %v2678_v28, 16  ;;  %v1025_v37 = vrot.slane %v1011_v25, %v2633_v5  ;;  %v1054_v25 = vrot.slane %v1052_v1, 6 }
  0x3e   : > { %721 = vrot.lane.b32.xlu0 %v717_v16, %s2582_s20  ;;  %v2816_v16 = vshrl.u32 %v2641_v9, 16  ;;  %v453_v57 = vrot.slane %v2813_v23, 4  ;;  %v1032_v15 = vsel %vm2822_vm10, %v1025_v37, %v1031_v30  ;;  %v232_v30 = vsel %vm2822_vm10, %v218_v24, %v231_v49 }
  0x3f   : > { %1033 = vst [vmem:[#allocation2 + $0x20] sm:$0x3] %v1032_v15  ;;  %233 = vst [vmem:[#allocation2 + $0x8] sm:$0x3] %v232_v30 }
  0x40   : > { %1294 = vrot.lane.b32.xlu1 %v1291_v27, %s2583_s21  ;;  %v448_v2 = vrot.slane %v2816_v16, 4  ;;  %v228_v27 = vld [vmem:[#allocation2] sm:$0x33] }
  0x42   : > { %1292 = vrot.lane.b32.xlu0 %v1290_v21, %s2583_s21  ;;  %v641_v21 = vrot.slane %v627_v14, %v2633_v5 }
  0x44   : > { %570 = vrot.lane.b32.xlu1 %v567_v31, %s2583_s21  ;;  %v1036_v31 = vcombine.high %v2395_v61, %v2395_v61  ;;  %v648_v60 = vsel %vm2822_vm10, %v641_v21, %v647_v59  ;;  %v1029_v61 = vsel %vm2841_vm15, %v1018_v29, %v1028_v26 }
  0x45   : > { %649 = vst [vmem:[#allocation2 + $0x14] sm:$0x3] %v648_v60  ;;  %1030 = vst [vmem:[#allocation2 + $0x18] sm:$0x33] %v1029_v61 }
  0x46   : > { %568 = vrot.lane.b32.xlu0 %v559_v46, %s2583_s21  ;;  %v211_v46 = vrot.slane %v202_v19, %v2633_v5  ;;  %v1050_v14 = vrot.slane %v1036_v31, %v2633_v5  ;;  %v1055_v19 = vshll.u32 %v1043_v33, 16  ;;  %v454_v31 = vor.u32 %v453_v57, %v445_v51 }
  0x47   : > { %v449_v57 = vor.u32 %v448_v2, %v441_v50 }
  0x48   : > { %609 = vrot.lane.b32.xlu1 %v2657_v17, %s2584_s22  ;;  %v2382_v17 = vld [vmem:[%s2631_s19 + $0x8] sm:$0x3f]  ;;  %v229_v59 = vsel %vm2841_vm15, %v211_v46, %v228_v27  ;;  %v1060_v26 = vshrl.u32 %v1050_v14, 16  ;;  %v1063_v21 = vshll.u32 %v1050_v14, 16  ;;  %v1057_v34 = vrot.slane %v1055_v19, 7 }
  0x49   : > { %230 = vst [vmem:[#allocation2] sm:$0x33] %v229_v59  ;;  %v237_v29 = vcombine.high %v2382_v17, %v2382_v17  ;;  %v244_v33 = vrot.slane %v2382_v17, %v2633_v5  ;;  %v851_v27 = vrot.slane %v849_v58, 4  ;;  %v455_v15 = vrot.slane %v454_v31, 4 }
  0x4a   : > { %607 = vrot.lane.b32.xlu0 %v2648_v12, %s2584_s22  ;;  %v1062_v37 = vrot.slane %v1060_v26, 6  ;;  %v1058_v46 = vor.u32 %v1057_v34, %v1054_v25  ;;  %v3439_v19 = vmov 0 }
  0x4b   : > { %v251_v51 = vrot.slane %v237_v29, %v2633_v5  ;;  %v253_v49 = vshrl.u32 %v244_v33, 16  ;;  %v256_v60 = vshll.u32 %v244_v33, 16  ;;  %v3440_v19 = vsel %vm2902_vm9, 4294967295, %v3439_v19 }
  0x4c   : > { %960 = vrot.lane.b32.xlu1 %v957_v54, %s2584_s22  ;;  %v1065_v54 = vrot.slane %v1063_v21, 7  ;;  %v1069_v24 = vld [vmem:[#allocation2 + $0x18] sm:$0x66]  ;;  %v852_v26 = vor.u32 %v851_v27, %v2733_v55  ;;  %v1486_v33 = vrot.slane %v2703_v40, 5  ;;  %v280_v55 = vld [vmem:[#allocation2 + $0x8] sm:$0x6] }
  0x4d   : > { %v261_v14 = vshrl.u32 %v251_v51, 16  ;;  %v264_v17 = vshll.u32 %v251_v51, 16  ;;  %v255_v50 = vrot.slane %v253_v49, 6  ;;  %v258_v2 = vrot.slane %v256_v60, 7 }
  0x4e   : > { %958 = vrot.lane.b32.xlu0 %v949_v63, %s2584_s22  ;;  %v1066_v61 = vor.u32 %v1065_v54, %v1062_v37  ;;  %v857_v63 = vor.u32 %v2837_v6, %v2737_v56  ;;  %v1070_v56 = vsel %vm2902_vm9, %v1058_v46, %v1069_v24  ;;  %v1072_v6 = vld [vmem:[#allocation2 + $0x20] sm:$0x6]  ;;  %v853_v1 = vrot.slane %v852_v26, 4  ;;  %v2401_v24 = vld [vmem:[%s2631_s19 + $0x18] sm:$0x3f] }
  0x4f   : > { %v263_v59 = vrot.slane %v261_v14, 6  ;;  %v266_v25 = vrot.slane %v264_v17, 7  ;;  %v259_v21 = vor.u32 %v258_v2, %v255_v50  ;;  %1071 = vst [vmem:[#allocation2 + $0x18] sm:$0x66] %v1070_v56  ;;  %v1485_v37 = vrot.slane %v2700_v39, 5 }
  0x50   : > { %994 = vrot.lane.b32.xlu1 %v2660_v18, %s2584_s22  ;;  %v450_v18 = vrot.slane %v449_v57, 4  ;;  %v277_v29 = vld [vmem:[#allocation2] sm:$0x66]  ;;  %v1073_v31 = vsel %vm2890_vm7, %v1066_v61, %v1072_v6  ;;  %v858_v30 = vrot.slane %v857_v63, 4  ;;  %v1488_v54 = vrot.slane %v1486_v33, 4 }
  0x51   : > { %v267_v34 = vor.u32 %v266_v25, %v263_v59  ;;  %1074 = vst [vmem:[#allocation2 + $0x20] sm:$0x6] %v1073_v31  ;;  %v1569_v51 = vcombine.low %v2638_v8, %v2638_v8  ;;  %v1487_v57 = vrot.slane %v1485_v37, 4  ;;  %v1153_v46 = vrot.slane %v2724_v52, 7  ;;  %v1415_v26 = vld [vmem:[#allocation2 + $0x2c] sm:$0x3] }
  0x52   : > { %992 = vrot.lane.b32.xlu0 %v2644_v11, %s2584_s22  ;;  %v278_v11 = vsel %vm2902_vm9, %v259_v21, %v277_v29  ;;  %v2585_v60 = vmov 0   ;;  %v1146_v8 = vrot.slane %v2691_v36, 7  ;;  %v1228_v17 = vrot.slane %v2697_v38, 5  ;;  %v1412_v56 = vld [vmem:[#allocation2 + $0x24] sm:$0x33] }
  0x53   : > { %279 = vst [vmem:[#allocation2] sm:$0x66] %v278_v11  ;;  %v281_v27 = vsel %vm2890_vm7, %v267_v34, %v280_v55  ;;  %v1576_v49 = vrot.slane %v1569_v51, %v2633_v5  ;;  %2001 = vmatprep.mubr.bf16.mxu0 %v2585_v60  ;;  %2044 = vmatprep.mubr.bf16.mxu1 %v2585_v60  ;;  %v1329_v50 = vrot.slane %v849_v58, 5  ;;  %v1332_v2 = vrot.slane %v842_v47, 6 }
  0x54   : > { %462 = vrot.lane.b32.xlu1 %v455_v15, %s2582_s20  ;;  %282 = vst [vmem:[#allocation2 + $0x8] sm:$0x6] %v281_v27  ;;  %2502 = vset.pattern.permute.xlu0 %v2585_v60  ;;  %v1156_v61 = vor.u32 %v1153_v46, %v2727_v53  ;;  %v1149_v14 = vor.u32 %v1146_v8, %v2697_v38  ;;  %v1232_v15 = vrot.slane %v2727_v53, 5  ;;  %v1235_v53 = vrot.slane %v2691_v36, 4 }
  0x55   : > { %2503 = vset.pattern.permute.xlu1 %v2585_v60  ;;  %v1333_v38 = vor.u32 %v1332_v2, %v1329_v50  ;;  %v1395_v59 = vcombine.high %v2401_v24, %v2401_v24  ;;  %v1337_v58 = vrot.slane %v854_v42, 5  ;;  %v1340_v47 = vrot.slane %v846_v48, 6 }
  0x56   : > { %460 = vrot.lane.b32.xlu0 %v450_v18, %s2582_s20  ;;  %v2492_v63 = vpack.i.bf16 %v1232_v15, %v1228_v17  ;;  %v1236_v18 = vor.u32 %v1235_v53, %v1228_v17  ;;  %v1402_v36 = vrot.slane %v2401_v24, %v2633_v5  ;;  %v1240_v42 = vrot.slane %v2724_v52, 4  ;;  %v2389_v17 = vld [vmem:[%s2631_s19 + $0x18] sm:$0x3f] }
  0x57   : > { %v1409_v25 = vrot.slane %v1395_v59, %v2633_v5  ;;  %v1341_v6 = vor.u32 %v1340_v47, %v1337_v58  ;;  %v1438_v29 = vrot.slane %v2816_v16, 6  ;;  %v1441_v31 = vrot.slane %v2709_v43, 7 }
  0x58   : > { %865 = vrot.lane.b32.xlu1 %v858_v30, %s2582_s20  ;;  %v1413_v48 = vsel %vm2841_vm15, %v1402_v36, %v1412_v56  ;;  %v1237_v21 = vrot.slane %v1236_v18, 4  ;;  %v1241_v34 = vor.u32 %v1240_v42, %v1232_v15  ;;  %v1539_v52 = vrot.slane %v2793_v22, 7  ;;  %v532_v36 = vld [vmem:[#allocation2 + $0x68] sm:$0x6]  ;;  %vm3070_vm15 = vmand %vm333_vm13, %vm334_vm5 }
  0x59   : > { %1414 = vst [vmem:[#allocation2 + $0x24] sm:$0x33] %v1413_v48  ;;  %v1442_v30 = vor.u32 %v1441_v31, %v1438_v29  ;;  %v1446_v55 = vrot.slane %v2813_v23, 6  ;;  %v1730_v51 = vrot.slane %v2813_v23, 5  ;;  %v1725_v8 = vrot.slane %v2709_v43, 6 }
  0x5a   : > { %863 = vrot.lane.b32.xlu0 %v853_v1, %s2582_s20  ;;  %v1242_v11 = vrot.slane %v1241_v34, 4  ;;  %v1542_v27 = vor.u32 %v2751_v62, %v1539_v52  ;;  %v753_v2 = vcombine.high %v2389_v17, %v2389_v17  ;;  %v3042_v56 = vrot.slane %v2389_v17, %v2633_v5  ;;  %v529_v29 = vld [vmem:[#allocation2 + $0x60] sm:$0x66] }
  0x5c   : > { %1495 = vrot.lane.b32.xlu1 %v1488_v54, %s2582_s20  ;;  %v1546_v54 = vrot.slane %v2769_v10, 7 }
  0x5e   : > { %1493 = vrot.lane.b32.xlu0 %v1487_v57, %s2582_s20  ;;  %v1733_v57 = vrot.slane %v2712_v44, 6 }
  0x60   : > { %1586 = vrot.lane.b32.xlu1 %v2648_v12, %s2584_s22  ;;  %v1683_v12 = vrot.slane %v2700_v39, 7 }
  0x62   : > { %1584 = vrot.lane.b32.xlu0 %v1576_v49, %s2584_s22  ;;  %v1722_v49 = vrot.slane %v2816_v16, 5  ;;  %v818_v16 = vld [vmem:[#allocation2 + $0x3c] sm:$0xcc] }
  0x64   : > { %1159 = vrot.lane.b32.xlu1 %v1156_v61, %s2583_s21  ;;  %v821_v61 = vld [vmem:[#allocation2 + $0x44] sm:$0xc] }
  0x66   : > { %1157 = vrot.lane.b32.xlu0 %v1149_v14, %s2583_s21 }
  0x68   : > { %1096 = vrot.lane.b32.xlu1 %v1092_v35, %s2582_s20  ;;  %v1684_v35 = vrot.slane %v2703_v40, 7 }
  0x6a   : > { %2493 = vrot.lane.b32.xlu0 %v2492_v63, %s2584_s22 }
  0x6c   : > { %1685 = vrot.lane.b32.xlu1 %v1683_v12, %s2583_s21  ;;  %v2383_v12 = vld [vmem:[%s2631_s19 + $0x10] sm:$0x3f] }
  0x6d   : > { %v3061_v48 = vrot.slane %v2383_v12, %v2633_v5 }
  0x6e   : > { %1098 = vrot.lane.b32.xlu0 %v1093_v32, %s2582_s20  ;;  %v1416_v32 = vsel %vm2822_vm10, %v1409_v25, %v1415_v26 }
  0x6f   : > { %1417 = vst [vmem:[#allocation2 + $0x2c] sm:$0x3] %v1416_v32 }
  0x70   : > { %1342 = vrot.lane.b32.xlu1 %v1333_v38, %s2583_s21  ;;  %v1628_v38 = vrot.slane %v2793_v22, 4  ;;  %v772_v22 = vshll.u32 %v3042_v56, 16 }
  0x72   : > { %1687 = vrot.lane.b32.xlu0 %v1684_v35, %s2583_s21  ;;  %v346_v35 = vcombine.high %v2383_v12, %v2383_v12 }
  0x74   : > { %1376 = vrot.lane.b32.xlu1 %v2641_v9, %s2584_s22  ;;  %v1449_v9 = vrot.slane %v2712_v44, 7  ;;  %v1633_v44 = vrot.slane %v2769_v10, 4 }
  0x76   : > { %1344 = vrot.lane.b32.xlu0 %v1341_v6, %s2583_s21  ;;  %v1450_v1 = vor.u32 %v1449_v9, %v1446_v55 }
  0x78   : > { %1247 = vrot.lane.b32.xlu1 %v1237_v21, %s2584_s22  ;;  %v3064_v21 = vrot.slane %v346_v35, %v2633_v5 }
  0x7a   : > { %1378 = vrot.lane.b32.xlu0 %v2678_v28, %s2584_s22  ;;  %v1549_v28 = vor.u32 %v2755_v0, %v1546_v54  ;;  %v3037_v0 = vrot.slane %v753_v2, %v2633_v5 }
  0x7c   : > { %1451 = vrot.lane.b32.xlu1 %v1442_v30, %s2582_s20  ;;  %v776_v5 = vshrl.u32 %v3037_v0, 16 }
  0x7e   : > { %1249 = vrot.lane.b32.xlu0 %v1242_v11, %s2584_s22 }
  0x80   : > { %1550 = vrot.lane.b32.xlu1 %v1542_v27, %s2583_s21  ;;  %v748_v27 = vld [vmem:[#allocation2 + $0x44] sm:$0x1] }
  0x82   : > { %1453 = vrot.lane.b32.xlu0 %v1450_v1, %s2582_s20  ;;  %v769_v1 = vshrl.u32 %v3042_v56, 16 }
  0x84   : > { %2498 = vrot.lane.b32.xlu1 %v2775_v13, %s2584_s22  ;;  %v1734_v13 = vor.u32 %v1733_v57, %v1730_v51  ;;  %v779_v51 = vshll.u32 %v3037_v0, 16  ;;  %v362_v57 = vshrl.u32 %v3061_v48, 16  ;;  %v771_v35 = vrot.slane %v769_v1, 7 }
  0x86   : > { %v810_v46 = vpop.permute.xlu1 %809  ;;  %1552 = vrot.lane.b32.xlu0 %v1549_v28, %s2583_s21  ;;  %v364_v56 = vrot.slane %v362_v57, 7  ;;  %v2246_v57 = vld [vmem:[%s3402_s2 + $0x8] sm:$0xff] }
  0x87   : > { %v812_v14 = vrot.slane %v810_v46, 4 }
  0x88   : > { %v808_v15 = vpop.permute.xlu0 %807  ;;  %1491 = vrot.lane.b32.xlu1 %v1486_v33, %s2582_s20  ;;  %v1726_v33 = vor.u32 %v1725_v8, %v1722_v49 }
  0x89   : > { %v815_v23 = vsel %vm3409_vm12, %v810_v46, %v812_v14  ;;  %v811_v63 = vrot.slane %v808_v15, 4  ;;  %v369_v46 = vshrl.u32 %v3064_v21, 16 }
  0x8a   : > { %v822_v43 = vsel %vm2761_vm4, %v815_v23, %v821_v61  ;;  %v3010_v50 = vpop.permute.xlu1 %725  ;;  %1489 = vrot.lane.b32.xlu0 %v1485_v37, %s2582_s20  ;;  %v1634_v37 = vor.u32 %v1633_v44, %v1625_v3  ;;  %v3445_v3 = vrot.slane %v2751_v62, 5  ;;  %v745_v61 = vld [vmem:[#allocation2 + $0x3c] sm:$0x11]  ;;  %v778_v23 = vrot.slane %v776_v5, 7 }
  0x8b   : > { %823 = vst [vmem:[#allocation2 + $0x44] sm:$0xc] %v822_v43  ;;  %v813_v10 = vsel %vm3412_vm1, %v811_v63, %v812_v14  ;;  %v731_v9 = vrot.slane %v3010_v50, 4 }
  0x8c   : > { %v814_v24 = vsel %vm3409_vm12, %v808_v15, %v813_v10  ;;  %v513_v59 = vpop.permute.xlu0 %512  ;;  %1737 = vrot.lane.b32.xlu1 %v1734_v13, %s2584_s22  ;;  %v1629_v25 = vor.u32 %v1628_v38, %v3445_v3  ;;  %vm3056_vm12 = vmand %vm330_vm3, %vm331_vm11  ;;  %v1635_v42 = vrot.slane %v1634_v37, 4  ;;  %vm3454_vm3 = vcmask 1039360   ;;  %v340_v13 = vld [vmem:[#allocation2 + $0x38] sm:$0x1]  ;;  %v922_v38 = vld [vmem:[#allocation2 + $0x74] sm:$0x6] }
  0x8d   : > { %v819_v58 = vsel %vm2785_vm6, %v814_v24, %v818_v16  ;;  %v516_v18 = vrot.slane %v513_v59, 4  ;;  %vm3093_vm11 = vmor %vm3070_vm15, %vm3056_vm12  ;;  %v337_v16 = vld [vmem:[#allocation2 + $0x30] sm:$0x11]  ;;  %vm379_vm15 = vsmask.f32 7954 }
  0x8e   : > { %820 = vst [vmem:[#allocation2 + $0x3c] sm:$0xcc] %v819_v58  ;;  %v515_v47 = vpop.permute.xlu1 %514  ;;  %1735 = vrot.lane.b32.xlu0 %v1726_v33, %s2584_s22  ;;  %v1630_v55 = vrot.slane %v1629_v25, 4  ;;  %vm3455_vm13 = vmmov %vm3454_vm3  ;;  %v3458_v58 = vmov 0 }
  0x8f   : > { %v517_v26 = vrot.slane %v515_v47, 4  ;;  %vm3456_vm5 = vmmov %vm3454_vm3 }
  0x90   : > { %v309_v6 = vpop.permute.xlu0 %308  ;;  %1771 = vrot.lane.b32.xlu1 %v2703_v40, %s2584_s22  ;;  %v774_v40 = vor.u32 %v772_v22, %v771_v35 }
  0x91   : > { %v518_v31 = vsel %vm3412_vm1, %v516_v18, %v517_v26  ;;  %v521_v34 = vsel %vm3419_vm14, %v515_v47, %v517_v26  ;;  %v314_v14 = vrot.slane %v309_v6, 4  ;;  %v371_v47 = vrot.slane %v369_v46, 7 }
  0x92   : > { %v520_v30 = vsel %vm3419_vm14, %v513_v59, %v518_v31  ;;  %v533_v52 = vsel %vm3019_vm2, %v521_v34, %v532_v36  ;;  %v728_v11 = vpop.permute.xlu1 %727  ;;  %1769 = vrot.lane.b32.xlu0 %v2700_v39, %s2584_s22  ;;  %v372_v39 = vshll.u32 %v3064_v21, 16  ;;  %v919_v36 = vld [vmem:[#allocation2 + $0x6c] sm:$0x66] }
  0x93   : > { %534 = vst [vmem:[#allocation2 + $0x68] sm:$0x6] %v533_v52  ;;  %v732_v54 = vrot.slane %v728_v11, 4  ;;  %v530_v28 = vsel %vm3048_vm8, %v520_v30, %v529_v29  ;;  %v1123_v29 = vld [vmem:[#allocation2 + $0x50] sm:$0x1] }
  0x94   : > { %1642 = vrot.lane.b32.xlu1 %v1635_v42, %s2584_s22  ;;  %v311_v49 = vpop.permute.xlu0 %310  ;;  %531 = vst [vmem:[#allocation2 + $0x60] sm:$0x66] %v530_v28  ;;  %v781_v42 = vor.u32 %v779_v51, %v778_v23  ;;  %v374_v52 = vor.u32 %v372_v39, %v371_v47  ;;  %v2245_v51 = vld [vmem:[%s3402_s2] sm:$0xff] }
  0x95   : > { %v736_v17 = vsel %vm3412_vm1, %v731_v9, %v732_v54  ;;  %v738_v15 = vsel %vm3454_vm3, %v728_v11, %v732_v54  ;;  %v315_v44 = vrot.slane %v311_v49, 4 }
  0x96   : > { %v737_v63 = vsel %vm3455_vm13, %v3010_v50, %v736_v17  ;;  %v749_v12 = vsel %vm3056_vm12, %v738_v15, %v748_v27  ;;  %v911_v43 = vpop.permute.xlu1 %910  ;;  %1640 = vrot.lane.b32.xlu0 %v1630_v55, %s2584_s22  ;;  %vm3457_vm13 = vcmask 1041408   ;;  %v1120_v55 = vld [vmem:[#allocation2 + $0x48] sm:$0x11] }
  0x97   : > { %750 = vst [vmem:[#allocation2 + $0x44] sm:$0x1] %v749_v12  ;;  %v321_v33 = vsel %vm3412_vm1, %v314_v14, %v315_v44  ;;  %v323_v2 = vsel %vm3456_vm5, %v311_v49, %v315_v44  ;;  %v913_v10 = vrot.slane %v911_v43, 4  ;;  %v746_v24 = vsel %vm3093_vm11, %v737_v63, %v745_v61  ;;  %vm3114_vm1 = vmand %vm3457_vm13, %vm377_vm0  ;;  %v1205_v61 = vld [vmem:[#allocation2 + $0x50] sm:$0xc] }
  0x98   : > { %v322_v50 = vsel %vm3454_vm3, %v309_v6, %v321_v33  ;;  %v341_v59 = vsel %vm3056_vm12, %v323_v2, %v340_v13  ;;  %v909_v37 = vpop.permute.xlu0 %908  ;;  %747 = vst [vmem:[#allocation2 + $0x3c] sm:$0x11] %v746_v24  ;;  %v3459_v58 = vsel %vm3114_vm1, 4294967295, %v3458_v58  ;;  %v365_v6 = vshll.u32 %v3061_v48, 16  ;;  %2254 = vperm.xlu1 %2503, %v2246_v57   ;;  %v881_v57 = vld [vmem:[#allocation2 + $0x3c] sm:$0x88] }
  0x99   : > { %342 = vst [vmem:[#allocation2 + $0x38] sm:$0x1] %v341_v59  ;;  %v916_v0 = vsel %vm3419_vm14, %v911_v43, %v913_v10  ;;  %v912_v3 = vrot.slane %v909_v37, 4  ;;  %v338_v25 = vsel %vm3093_vm11, %v322_v50, %v337_v16  ;;  %vm3460_vm0 = vcmask 1045508  }
  0x9a   : > { %v923_v18 = vsel %vm3019_vm2, %v916_v0, %v922_v38  ;;  %v1103_v26 = vpop.permute.xlu1 %1102  ;;  %339 = vst [vmem:[#allocation2 + $0x30] sm:$0x11] %v338_v25  ;;  %vm380_vm5 = vmand %vm3460_vm0, %vm379_vm15  ;;  %vm3461_vm3 = vcmask 1043456   ;;  %vm3462_vm13 = vcmask 1039360   ;;  %v3463_v48 = vmov 0  ;;  %2249 = vperm.xlu0 %2502, %v2245_v51  }
  0x9b   : > { %924 = vst [vmem:[#allocation2 + $0x74] sm:$0x6] %v923_v18  ;;  %v914_v21 = vsel %vm3461_vm3, %v912_v3, %v913_v10  ;;  %v1107_v31 = vrot.slane %v1103_v26, 4  ;;  %vm3133_vm10 = vmor %vm380_vm5, %vm3114_vm1  ;;  %v367_v54 = vor.u32 %v365_v6, %v364_v56  ;;  %vm478_vm5 = vcmask 1043459   ;;  %v1202_v38 = vld [vmem:[#allocation2 + $0x48] sm:$0xcc] }
  0x9c   : > { %v915_v34 = vsel %vm3419_vm14, %v909_v37, %v914_v21  ;;  %v1101_v30 = vpop.permute.xlu0 %1100  ;;  %v3464_v48 = vsel %vm3133_vm10, 4294967295, %v3463_v48  ;;  %vm3465_vm15 = vmmov %vm3461_vm3  ;;  %vm479_vm3 = vsmask.f32 7950  ;;  %v488_v3 = vld [vmem:[#allocation2 + $0x38] sm:$0x8]  ;;  %v3470_v56 = vmov 0 }
  0x9d   : > { %v920_v5 = vsel %vm3048_vm8, %v915_v34, %v919_v36  ;;  %v1113_v11 = vsel %vm3462_vm13, %v1103_v26, %v1107_v31  ;;  %v1106_v9 = vrot.slane %v1101_v30, 4  ;;  %vm3466_vm0 = vmmov %vm3462_vm13  ;;  %vm481_vm13 = vcmask 1047559   ;;  %v485_v6 = vld [vmem:[#allocation2 + $0x30] sm:$0x88] }
  0x9e   : > { %v787_v27 = vld [vmem:[#allocation2 + $0x44] sm:$0x3]  ;;  %921 = vst [vmem:[#allocation2 + $0x6c] sm:$0x66] %v920_v5  ;;  %v1124_v1 = vsel %vm3056_vm12, %v1113_v11, %v1123_v29  ;;  %v1194_v28 = vpop.permute.xlu1 %1193  ;;  %v697_v5 = vld [vmem:[#allocation2 + $0x14] sm:$0x6] }
  0x9f   : > { %v788_v46 = vsel %vm3114_vm1, %v781_v42, %v787_v27  ;;  %1125 = vst [vmem:[#allocation2 + $0x50] sm:$0x1] %v1124_v1  ;;  %v784_v39 = vld [vmem:[#allocation2 + $0x3c] sm:$0x33]  ;;  %v1111_v49 = vsel %vm3465_vm15, %v1106_v9, %v1107_v31  ;;  %v1196_v14 = vrot.slane %v1194_v28, 4 }
  0xa0   : > { %789 = vst [vmem:[#allocation2 + $0x44] sm:$0x3] %v788_v46  ;;  %v385_v17 = vld [vmem:[#allocation2 + $0x38] sm:$0x3]  ;;  %v785_v15 = vsel %vm3133_vm10, %v774_v40, %v784_v39  ;;  %v1112_v13 = vsel %vm3466_vm0, %v1101_v30, %v1111_v49  ;;  %v1192_v44 = vpop.permute.xlu0 %1191  ;;  %vm482_vm15 = vsmask.f32 7966 }
  0xa1   : > { %v386_v23 = vsel %vm3114_vm1, %v374_v52, %v385_v17  ;;  %v382_v63 = vld [vmem:[#allocation2 + $0x30] sm:$0x33]  ;;  %786 = vst [vmem:[#allocation2 + $0x3c] sm:$0x33] %v785_v15  ;;  %v1121_v12 = vsel %vm3093_vm11, %v1112_v13, %v1120_v55  ;;  %v1199_v43 = vsel %vm3419_vm14, %v1194_v28, %v1196_v14  ;;  %v1195_v16 = vrot.slane %v1192_v44, 4  ;;  %vm3164_vm1 = vmand %vm478_vm5, %vm479_vm3 }
  0xa2   : > { %387 = vst [vmem:[#allocation2 + $0x38] sm:$0x3] %v386_v23  ;;  %v383_v33 = vsel %vm3133_vm10, %v367_v54, %v382_v63  ;;  %1122 = vst [vmem:[#allocation2 + $0x48] sm:$0x11] %v1121_v12  ;;  %v1206_v2 = vsel %vm2761_vm4, %v1199_v43, %v1205_v61  ;;  %v684_v10 = vpop.permute.xlu1 %683  ;;  %vm3467_vm0 = vcmask 1043456   ;;  %vm3472_vm3 = vcmask 1039360  }
  0xa3   : > { %384 = vst [vmem:[#allocation2 + $0x30] sm:$0x33] %v383_v33  ;;  %1207 = vst [vmem:[#allocation2 + $0x50] sm:$0xc] %v1206_v2  ;;  %v1197_v24 = vsel %vm3467_vm0, %v1195_v16, %v1196_v14  ;;  %v687_v40 = vrot.slane %v684_v10, 4 }
  0xa4   : > { %v1198_v50 = vsel %vm3419_vm14, %v1192_v44, %v1197_v24  ;;  %v2484_v37 = vpop.permute.xlu0 %2483  ;;  %vm483_vm10 = vmand %vm481_vm13, %vm482_vm15  ;;  %v884_v27 = vld [vmem:[#allocation2 + $0x44] sm:$0x8]  ;;  %v694_v28 = vld [vmem:[#allocation2 + $0xc] sm:$0x66] }
  0xa5   : > { %v1203_v35 = vsel %vm2785_vm6, %v1198_v50, %v1202_v38  ;;  %v2486_v22 = vunpack.i.h.bf16 %v2484_v37  ;;  %v2485_v47 = vunpack.i.l.bf16 %v2484_v37  ;;  %vm3172_vm5 = vmor %vm483_vm10, %vm3164_vm1  ;;  %v1306_v37 = vld [vmem:[#allocation2 + $0x80] sm:$0x6] }
  0xa6   : > { %1204 = vst [vmem:[#allocation2 + $0x48] sm:$0xcc] %v1203_v35  ;;  %v2489_v0 = vpop.permute.xlu1 %2488  ;;  %v3471_v56 = vsel %vm3172_vm5, 4294967295, %v3470_v56  ;;  %vm3473_vm13 = vmmov %vm3467_vm0 }
  0xa7   : > { %v465_v25 = vrot.slane %v2486_v22, 4  ;;  %v464_v18 = vrot.slane %v2485_v47, 4  ;;  %v2491_v36 = vunpack.i.h.bf16 %v2489_v0  ;;  %v2490_v26 = vunpack.i.l.bf16 %v2489_v0  ;;  %vm3474_vm15 = vmmov %vm3472_vm3 }
  0xa8   : > { %v686_v42 = vpop.permute.xlu0 %685  ;;  %vm3475_vm10 = vmmov %vm3472_vm3 }
  0xa9   : > { %v470_v21 = vsel %vm3472_vm3, %v2486_v22, %v465_v25  ;;  %v468_v29 = vsel %vm3473_vm13, %v464_v18, %v465_v25  ;;  %v868_v31 = vrot.slane %v2491_v36, 4  ;;  %v867_v34 = vrot.slane %v2490_v26, 4  ;;  %vm3476_vm13 = vmmov %vm3467_vm0  ;;  %v1303_v18 = vld [vmem:[#allocation2 + $0x78] sm:$0x66] }
  0xaa   : > { %v489_v30 = vsel %vm3164_vm1, %v470_v21, %v488_v3  ;;  %v469_v52 = vsel %vm3474_vm15, %v2485_v47, %v468_v29  ;;  %v688_v11 = vrot.slane %v686_v42, 4  ;;  %v307_v55 = vpop.permute.xlu1 %306  ;;  %vm3477_vm15 = vmmov %vm3472_vm3  ;;  %v587_v29 = vld [vmem:[#allocation2 + $0x68] sm:$0xc] }
  0xab   : > { %490 = vst [vmem:[#allocation2 + $0x38] sm:$0x8] %v489_v30  ;;  %v486_v9 = vsel %vm3172_vm5, %v469_v52, %v485_v6  ;;  %v873_v1 = vsel %vm3475_vm10, %v2491_v36, %v868_v31  ;;  %v871_v54 = vsel %vm3467_vm0, %v867_v34, %v868_v31  ;;  %v313_v51 = vrot.slane %v307_v55, 4  ;;  %vm3478_vm10 = vmmov %vm3472_vm3 }
  0xac   : > { %487 = vst [vmem:[#allocation2 + $0x30] sm:$0x88] %v486_v9  ;;  %v885_v46 = vsel %vm3164_vm1, %v873_v1, %v884_v27  ;;  %v872_v39 = vsel %vm3472_vm3, %v2490_v26, %v871_v54  ;;  %v689_v49 = vsel %vm3476_vm13, %v687_v40, %v688_v11  ;;  %v691_v61 = vsel %vm3477_vm15, %v686_v42, %v688_v11  ;;  %v305_v14 = vpop.permute.xlu0 %304  ;;  %vm3479_vm0 = vmmov %vm3472_vm3  ;;  %v584_v27 = vld [vmem:[#allocation2 + $0x60] sm:$0xcc]  ;;  %v622_v54 = vld [vmem:[#allocation2 + $0x98] sm:$0x3] }
  0xad   : > { %886 = vst [vmem:[#allocation2 + $0x44] sm:$0x8] %v885_v46  ;;  %v882_v17 = vsel %vm3172_vm5, %v872_v39, %v881_v57  ;;  %v690_v15 = vsel %vm3478_vm10, %v684_v10, %v689_v49  ;;  %v698_v13 = vsel %vm2890_vm7, %v691_v61, %v697_v5  ;;  %v320_v44 = vsel %vm3479_vm0, %v307_v55, %v313_v51  ;;  %vm3480_vm3 = vmmov %vm3476_vm13 }
  0xae   : > { %883 = vst [vmem:[#allocation2 + $0x3c] sm:$0x88] %v882_v17  ;;  %v695_v23 = vsel %vm2902_vm9, %v690_v15, %v694_v28  ;;  %699 = vst [vmem:[#allocation2 + $0x14] sm:$0x6] %v698_v13  ;;  %v312_v63 = vrot.slane %v305_v14, 4  ;;  %v724_v12 = vpop.permute.xlu1 %723 }
  0xaf   : > { %329 = vst [vmem:[#allocation2 + $0x8] sm:$0x8] %v320_v44  ;;  %696 = vst [vmem:[#allocation2 + $0xc] sm:$0x66] %v695_v23  ;;  %v730_v43 = vrot.slane %v724_v12, 4 }
  0xb0   : > { %v317_v16 = vsel %vm3480_vm3, %v312_v63, %v313_v51  ;;  %v722_v33 = vpop.permute.xlu0 %721  ;;  %vm3481_vm13 = vmmov %vm3479_vm0  ;;  %vm581_vm9 = vsmask.f32 7962  ;;  %v619_v15 = vld [vmem:[#allocation2 + $0x90] sm:$0x33] }
  0xb1   : > { %v319_v2 = vsel %vm3481_vm13, %v305_v14, %v317_v16  ;;  %vm3482_vm15 = vmmov %vm3479_vm0  ;;  %v729_v10 = vrot.slane %v722_v33, 4  ;;  %vm579_vm0 = vsmask.f32 7946  ;;  %v972_v16 = vld [vmem:[#allocation2 + $0x74] sm:$0xc] }
  0xb2   : > { %v735_v38 = vsel %vm3482_vm15, %v724_v12, %v730_v43  ;;  %328 = vst [vmem:[#allocation2] sm:$0x88] %v319_v2  ;;  %v1295_v24 = vpop.permute.xlu1 %1294  ;;  %vm3483_vm10 = vmmov %vm3480_vm3  ;;  %vm3485_vm3 = vcmask 908288  }
  0xb3   : > { %744 = vst [vmem:[#allocation2 + $0x14] sm:$0x8] %v735_v38  ;;  %v733_v50 = vsel %vm3483_vm10, %v729_v10, %v730_v43  ;;  %v1297_v35 = vrot.slane %v1295_v24, 4  ;;  %vm3484_vm14 = vmmov %vm3481_vm13  ;;  %vm3486_vm13 = vcmask 1043458  }
  0xb4   : > { %v734_v22 = vsel %vm3484_vm14, %v722_v33, %v733_v50  ;;  %v1293_v47 = vpop.permute.xlu0 %1292  ;;  %vm3207_vm15 = vmand %vm3486_vm13, %vm579_vm0  ;;  %vm3489_vm14 = vcmask 1047558   ;;  %v1006_v50 = vld [vmem:[#allocation2 + $0xa4] sm:$0x3] }
  0xb5   : > { %743 = vst [vmem:[#allocation2 + $0xc] sm:$0x88] %v734_v22  ;;  %v1300_v0 = vsel %vm3485_vm3, %v1295_v24, %v1297_v35  ;;  %v1296_v3 = vrot.slane %v1293_v47, 4  ;;  %vm582_vm7 = vmand %vm3489_vm14, %vm581_vm9  ;;  %vm3424_vm9 = vcmask 900096   ;;  %vm3497_vm14 = vnez %v3434_v7 }
  0xb6   : > { %v1307_v25 = vsel %vm3019_vm2, %v1300_v0, %v1306_v37  ;;  %v571_v26 = vpop.permute.xlu1 %570  ;;  %vm3490_vm5 = vmmov %vm3485_vm3  ;;  %v2524_v39 = vld [vmem:[#allocation2 + $0x8] ss:$48 sps:$4 sm:$0xff]  }
  0xb7   : > { %1308 = vst [vmem:[#allocation2 + $0x80] sm:$0x6] %v1307_v25  ;;  %v1298_v6 = vsel %vm3483_vm10, %v1296_v3, %v1297_v35  ;;  %v573_v42 = vrot.slane %v571_v26, 4  ;;  %vm3221_vm0 = vmor %vm582_vm7, %vm3207_vm15  ;;  %vm3495_vm7 = vnez %v3432_v45  ;;  %v969_v35 = vld [vmem:[#allocation2 + $0x6c] sm:$0xcc] }
  0xb8   : > { %v1299_v21 = vsel %vm3490_vm5, %v1293_v47, %v1298_v6  ;;  %v569_v31 = vpop.permute.xlu0 %568  ;;  %vm3493_vm5 = vmmov %vm3483_vm10 }
  0xb9   : > { %v1304_v34 = vsel %vm3048_vm8, %v1299_v21, %v1303_v18  ;;  %v576_v40 = vsel %vm3485_vm3, %v571_v26, %v573_v42  ;;  %v572_v30 = vrot.slane %v569_v31, 4  ;;  %v2519_v52 = vld [vmem:[#allocation2 + $0x4] ss:$48 sps:$4 sm:$0xff]   ;;  %v2521_v5 = vld [vmem:[#allocation2] ss:$48 sps:$4 sm:$0xff]   ;;  %vm3494_vm13 = vmmov %vm3485_vm3 }
  0xba   : > { %1305 = vst [vmem:[#allocation2 + $0x78] sm:$0x66] %v1304_v34  ;;  %v588_v11 = vsel %vm3207_vm15, %v576_v40, %v587_v29  ;;  %v610_v9 = vpop.permute.xlu1 %609  ;;  %1969 = vmatprep.subr.bf16.mxu0 %v2519_v52  ;;  %vm3496_vm10 = vmmov %vm3493_vm5  ;;  %v1003_v26 = vld [vmem:[#allocation2 + $0x9c] sm:$0x33]  ;;  %v2530_v8 = vld [vmem:[#allocation2 + $0x14] ss:$48 sps:$4 sm:$0xff]  }
  0xbb   : > { %589 = vst [vmem:[#allocation2 + $0x68] sm:$0xc] %v588_v11  ;;  %v574_v1 = vsel %vm3493_vm5, %v572_v30, %v573_v42  ;;  %v612_v28 = vrot.slane %v610_v9, 4  ;;  %1970 = vmatpush1.bf16.msra.mxu0 %v2521_v5  ;;  %vm3498_vm3 = vmmov %vm3493_vm5 }
  0xbc   : > { %v575_v51 = vsel %vm3494_vm13, %v569_v31, %v574_v1  ;;  %v608_v57 = vpop.permute.xlu0 %607  ;;  %v2522_v46 = vld [vmem:[#allocation2 + $0xc] ss:$48 sps:$4 sm:$0xff]   ;;  %vm3499_vm5 = vmmov %vm3498_vm3  ;;  %vm3500_vm13 = vcmask 1039360   ;;  %v2528_v20 = vld [vmem:[#allocation2 + $0x10] ss:$48 sps:$4 sm:$0xff]  }
  0xbd   : > { %v585_v49 = vsel %vm3221_vm0, %v575_v51, %v584_v27  ;;  %v616_v61 = vsel %vm3424_vm9, %v610_v9, %v612_v28  ;;  %v611_v14 = vrot.slane %v608_v57, 4  ;;  %2012 = vmatprep.subr.bf16.mxu1 %v2522_v46 }
  0xbe   : > { %586 = vst [vmem:[#allocation2 + $0x60] sm:$0xcc] %v585_v49  ;;  %v623_v17 = vsel %vm3495_vm7, %v616_v61, %v622_v54  ;;  %v961_v13 = vpop.permute.xlu1 %960  ;;  %2013 = vmatpush1.bf16.msra.mxu1 %v2524_v39  ;;  %v2586_v61 = vmov 65535  }
  0xbf   : > { %624 = vst [vmem:[#allocation2 + $0x98] sm:$0x3] %v623_v17  ;;  %v613_v44 = vsel %vm3496_vm10, %v611_v14, %v612_v28  ;;  %v963_v23 = vrot.slane %v961_v13, 4  ;;  %vm3501_vm10 = vmmov %vm3498_vm3 }
  0xc0   : > { %v615_v63 = vsel %vm3424_vm9, %v608_v57, %v613_v44  ;;  %v959_v12 = vpop.permute.xlu0 %958  ;;  %v1516_v57 = vld [vmem:[#allocation2 + $0x5c] sm:$0x1]  ;;  %v1513_v44 = vld [vmem:[#allocation2 + $0x54] sm:$0x11] }
  0xc1   : > { %v620_v43 = vsel %vm3497_vm14, %v615_v63, %v619_v15  ;;  %v966_v33 = vsel %vm3424_vm9, %v961_v13, %v963_v23  ;;  %v962_v2 = vrot.slane %v959_v12, 4 }
  0xc2   : > { %621 = vst [vmem:[#allocation2 + $0x90] sm:$0x33] %v620_v43  ;;  %v973_v38 = vsel %vm3207_vm15, %v966_v33, %v972_v16  ;;  %v995_v10 = vpop.permute.xlu1 %994 }
  0xc3   : > { %974 = vst [vmem:[#allocation2 + $0x74] sm:$0xc] %v973_v38  ;;  %v964_v24 = vsel %vm3498_vm3, %v962_v2, %v963_v23  ;;  %v997_v37 = vrot.slane %v995_v10, 4  ;;  %vm3502_vm3 = vmmov %vm3500_vm13 }
  0xc4   : > { %v965_v22 = vsel %vm3424_vm9, %v959_v12, %v964_v24  ;;  %v993_v47 = vpop.permute.xlu0 %992  ;;  %v1598_v12 = vld [vmem:[#allocation2 + $0x5c] sm:$0xc] }
  0xc5   : > { %v970_v0 = vsel %vm3221_vm0, %v965_v22, %v969_v35  ;;  %v1000_v3 = vsel %vm3424_vm9, %v995_v10, %v997_v37  ;;  %v996_v25 = vrot.slane %v993_v47, 4  ;;  %v1595_v35 = vld [vmem:[#allocation2 + $0x54] sm:$0xcc] }
  0xc6   : > { %971 = vst [vmem:[#allocation2 + $0x6c] sm:$0xcc] %v970_v0  ;;  %v1007_v18 = vsel %vm3495_vm7, %v1000_v3, %v1006_v50  ;;  %v463_v6 = vpop.permute.xlu1 %462  ;;  %vm1930_vm7 = vcmask 1045504  }
  0xc7   : > { %1008 = vst [vmem:[#allocation2 + $0xa4] sm:$0x3] %v1007_v18  ;;  %v998_v42 = vsel %vm3499_vm5, %v996_v25, %v997_v37  ;;  %v467_v21 = vrot.slane %v463_v6, 4  ;;  %vm3503_vm5 = vmmov %vm3502_vm3  ;;  %v3274_v18 = vld [vmem:[%s3401_s1] sm:$0xff]  }
  0xc8   : > { %v999_v29 = vsel %vm3424_vm9, %v993_v47, %v998_v42  ;;  %v461_v31 = vpop.permute.xlu0 %460  ;;  %vm1929_vm9 = vcmask 1044480  }
  0xc9   : > { %v1004_v34 = vsel %vm3497_vm14, %v999_v29, %v1003_v26  ;;  %v473_v40 = vsel %vm3500_vm13, %v463_v6, %v467_v21  ;;  %v466_v30 = vrot.slane %v461_v31, 4  ;;  %vm3504_vm14 = vmmov %vm3501_vm10  ;;  %v1931_v14 = vsel %vm1929_vm9, 4294967295, %v2586_v61 }
  0xca   : > { %1005 = vst [vmem:[#allocation2 + $0x9c] sm:$0x33] %v1004_v34  ;;  %492 = vst [vmem:[#allocation2 + $0x68] sm:$0x1] %v473_v40  ;;  %v866_v52 = vpop.permute.xlu1 %865  ;;  %v3260_v16 = vsel %vm1930_vm7, %v1931_v14, 0  ;;  %vm3509_vm9 = vcmask 900096  }
  0xcb   : > { %v471_v5 = vsel %vm3501_vm10, %v466_v30, %v467_v21  ;;  %v870_v11 = vrot.slane %v866_v52, 4  ;;  %vm3505_vm13 = vmmov %vm3502_vm3  ;;  %v1171_v21 = vld [vmem:[#allocation2 + $0x50] sm:$0x3]  ;;  %vm3512_vm7 = vcmask 908288  }
  0xcc   : > { %v472_v9 = vsel %vm3502_vm3, %v461_v31, %v471_v5  ;;  %v864_v27 = vpop.permute.xlu0 %863  ;;  %vm3506_vm10 = vmmov %vm3502_vm3 }
  0xcd   : > { %491 = vst [vmem:[#allocation2 + $0x60] sm:$0x11] %v472_v9  ;;  %v876_v1 = vsel %vm3503_vm5, %v866_v52, %v870_v11  ;;  %v869_v54 = vrot.slane %v864_v27, 4  ;;  %vm3507_vm3 = vmmov %vm3504_vm14 }
  0xce   : > { %888 = vst [vmem:[#allocation2 + $0x74] sm:$0x1] %v876_v1  ;;  %v1496_v28 = vpop.permute.xlu1 %1495  ;;  %v1168_v1 = vld [vmem:[#allocation2 + $0x48] sm:$0x33] }
  0xcf   : > { %v874_v51 = vsel %vm3504_vm14, %v869_v54, %v870_v11  ;;  %v1500_v46 = vrot.slane %v1496_v28, 4  ;;  %vm3508_vm14 = vmmov %vm3503_vm5  ;;  %vm3513_vm5 = vnez %v3459_v58 }
  0xd0   : > { %v875_v39 = vsel %vm3505_vm13, %v864_v27, %v874_v51  ;;  %v1494_v49 = vpop.permute.xlu0 %1493  ;;  %vm3514_vm13 = vmmov %vm3507_vm3 }
  0xd1   : > { %887 = vst [vmem:[#allocation2 + $0x6c] sm:$0x11] %v875_v39  ;;  %v1506_v17 = vsel %vm3506_vm10, %v1496_v28, %v1500_v46  ;;  %v1499_v15 = vrot.slane %v1494_v49, 4  ;;  %v2534_v34 = vld [vmem:[#allocation2 + $0x68] ss:$48 sps:$4 sm:$0x3f]   ;;  %vm3516_vm10 = vnez %v3464_v48 }
  0xd2   : > { %v1517_v13 = vsel %vm3056_vm12, %v1506_v17, %v1516_v57  ;;  %v1587_v23 = vpop.permute.xlu1 %1586  ;;  %vm3510_vm12 = vmmov %vm3507_vm3  ;;  %v1940_v9 = vand.u32 %v2534_v34, %v3260_v16  ;;  %v1353_v34 = vld [vmem:[#allocation2 + $0x78] sm:$0xcc] }
  0xd3   : > { %1518 = vst [vmem:[#allocation2 + $0x5c] sm:$0x1] %v1517_v13  ;;  %v1504_v63 = vsel %vm3507_vm3, %v1499_v15, %v1500_v46  ;;  %v1589_v43 = vrot.slane %v1587_v23, 4  ;;  %vm3517_vm3 = vmmov %vm3509_vm9 }
  0xd4   : > { %v1505_v33 = vsel %vm3508_vm14, %v1494_v49, %v1504_v63  ;;  %v1585_v2 = vpop.permute.xlu0 %1584  ;;  %v2525_v38 = vld [vmem:[#allocation2 + $0x64] ss:$48 sps:$4 sm:$0x3f]   ;;  %v2527_v50 = vld [vmem:[#allocation2 + $0x60] ss:$48 sps:$4 sm:$0x3f]   ;;  %vm3518_vm14 = vmmov %vm3510_vm12 }
  0xd5   : > { %v1514_v10 = vsel %vm3093_vm11, %v1505_v33, %v1513_v44  ;;  %v1592_v24 = vsel %vm3509_vm9, %v1587_v23, %v1589_v43  ;;  %v1588_v62 = vrot.slane %v1585_v2, 4  ;;  %v1937_v47 = vand.u32 %v2525_v38, %v3260_v16  ;;  %vm3511_vm11 = vmmov %vm3509_vm9  ;;  %v2537_v5 = vld [vmem:[#allocation2 + $0x74] ss:$48 sps:$4 sm:$0x3f]   ;;  %v1268_v44 = vld [vmem:[#allocation2 + $0x50] sm:$0x8] }
  0xd6   : > { %1515 = vst [vmem:[#allocation2 + $0x54] sm:$0x11] %v1514_v10  ;;  %v1599_v37 = vsel %vm2761_vm4, %v1592_v24, %v1598_v12  ;;  %v1160_v22 = vpop.permute.xlu1 %1159  ;;  %v1934_v25 = vand.u32 %v2527_v50, %v3260_v16  ;;  %vm1925_vm4 = vcmask 220160   ;;  %v1949_v51 = vand.u32 %v2537_v5, %v3260_v16  ;;  %vm3519_vm9 = vmmov %vm3517_vm3 }
  0xd7   : > { %1600 = vst [vmem:[#allocation2 + $0x5c] sm:$0xc] %v1599_v37  ;;  %v1590_v0 = vsel %vm3510_vm12, %v1588_v62, %v1589_v43  ;;  %v1162_v3 = vrot.slane %v1160_v22, 4  ;;  %1971 = vmatprep.subr.bf16.mxu0 %v1937_v47  ;;  %v1265_v43 = vld [vmem:[#allocation2 + $0x48] sm:$0x88]  ;;  %vm3520_vm12 = vnez %v3471_v56 }
  0xd8   : > { %v1591_v26 = vsel %vm3511_vm11, %v1585_v2, %v1590_v0  ;;  %v1158_v4 = vpop.permute.xlu0 %1157  ;;  %v2531_v6 = vld [vmem:[#allocation2 + $0x6c] ss:$48 sps:$4 sm:$0x3f]   ;;  %1972 = vmatpush1.bf16.msra.mxu0 %v1934_v25  ;;  %v2535_v27 = vld [vmem:[#allocation2 + $0x70] ss:$48 sps:$4 sm:$0x3f]   ;;  %vm3521_vm11 = vmmov %vm3514_vm13 }
  0xd9   : > { %v1596_v42 = vsel %vm2785_vm6, %v1591_v26, %v1595_v35  ;;  %v1165_v29 = vsel %vm3512_vm7, %v1160_v22, %v1162_v3  ;;  %v1161_v31 = vrot.slane %v1158_v4, 4  ;;  %2055 = vmatprep.subr.bf16.mxu0 %v2530_v8  ;;  %v1943_v52 = vand.u32 %v2531_v6, %v3260_v16  ;;  %vm3515_vm6 = vmmov %vm3512_vm7  ;;  %v1699_v22 = vld [vmem:[#allocation2 + $0x8c] sm:$0x6]  ;;  %v1696_v0 = vld [vmem:[#allocation2 + $0x84] sm:$0x66] }
  0xda   : > { %1597 = vst [vmem:[#allocation2 + $0x54] sm:$0xcc] %v1596_v42  ;;  %v1172_v40 = vsel %vm3513_vm5, %v1165_v29, %v1171_v21  ;;  %v1097_v30 = vpop.permute.xlu1 %1096  ;;  %v1946_v17 = vand.u32 %v2535_v27, %v3260_v16  ;;  %vm3522_vm7 = vcmask 1039360  }
  0xdb   : > { %1173 = vst [vmem:[#allocation2 + $0x50] sm:$0x3] %v1172_v40  ;;  %v1163_v11 = vsel %vm3514_vm13, %v1161_v31, %v1162_v3  ;;  %2014 = vmatprep.subr.bf16.mxu1 %v1943_v52  ;;  %2434 = vmatmul.mubr.msk.bf16.vlgmr.msra.gmra.mrb[0].mxu0 %vm1925_vm4, %v3274_v18  ;;  %v1104_v13 = vrot.slane %v1097_v30, 4  ;;  %vm3523_vm13 = vmmov %vm3522_vm7  ;;  %v1356_v40 = vld [vmem:[#allocation2 + $0x80] sm:$0xc] }
  0xdc   : > { %v1164_v54 = vsel %vm3515_vm6, %v1158_v4, %v1163_v11  ;;  %v2494_v28 = vpop.permute.xlu0 %2493  ;;  %2015 = vmatpush1.bf16.msra.mxu1 %v1940_v9  ;;  %2056 = vmatpush1.bf16.msra.mxu0 %v2528_v20  ;;  %vm3524_vm6 = vmmov %vm3521_vm11 }
  0xdd   : > { %v1169_v57 = vsel %vm3516_vm10, %v1164_v54, %v1168_v1  ;;  %v2496_v46 = vunpack.i.h.bf16 %v2494_v28  ;;  %v2495_v39 = vunpack.i.l.bf16 %v2494_v28  ;;  %2057 = vmatprep.subr.bf16.mxu0 %v1949_v51  ;;  %2087 = vmatprep.mubr.bf16.mxu0 %v2585_v60  ;;  %v1390_v1 = vld [vmem:[#allocation2 + $0xb0] sm:$0x3]  ;;  %v1387_v28 = vld [vmem:[#allocation2 + $0xa8] sm:$0x33] }
  0xde   : > { %1170 = vst [vmem:[#allocation2 + $0x48] sm:$0x33] %v1169_v57  ;;  %v1686_v49 = vpop.permute.xlu1 %1685 }
  0xdf   : > { %v1252_v61 = vrot.slane %v2496_v46, 4  ;;  %v1251_v14 = vrot.slane %v2495_v39, 4  ;;  %2435 = vmatmul.mubr.msk.bf16.vlgmr.msra.gmra.mrb[0].mxu1 %vm1925_vm4, %v3274_v18  ;;  %v1689_v35 = vrot.slane %v1686_v49, 4 }
  0xe0   : > { %v1099_v15 = vpop.permute.xlu0 %1098  ;;  %2058 = vmatpush1.bf16.msra.mxu0 %v1946_v17  ;;  %2130 = vmatprep.mubr.bf16.mxu1 %v2585_v60 }
  0xe1   : > { %v1257_v23 = vsel %vm3517_vm3, %v2496_v46, %v1252_v61  ;;  %v1255_v63 = vsel %vm3518_vm14, %v1251_v14, %v1252_v61  ;;  %v1105_v12 = vrot.slane %v1099_v15, 4  ;;  %vm3525_vm3 = vcmask 908288  }
  0xe2   : > { %v1269_v33 = vsel %vm3164_vm1, %v1257_v23, %v1268_v44  ;;  %v1256_v2 = vsel %vm3519_vm9, %v2495_v39, %v1255_v63  ;;  %v1343_v38 = vpop.permute.xlu1 %1342  ;;  %vm3526_vm14 = vmmov %vm3525_vm3 }
  0xe3   : > { %1270 = vst [vmem:[#allocation2 + $0x50] sm:$0x8] %v1269_v33  ;;  %v1266_v10 = vsel %vm3520_vm12, %v1256_v2, %v1265_v43  ;;  %v1108_v24 = vsel %vm3521_vm11, %v1104_v13, %v1105_v12  ;;  %v1110_v62 = vsel %vm3522_vm7, %v1099_v15, %v1105_v12  ;;  %2436 = vmatmul.mubr.msk.bf16.vlgmr.msra.gmra.mrb[4].mxu0 %vm1925_vm4, %v3274_v18  ;;  %v1346_v42 = vrot.slane %v1343_v38, 4  ;;  %vm3527_vm9 = vmmov %vm3524_vm6  ;;  %v1465_v33 = vld [vmem:[#allocation2 + $0x2c] sm:$0x6] }
  0xe4   : > { %1267 = vst [vmem:[#allocation2 + $0x48] sm:$0x88] %v1266_v10  ;;  %v1109_v50 = vsel %vm3523_vm13, %v1097_v30, %v1108_v24  ;;  %1119 = vst [vmem:[#allocation2 + $0x20] sm:$0x8] %v1110_v62  ;;  %v1688_v37 = vpop.permute.xlu0 %1687  ;;  %2173 = vmatprep.mubr.bf16.mxu0 %v2585_v60 }
  0xe5   : > { %1118 = vst [vmem:[#allocation2 + $0x18] sm:$0x88] %v1109_v50  ;;  %v1690_v47 = vrot.slane %v1688_v37, 4  ;;  %vm3528_vm11 = vmmov %vm3525_vm3 }
  0xe6   : > { %v1377_v3 = vpop.permute.xlu1 %1376  ;;  %vm3529_vm7 = vmmov %vm3525_vm3 }
  0xe7   : > { %v1691_v25 = vsel %vm3524_vm6, %v1689_v35, %v1690_v47  ;;  %v1693_v8 = vsel %vm3525_vm3, %v1688_v37, %v1690_v47  ;;  %v1380_v32 = vrot.slane %v1377_v3, 4  ;;  %vm3534_vm3 = vnez %v3434_v7 }
  0xe8   : > { %v1692_v26 = vsel %vm3526_vm14, %v1686_v49, %v1691_v25  ;;  %v1700_v4 = vsel %vm3019_vm2, %v1693_v8, %v1699_v22  ;;  %v1345_v6 = vpop.permute.xlu0 %1344  ;;  %vm3530_vm2 = vmmov %vm3524_vm6  ;;  %vm3533_vm6 = vnez %v3432_v45 }
  0xe9   : > { %v1697_v21 = vsel %vm3048_vm8, %v1692_v26, %v1696_v0  ;;  %1701 = vst [vmem:[#allocation2 + $0x8c] sm:$0x6] %v1700_v4  ;;  %v1347_v29 = vrot.slane %v1345_v6, 4  ;;  %vm3531_vm8 = vcmask 900096   ;;  %vm3535_vm14 = vmmov %vm3530_vm2 }
  0xea   : > { %1698 = vst [vmem:[#allocation2 + $0x84] sm:$0x66] %v1697_v21  ;;  %v1248_v31 = vpop.permute.xlu1 %1247  ;;  %vm3532_vm13 = vmmov %vm3531_vm8 }
  0xeb   : > { %v1348_v30 = vsel %vm3527_vm9, %v1346_v42, %v1347_v29  ;;  %v1350_v52 = vsel %vm3528_vm11, %v1345_v6, %v1347_v29  ;;  %v1253_v14 = vrot.slane %v1248_v31, 4  ;;  %vm3536_vm9 = vmmov %vm3531_vm8  ;;  %v1661_v6 = vld [vmem:[#allocation2 + $0x5c] sm:$0x8]  ;;  %v1561_v29 = vld [vmem:[#allocation2 + $0x54] sm:$0x33] }
  0xec   : > { %v1349_v5 = vsel %vm3529_vm7, %v1343_v38, %v1348_v30  ;;  %v1357_v53 = vsel %vm3207_vm15, %v1350_v52, %v1356_v40  ;;  %v1379_v11 = vpop.permute.xlu0 %1378  ;;  %v2538_v20 = vld [vmem:[#allocation2 + $0x18] ss:$48 sps:$4 sm:$0xff]   ;;  %v2540_v9 = vld [vmem:[#allocation2 + $0x1c] ss:$48 sps:$4 sm:$0xff]   ;;  %vm3537_vm11 = vmmov %vm3531_vm8 }
  0xed   : > { %v1354_v27 = vsel %vm3221_vm0, %v1349_v5, %v1353_v34  ;;  %1358 = vst [vmem:[#allocation2 + $0x80] sm:$0xc] %v1357_v53  ;;  %v1381_v54 = vrot.slane %v1379_v11, 4  ;;  %2098 = vmatprep.subr.bf16.mxu1 %v2540_v9  ;;  %v1462_v38 = vld [vmem:[#allocation2 + $0x24] sm:$0x66]  ;;  %vm3538_vm7 = vmmov %vm3530_vm2 }
  0xee   : > { %1355 = vst [vmem:[#allocation2 + $0x78] sm:$0xcc] %v1354_v27  ;;  %v1452_v51 = vpop.permute.xlu1 %1451  ;;  %2099 = vmatpush1.bf16.msra.mxu1 %v2538_v20  ;;  %v1658_v30 = vld [vmem:[#allocation2 + $0x54] sm:$0x88] }
  0xef   : > { %v1382_v57 = vsel %vm3530_vm2, %v1380_v32, %v1381_v54  ;;  %v1384_v46 = vsel %vm3531_vm8, %v1379_v11, %v1381_v54  ;;  %v1455_v43 = vrot.slane %v1452_v51, 4  ;;  %vm3539_vm2 = vcmask 1039360  }
  0xf0   : > { %v1383_v39 = vsel %vm3532_vm13, %v1377_v3, %v1382_v57  ;;  %v1391_v49 = vsel %vm3533_vm6, %v1384_v46, %v1390_v1  ;;  %v1250_v61 = vpop.permute.xlu0 %1249  ;;  %vm3540_vm8 = vmmov %vm3539_vm2  ;;  %vm3541_vm13 = vnez %v3438_v41 }
  0xf1   : > { %v1388_v17 = vsel %vm3534_vm3, %v1383_v39, %v1387_v28  ;;  %1392 = vst [vmem:[#allocation2 + $0xb0] sm:$0x3] %v1391_v49  ;;  %v1254_v15 = vrot.slane %v1250_v61, 4  ;;  %v1749_v39 = vld [vmem:[#allocation2 + $0x8c] sm:$0xc] }
  0xf2   : > { %1389 = vst [vmem:[#allocation2 + $0xa8] sm:$0x33] %v1388_v17  ;;  %v1551_v13 = vpop.permute.xlu1 %1550 }
  0xf3   : > { %v1258_v44 = vsel %vm3535_vm14, %v1253_v14, %v1254_v15  ;;  %v1260_v23 = vsel %vm3536_vm9, %v1250_v61, %v1254_v15  ;;  %v1554_v35 = vrot.slane %v1551_v13, 4  ;;  %vm3542_vm14 = vnez %v3440_v19  ;;  %v1783_v15 = vld [vmem:[#allocation2 + $0xbc] sm:$0x3] }
  0xf4   : > { %v1259_v63 = vsel %vm3537_vm11, %v1248_v31, %v1258_v44  ;;  %1272 = vst [vmem:[#allocation2 + $0x80] sm:$0x1] %v1260_v23  ;;  %v1454_v12 = vpop.permute.xlu0 %1453  ;;  %vm3543_vm11 = vmmov %vm3538_vm7  ;;  %v1564_v31 = vld [vmem:[#allocation2 + $0x5c] sm:$0x3]  ;;  %v1746_v44 = vld [vmem:[#allocation2 + $0x84] sm:$0xcc] }
  0xf5   : > { %1271 = vst [vmem:[#allocation2 + $0x78] sm:$0x11] %v1259_v63  ;;  %v1456_v2 = vrot.slane %v1454_v12, 4 }
  0xf6   : > { %v2499_v10 = vpop.permute.xlu1 %2498 }
  0xf7   : > { %v1457_v24 = vsel %vm3538_vm7, %v1455_v43, %v1456_v2  ;;  %v1459_v62 = vsel %vm3539_vm2, %v1454_v12, %v1456_v2  ;;  %v2501_v50 = vunpack.i.h.bf16 %v2499_v10  ;;  %v2500_v37 = vunpack.i.l.bf16 %v2499_v10  ;;  %v1780_v2 = vld [vmem:[#allocation2 + $0xb4] sm:$0x33] }
  0xf8   : > { %v1458_v22 = vsel %vm3540_vm8, %v1452_v51, %v1457_v24  ;;  %v1466_v47 = vsel %vm3541_vm13, %v1459_v62, %v1465_v33  ;;  %v1553_v0 = vpop.permute.xlu0 %1552  ;;  %vm3544_vm2 = vcmask 908288   ;;  %vm3545_vm8 = vmmov %vm3536_vm9 }
  0xf9   : > { %v1463_v3 = vsel %vm3542_vm14, %v1458_v22, %v1462_v38  ;;  %1467 = vst [vmem:[#allocation2 + $0x2c] sm:$0x6] %v1466_v47  ;;  %v1645_v25 = vrot.slane %v2501_v50, 4  ;;  %v1644_v8 = vrot.slane %v2500_v37, 4  ;;  %v1555_v26 = vrot.slane %v1553_v0, 4  ;;  %vm3546_vm13 = vmmov %vm3544_vm2 }
  0xfa   : > { %1464 = vst [vmem:[#allocation2 + $0x24] sm:$0x66] %v1463_v3  ;;  %v1492_v4 = vpop.permute.xlu1 %1491 }
  0xfb   : > { %v1650_v42 = vsel %vm3536_vm9, %v2501_v50, %v1645_v25  ;;  %v1648_v21 = vsel %vm3543_vm11, %v1644_v8, %v1645_v25  ;;  %v1556_v41 = vsel %vm3538_vm7, %v1554_v35, %v1555_v26  ;;  %v1558_v34 = vsel %vm3544_vm2, %v1553_v0, %v1555_v26  ;;  %vm3552_vm9 = vmmov %vm3545_vm8  ;;  %v2545_v50 = vld [vmem:[#allocation2 + $0x20] ss:$48 sps:$4 sm:$0xff]  }
  0xfc   : > { %v1662_v19 = vsel %vm3164_vm1, %v1650_v42, %v1661_v6  ;;  %v1649_v40 = vsel %vm3545_vm8, %v2500_v37, %v1648_v21  ;;  %v1557_v52 = vsel %vm3546_vm13, %v1551_v13, %v1556_v41  ;;  %v1565_v5 = vsel %vm3513_vm5, %v1558_v34, %v1564_v31  ;;  %v1490_v53 = vpop.permute.xlu0 %1489  ;;  %v2542_v11 = vld [vmem:[#allocation2 + $0x78] ss:$48 sps:$4 sm:$0x3f]   ;;  %v2544_v27 = vld [vmem:[#allocation2 + $0x7c] ss:$48 sps:$4 sm:$0x3f]   ;;  %vm3548_vm5 = vmmov %vm3538_vm7 }
  0xfd   : > { %1663 = vst [vmem:[#allocation2 + $0x5c] sm:$0x8] %v1662_v19  ;;  %v1659_v20 = vsel %vm3520_vm12, %v1649_v40, %v1658_v30  ;;  %v1562_v9 = vsel %vm3516_vm10, %v1557_v52, %v1561_v29  ;;  %1566 = vst [vmem:[#allocation2 + $0x5c] sm:$0x3] %v1565_v5  ;;  %v1498_v59 = vrot.slane %v1492_v4, 4  ;;  %v1497_v32 = vrot.slane %v1490_v53, 4 }
  0xfe   : > { %1660 = vst [vmem:[#allocation2 + $0x54] sm:$0x88] %v1659_v20  ;;  %1563 = vst [vmem:[#allocation2 + $0x54] sm:$0x33] %v1562_v9  ;;  %v1738_v1 = vpop.permute.xlu1 %1737  ;;  %v1952_v54 = vand.u32 %v2542_v11, %v3260_v16  ;;  %vm3547_vm1 = vcmask 1039360   ;;  %v1955_v56 = vand.u32 %v2544_v27, %v3260_v16 }
  0xff   : > { %v1503_v58 = vsel %vm3547_vm1, %v1492_v4, %v1498_v59  ;;  %v1501_v28 = vsel %vm3548_vm5, %v1497_v32, %v1498_v59  ;;  %v1740_v51 = vrot.slane %v1738_v1, 4  ;;  %vm3549_vm12 = vmmov %vm3547_vm1  ;;  %v2551_v25 = vld [vmem:[#allocation2 + $0x80] ss:$48 sps:$4 sm:$0x3f]  }
 0x100   : > { %1512 = vst [vmem:[#allocation2 + $0x2c] sm:$0x8] %v1503_v58  ;;  %v1502_v48 = vsel %vm3549_vm12, %v1490_v53, %v1501_v28  ;;  %v1736_v57 = vpop.permute.xlu0 %1735  ;;  %vm3550_vm10 = vmmov %vm3545_vm8  ;;  %2100 = vmatprep.subr.bf16.mxu1 %v1955_v56  ;;  %v1958_v4 = vand.u32 %v2551_v25, %v3260_v16 }
 0x101   : > { %1511 = vst [vmem:[#allocation2 + $0x24] sm:$0x88] %v1502_v48  ;;  %v1743_v46 = vsel %vm3550_vm10, %v1738_v1, %v1740_v51  ;;  %v1739_v49 = vrot.slane %v1736_v57, 4  ;;  %2101 = vmatpush1.bf16.msra.mxu1 %v1952_v54  ;;  %vm3551_vm14 = vmmov %vm3548_vm5 }
 0x102   : > { %v1750_v61 = vsel %vm3207_vm15, %v1743_v46, %v1749_v39  ;;  %v1772_v14 = vpop.permute.xlu1 %1771  ;;  %vm3553_vm11 = vmmov %vm3545_vm8 }
 0x103   : > { %1751 = vst [vmem:[#allocation2 + $0x8c] sm:$0xc] %v1750_v61  ;;  %v1741_v17 = vsel %vm3551_vm14, %v1739_v49, %v1740_v51  ;;  %v1774_v13 = vrot.slane %v1772_v14, 4  ;;  %vm3554_vm15 = vmmov %vm3548_vm5 }
 0x104   : > { %v1742_v23 = vsel %vm3552_vm9, %v1736_v57, %v1741_v17  ;;  %v1770_v63 = vpop.permute.xlu0 %1769  ;;  %2437 = vmatmul.mubr.msk.bf16.vlgmr.msra.gmra.mrb[4].mxu1 %vm1925_vm4, %v3274_v18  ;;  %vm3555_vm7 = vmmov %vm3545_vm8 }
 0x105   : > { %v1747_v12 = vsel %vm3221_vm0, %v1742_v23, %v1746_v44  ;;  %v1777_v43 = vsel %vm3553_vm11, %v1772_v14, %v1774_v13  ;;  %v1773_v33 = vrot.slane %v1770_v63, 4  ;;  %2216 = vmatprep.mubr.bf16.mxu1 %v2585_v60  ;;  %vm3556_vm0 = vmmov %vm3555_vm7 }
 0x106   : > { %1748 = vst [vmem:[#allocation2 + $0x84] sm:$0xcc] %v1747_v12  ;;  %v1784_v36 = vsel %vm3533_vm6, %v1777_v43, %v1783_v15  ;;  %v1643_v38 = vpop.permute.xlu1 %1642  ;;  %vm3557_vm6 = vmmov %vm3548_vm5 }
 0x107   : > { %1785 = vst [vmem:[#allocation2 + $0xbc] sm:$0x3] %v1784_v36  ;;  %v1775_v10 = vsel %vm3554_vm15, %v1773_v33, %v1774_v13  ;;  %v1647_v24 = vrot.slane %v1643_v38, 4  ;;  %v2550_v0 = vld [vmem:[#allocation2 + $0x2c] ss:$48 sps:$4 sm:$0xff]   ;;  %vm3558_vm2 = vmmov %vm3556_vm0 }
 0x108   : > { %v1776_v55 = vsel %vm3555_vm7, %v1770_v63, %v1775_v10  ;;  %v1641_v62 = vpop.permute.xlu0 %1640  ;;  %v2547_v37 = vld [vmem:[#allocation2 + $0x24] ss:$48 sps:$4 sm:$0xff]   ;;  %v2548_v47 = vld [vmem:[#allocation2 + $0x28] ss:$48 sps:$4 sm:$0xff]   ;;  %2184 = vmatprep.subr.bf16.mxu1 %v2550_v0 }
 0x109   : > { %v1781_v35 = vsel %vm3534_vm3, %v1776_v55, %v1780_v2  ;;  %v1653_v22 = vsel %vm3556_vm0, %v1643_v38, %v1647_v24  ;;  %v1646_v45 = vrot.slane %v1641_v62, 4  ;;  %2141 = vmatprep.subr.bf16.mxu0 %v2547_v37  ;;  %2185 = vmatpush1.bf16.msra.mxu1 %v2548_v47 }
 0x10a   : > { %1782 = vst [vmem:[#allocation2 + $0xb4] sm:$0x33] %v1781_v35  ;;  %1665 = vst [vmem:[#allocation2 + $0x8c] sm:$0x1] %v1653_v22  ;;  %2142 = vmatpush1.bf16.msra.mxu0 %v2545_v50 }
 0x10b   : > { %v1651_v60 = vsel %vm3557_vm6, %v1646_v45, %v1647_v24 }
 0x10c   : > { %v1652_v3 = vsel %vm3558_vm2, %v1641_v62, %v1651_v60 }
 0x10d   : > { %1664 = vst [vmem:[#allocation2 + $0x84] sm:$0x11] %v1652_v3 }
 0x111   : > { %v2556_v26 = vld [vmem:[#allocation2 + $0x8c] ss:$48 sps:$4 sm:$0x3f]  }
 0x112   : > { %v1967_v21 = vand.u32 %v2556_v26, %v3260_v16 }
 0x114   : > { %v2553_v8 = vld [vmem:[#allocation2 + $0x84] ss:$48 sps:$4 sm:$0x3f]   ;;  %v2554_v7 = vld [vmem:[#allocation2 + $0x88] ss:$48 sps:$4 sm:$0x3f]   ;;  %2186 = vmatprep.subr.bf16.mxu1 %v1967_v21 }
 0x115   : > { %v1961_v6 = vand.u32 %v2553_v8, %v3260_v16  ;;  %v1964_v42 = vand.u32 %v2554_v7, %v3260_v16 }
 0x117   : > { %2143 = vmatprep.subr.bf16.mxu0 %v1961_v6  ;;  %2187 = vmatpush1.bf16.msra.mxu1 %v1964_v42  ;;  %v2255_v36 = vpop.permute.xlu1 %2254 }
 0x118   : > { %2144 = vmatpush1.bf16.msra.mxu0 %v1958_v4 }
 0x119   : > { %v2250_v56 = vpop.permute.xlu0 %2249 }
 0x11a   : > { %2439 = vmatmul.mubr.msk.bf16.vlgmr.msra.gmra.mrb[8].mxu1 %vm1925_vm4, %v3274_v18 }
 0x11b   : > { %2438 = vmatmul.mubr.msk.bf16.vlgmr.msra.gmra.mrb[8].mxu0 %vm1925_vm4, %v3274_v18 }
 0x1ae   : > { %v2003_v29 = vpop.f32.mrb[0].mxu0 }
 0x1af   : > { %v2005_v31 = vpop.f32.mrb[1].mxu0 }
 0x1b0   : > { %v2007_v41 = vpop.f32.mrb[2].mxu0 }
 0x1b1   : > { %v2009_v34 = vpop.f32.mrb[3].mxu0 }
 0x1b2   : > { %v2046_v19 = vpop.f32.mrb[0].mxu1 }
 0x1b3   : > { %v2048_v40 = vpop.f32.mrb[1].mxu1 }
 0x1b4   : > { %v2227_v30 = vmax.f32 %v2003_v29, %v2048_v40  ;;  %v2050_v52 = vpop.f32.mrb[2].mxu1 }
 0x1b5   : > { %v2052_v5 = vpop.f32.mrb[3].mxu1 }
 0x1b6   : > { %v2089_v16 = vpop.f32.mrb[4].mxu0  ;;  %v2230_v53 = vmax.f32 %v2007_v41, %v2052_v5 }
 0x1b7   : > { %v2228_v11 = vmax.f32 %v2005_v31, %v2089_v16  ;;  %v2091_v20 = vpop.f32.mrb[5].mxu0 }
 0x1b8   : > { %v2229_v9 = vmax.f32 %v2046_v19, %v2091_v20  ;;  %v2093_v59 = vpop.f32.mrb[6].mxu0 }
 0x1b9   : > { %v2231_v32 = vmax.f32 %v2009_v34, %v2093_v59  ;;  %v2095_v27 = vpop.f32.mrb[7].mxu0 }
 0x1ba   : > { %v2232_v1 = vmax.f32 %v2050_v52, %v2095_v27 }
 0x1d7   : > { %v2132_v54 = vpop.f32.mrb[4].mxu1 }
 0x1d8   : > { %v2134_v18 = vpop.f32.mrb[5].mxu1 }
 0x1d9   : > { %v2136_v58 = vpop.f32.mrb[6].mxu1 }
 0x1da   : > { %v2138_v28 = vpop.f32.mrb[7].mxu1 }
 0x1ed   : > { %v2218_v48 = vpop.f32.mrb[8].mxu1 }
 0x1ee   : > { %v2175_v51 = vpop.f32.mrb[8].mxu0  ;;  %v2234_v46 = vmax.f32 %v2134_v18, %v2218_v48  ;;  %v2220_v49 = vpop.f32.mrb[9].mxu1 }
 0x1ef   : > { %v2177_v57 = vpop.f32.mrb[9].mxu0  ;;  %v2235_v14 = vmax.f32 %v2175_v51, %v2220_v49  ;;  %v2222_v17 = vpop.f32.mrb[10].mxu1 }
 0x1f0   : > { %v2233_v39 = vmax.f32 %v2132_v54, %v2177_v57  ;;  %v2179_v61 = vpop.f32.mrb[10].mxu0  ;;  %v2240_v13 = vmax.f32 %v2228_v11, %v2234_v46  ;;  %v2237_v23 = vmax.f32 %v2138_v28, %v2222_v17  ;;  %v2224_v12 = vpop.f32.mrb[11].mxu1 }
 0x1f1   : > { %v2181_v15 = vpop.f32.mrb[11].mxu0  ;;  %v2241_v43 = vmax.f32 %v2229_v9, %v2235_v14  ;;  %v2238_v33 = vmax.f32 %v2179_v61, %v2224_v12 }
 0x1f2   : > { %v2239_v44 = vmax.f32 %v2227_v30, %v2233_v39  ;;  %v2236_v63 = vmax.f32 %v2136_v58, %v2181_v15  ;;  %v2243_v2 = vmax.f32 %v2231_v32, %v2237_v23  ;;  %v2258_v24 = vadd.f32 %v2250_v56, %v2240_v13 }
 0x1f3   : > { %v2244_v55 = vmax.f32 %v2232_v1, %v2238_v33  ;;  %v2259_v62 = vadd.f32 %v2250_v56, %v2241_v43 }
 0x1f4   : > { %v2242_v38 = vmax.f32 %v2230_v53, %v2236_v63  ;;  %v2257_v10 = vadd.f32 %v2250_v56, %v2239_v44  ;;  %v2264_v37 = vmax.f32 %v2258_v24, 0.0  ;;  %v2261_v22 = vadd.f32 %v2255_v36, %v2243_v2 }
 0x1f5   : > { %v2265_v45 = vmax.f32 %v2259_v62, 0.0  ;;  %v2262_v47 = vadd.f32 %v2255_v36, %v2244_v55 }
 0x1f6   : > { %v2263_v50 = vmax.f32 %v2257_v10, 0.0  ;;  %v2260_v35 = vadd.f32 %v2255_v36, %v2242_v38  ;;  %v2267_v3 = vmax.f32 %v2261_v22, 0.0 }
 0x1f7   : > { %v2448_v25 = vpack.c.bf16 %v2265_v45, %v2265_v45  ;;  %v2268_v8 = vmax.f32 %v2262_v47, 0.0 }
 0x1f8   : > { %v2447_v0 = vpack.c.bf16 %v2264_v37, %v2263_v50  ;;  %v2266_v60 = vmax.f32 %v2260_v35, 0.0 }
 0x1f9   : > { %2290 = vst [vmem:[%s199_s5 + $0x8] sm:$0xf] %v2448_v25  ;;  %v2450_v26 = vpack.c.bf16 %v2268_v8, %v2268_v8 }
 0x1fa   : > { %2289 = vst [vmem:[%s199_s5] sm:$0xff] %v2447_v0  ;;  %v2449_v7 = vpack.c.bf16 %v2267_v3, %v2266_v60 }
 0x1fb   : > { %2292 = vst [vmem:[%s199_s5 + $0x14] sm:$0xf] %v2450_v26 }
 0x1fc   : > { %2291 = vst [vmem:[%s199_s5 + $0xc] sm:$0xff] %v2449_v7 }
 0x1fd PF: > { %s13_s14 = sadd.s32 1, %s2579_s14   ;;  %s3559_s12 = smov %s2575_s13 }
 0x1fe   : > { %p10_p5 = scmp.ge.s32.totalorder %s13_s14, 4   ;;  %s3560_s13 = smov %s3562_s15 }
 0x200   :  { %12 = sbr.rel (!%p10_p5) target bundleno = 2 (0x2), region = 65 }

// kernel: brain_tumor_net.5
= control target key start
LH: loop header
LB: loop body
LE: loop exit
PB: predicated region body
PF: predicated region fallthrough
CT: control target
= control target key end

     0   :  { %s1519_s15 = smov 0   ;;  %s1521_s16 = smov 0   ;;  %s1670_s0 = inlined_call_operand.vmem [shape: bf16[2,2048], index: 0, kind: input, shape index: {}]   ;;  %s1671_s1 = inlined_call_operand.vmem [shape: bf16[128,2048], index: 1, kind: input, shape index: {}]   ;;  %s1672_s2 = inlined_call_operand.vmem [shape: f32[2,1,64], index: 2, kind: input, shape index: {}]   ;;  %s1673_s3 = inlined_call_operand.vmem [shape: f32[128,4], index: 3, kind: input, shape index: {}]   ;;  %s1674_s4 = inlined_call_operand.vmem [shape: f32[2,2,4], index: 4, kind: output, shape index: {}]  }
   0x1   :  { %s1523_s17 = smov 0  }
   0x2 LB: > { %s26_s18 = sadd.s32 1, %s1484_s16  ;;  %p1320_p0 = scmp.ge.s32.totalorder %s1488_s17, 1  ;;  %s1488_s17 = sphi %s1523_s17, %s14_s17   ;;  %s1484_s16 = sphi %s1521_s16, %s1676_s16   ;;  %s1480_s15 = sphi %s1519_s15, %s1675_s15  }
   0x3   : > { %p28_p1 = scmp.ge.s32.totalorder %s26_s18, 2  ;;  %p212_p2 = scmp.lt.s32.totalorder %s1488_s17, 3 }
   0x5   : > { %s1678_s18 = smov (%p28_p1, %s26_s18), 0  ;;  %p213_p3 = pnand %p1320_p0, %p212_p2 }
   0x6   : > { %s1321_s19 = sshll.u32 (!%p213_p3), %s1480_s15, 3  ;;  %v364_v0 = vlaneseq (!%p213_p3)  ;;  %v1490_v1 = vmov (!%p213_p3), 1966171168   ;;  %v292_v5 = vld [vmem:[%s1670_s0] sm:$0xff] (!%p213_p3)  ;;  %vm289_vm0 = vcmask (!%p213_p3), 517120   ;;  %vm1493_vm1 = vmmov (!%p213_p3), 0  }
   0x7   : > { %216 = sbr.rel (%p213_p3) target bundleno = 592 (0x250), region = 36  ;;  %p261_p4 = scmp.lt.s32.totalorder (!%p213_p3), %s1321_s19, 15  ;;  %v362_v2 = vunpack.c.l.s4 (!%p213_p3), %v1490_v1  ;;  %v360_v41 = vcombine.high (!%p213_p3), %v292_v5, %v292_v5  ;;  %vm1138_vm2 = vcmask (!%p213_p3), 523264   ;;  %vm1212_vm3 = vcmask (!%p213_p3), 25600  }
   0x8   : > { %v365_v3 = vshrl.u32 (!%p213_p3), %v364_v0, 7  ;;  %p271_p5 = scmp.lt.s32.totalorder (!%p213_p3), %s1480_s15, 1 }
   0x9   : > { %v363_v4 = vunpack.c.0.s8 (!%p213_p3), %v362_v2 }
   0xb   : > { %v1546_v6 = vsub.s32 (!%p213_p3), %v363_v4, %v365_v3 }
   0xd   : > { %v367_v10 = vrot.slane (!%p213_p3), %v292_v5, %v1546_v6  ;;  %v1576_v46 = vrot.slane (!%p213_p3), %v360_v41, %v1546_v6 }
   0xe   : > { %s1680_s19 = smov (!%p261_p4, %s1321_s19), 15  ;;  %s1682_s15 = smov (!%p271_p5, %s1480_s15), 1 }
   0xf   : > { %s1395_s22 = sshll.u32 %s1680_s19, 6  ;;  %v375_v22 = vcombine.high %v367_v10, %v367_v10  ;;  %v376_v51 = vcombine.high %v1576_v46, %v1576_v46  ;;  %v383_v52 = vrot.slane %v367_v10, %v1546_v6  ;;  %s1325_s28 = sshll.u32 %s1680_s19, 3 }
  0x10   : > { %s1551_s25 = scalar_lea.vmem %s1671_s1, %s1395_s22  ;;  %s278_s5 = scalar_lea.vmem %s1673_s3, %s1325_s28 }
  0x11   : > { %v294_v7 = vld [vmem:[%s1551_s25] sm:$0xff]  ;;  %v295_v9 = vld [vmem:[%s1551_s25 + $0x8] sm:$0xff]  ;;  %v397_v25 = vrot.slane %v375_v22, %v1546_v6  ;;  %v296_v42 = vld [vmem:[%s1551_s25 + $0x10] sm:$0xff]  ;;  %v404_v57 = vrot.slane %v376_v51, %v1546_v6  ;;  %v405_v58 = vcombine.high %v383_v52, %v383_v52  ;;  %s273_s8 = scalar_lea.vmem %s1672_s2, %s1682_s15  ;;  %s1326_s9 = sshll.u32 %s1682_s15, 1 }
  0x12   : > { %v302_v8 = vld [vmem:[%s1551_s25 + $0x40] sm:$0xff]  ;;  %v303_v12 = vld [vmem:[%s1551_s25 + $0x48] sm:$0xff]  ;;  %v304_v43 = vld [vmem:[%s1551_s25 + $0x50] sm:$0xff]  ;;  %s283_s12 = scalar_lea.vmem %s1674_s4, %s1326_s9 }
  0x13   : > { %v1328_v11 = vcombine.high %v294_v7, %v302_v8  ;;  %v1327_v13 = vcombine.low %v294_v7, %v302_v8  ;;  %v310_v14 = vld [vmem:[%s1551_s25 + $0x80] sm:$0xff]  ;;  %v1330_v16 = vcombine.high %v295_v9, %v303_v12  ;;  %v1329_v17 = vcombine.low %v295_v9, %v303_v12  ;;  %v311_v19 = vld [vmem:[%s1551_s25 + $0x88] sm:$0xff]  ;;  %826 = vmatprep.mubr.bf16.mxu0 %v397_v25  ;;  %v297_v44 = vld [vmem:[%s1551_s25 + $0x18] sm:$0xff] }
  0x14   : > { %v318_v15 = vld [vmem:[%s1551_s25 + $0xc0] sm:$0xff]  ;;  %v319_v20 = vld [vmem:[%s1551_s25 + $0xc8] sm:$0xff]  ;;  %v407_v29 = vcombine.high %v397_v25, %v397_v25  ;;  %v305_v45 = vld [vmem:[%s1551_s25 + $0x58] sm:$0xff]  ;;  %v1332_v49 = vcombine.high %v296_v42, %v304_v43  ;;  %v1331_v59 = vcombine.low %v296_v42, %v304_v43  ;;  %v408_v63 = vcombine.high %v404_v57, %v404_v57 }
  0x15   : > { %v1344_v18 = vcombine.high %v310_v14, %v318_v15  ;;  %794 = vmatprep.subr.bf16.mxu0 %v1328_v11  ;;  %v1346_v21 = vcombine.high %v311_v19, %v319_v20  ;;  %834 = vmatprep.subr.bf16.mxu1 %v1330_v16  ;;  %v326_v23 = vld [vmem:[%s1551_s25 + $0x100] sm:$0xff]  ;;  %v327_v26 = vld [vmem:[%s1551_s25 + $0x108] sm:$0xff]  ;;  %v1343_v28 = vcombine.low %v310_v14, %v318_v15  ;;  %v312_v53 = vld [vmem:[%s1551_s25 + $0x90] sm:$0xff] }
  0x16   : > { %795 = vmatpush1.bf16.xpose.msra.mxu0 %v1327_v13  ;;  %835 = vmatpush1.bf16.xpose.msra.mxu1 %v1329_v17  ;;  %v334_v24 = vld [vmem:[%s1551_s25 + $0x140] sm:$0xff]  ;;  %v335_v27 = vld [vmem:[%s1551_s25 + $0x148] sm:$0xff]  ;;  %v1345_v30 = vcombine.low %v311_v19, %v319_v20  ;;  %v1334_v50 = vcombine.high %v297_v44, %v305_v45  ;;  %v320_v54 = vld [vmem:[%s1551_s25 + $0xd0] sm:$0xff]  ;;  %v1333_v60 = vcombine.low %v297_v44, %v305_v45 }
  0x17   : > { %796 = vmatprep.subr.bf16.mxu0 %v1344_v18  ;;  %836 = vmatprep.subr.bf16.mxu1 %v1346_v21  ;;  %v1360_v31 = vcombine.high %v326_v23, %v334_v24  ;;  %v1362_v32 = vcombine.high %v327_v26, %v335_v27  ;;  %v342_v33 = vld [vmem:[%s1551_s25 + $0x180] sm:$0xff]  ;;  %v343_v35 = vld [vmem:[%s1551_s25 + $0x188] sm:$0xff]  ;;  %v1359_v37 = vcombine.low %v326_v23, %v334_v24  ;;  %v313_v55 = vld [vmem:[%s1551_s25 + $0x98] sm:$0xff] }
  0x18   : > { %866 = vmatprep.mubr.bf16.mxu1 %v407_v29  ;;  %v350_v34 = vld [vmem:[%s1551_s25 + $0x1c0] sm:$0xff]  ;;  %v351_v36 = vld [vmem:[%s1551_s25 + $0x1c8] sm:$0xff]  ;;  %v1361_v38 = vcombine.low %v327_v26, %v335_v27  ;;  %v321_v56 = vld [vmem:[%s1551_s25 + $0xd8] sm:$0xff]  ;;  %v1348_v61 = vcombine.high %v312_v53, %v320_v54  ;;  %v1347_v4 = vcombine.low %v312_v53, %v320_v54 }
  0x19   : > { %v1376_v39 = vcombine.high %v342_v33, %v350_v34  ;;  %v1378_v40 = vcombine.high %v343_v35, %v351_v36  ;;  %v1375_v47 = vcombine.low %v342_v33, %v350_v34  ;;  %v1377_v48 = vcombine.low %v343_v35, %v351_v36  ;;  %v328_v0 = vld [vmem:[%s1551_s25 + $0x110] sm:$0xff]  ;;  %v329_v2 = vld [vmem:[%s1551_s25 + $0x118] sm:$0xff]  ;;  %v1597_v17 = vld [vmem:[%s1670_s0 + $0x8] sm:$0xff] }
  0x1a   : > { %v1350_v62 = vcombine.high %v313_v55, %v321_v56  ;;  %v336_v1 = vld [vmem:[%s1551_s25 + $0x150] sm:$0xff]  ;;  %v337_v3 = vld [vmem:[%s1551_s25 + $0x158] sm:$0xff]  ;;  %v1349_v5 = vcombine.low %v313_v55, %v321_v56  ;;  %v298_v18 = vld [vmem:[%s1551_s25 + $0x20] sm:$0xff]  ;;  %v1605_v22 = vrot.slane %v1597_v17, %v1546_v6  ;;  %v409_v56 = vcombine.high %v1597_v17, %v1597_v17 }
  0x1b   : > { %v1364_v7 = vcombine.high %v328_v0, %v336_v1  ;;  %v1366_v8 = vcombine.high %v329_v2, %v337_v3  ;;  %v344_v9 = vld [vmem:[%s1551_s25 + $0x190] sm:$0xff]  ;;  %v345_v11 = vld [vmem:[%s1551_s25 + $0x198] sm:$0xff]  ;;  %v1363_v13 = vcombine.low %v328_v0, %v336_v1  ;;  %v1365_v14 = vcombine.low %v329_v2, %v337_v3  ;;  %v306_v19 = vld [vmem:[%s1551_s25 + $0x60] sm:$0xff] }
  0x1c   : > { %v352_v10 = vld [vmem:[%s1551_s25 + $0x1d0] sm:$0xff]  ;;  %v353_v12 = vld [vmem:[%s1551_s25 + $0x1d8] sm:$0xff]  ;;  %v299_v20 = vld [vmem:[%s1551_s25 + $0x28] sm:$0xff]  ;;  %v1336_v25 = vcombine.high %v298_v18, %v306_v19  ;;  %v424_v27 = vcombine.high %v1605_v22, %v1605_v22  ;;  %v1335_v35 = vcombine.low %v298_v18, %v306_v19  ;;  %v432_v3 = vrot.slane %v1605_v22, %v1546_v6 }
  0x1d   : > { %v1380_v15 = vcombine.high %v344_v9, %v352_v10  ;;  %v1382_v16 = vcombine.high %v345_v11, %v353_v12  ;;  %v307_v21 = vld [vmem:[%s1551_s25 + $0x68] sm:$0xff]  ;;  %v1379_v23 = vcombine.low %v344_v9, %v352_v10  ;;  %v1381_v24 = vcombine.low %v345_v11, %v353_v12  ;;  %v314_v29 = vld [vmem:[%s1551_s25 + $0xa0] sm:$0xff]  ;;  %v340_v17 = vld [vmem:[%s1551_s25 + $0x170] sm:$0xff] }
  0x1e   : > { %797 = vmatpush1.bf16.xpose.msra.mxu0 %v1343_v28  ;;  %837 = vmatpush1.bf16.xpose.msra.mxu1 %v1345_v30  ;;  %v1338_v26 = vcombine.high %v299_v20, %v307_v21  ;;  %v390_v28 = vrot.slane %v1576_v46, %v1546_v6  ;;  %v322_v30 = vld [vmem:[%s1551_s25 + $0xe0] sm:$0xff]  ;;  %v446_v33 = vrot.slane %v424_v27, %v1546_v6  ;;  %v331_v42 = vld [vmem:[%s1551_s25 + $0x128] sm:$0xff]  ;;  %v333_v18 = vld [vmem:[%s1551_s25 + $0x138] sm:$0xff] }
  0x1f   : > { %798 = vmatprep.subr.bf16.mxu0 %v1360_v31  ;;  %838 = vmatprep.subr.bf16.mxu1 %v1362_v32  ;;  %v315_v31 = vld [vmem:[%s1551_s25 + $0xa8] sm:$0xff]  ;;  %v1337_v36 = vcombine.low %v299_v20, %v307_v21  ;;  %v338_v41 = vld [vmem:[%s1551_s25 + $0x160] sm:$0xff]  ;;  %v1351_v44 = vcombine.low %v314_v29, %v322_v30  ;;  %v454_v10 = vcombine.high %v432_v3, %v432_v3  ;;  %v341_v19 = vld [vmem:[%s1551_s25 + $0x178] sm:$0xff] }
  0x20   : > { %v323_v32 = vld [vmem:[%s1551_s25 + $0xe8] sm:$0xff]  ;;  %v406_v34 = vcombine.high %v390_v28, %v390_v28  ;;  %v357_v27 = vld [vmem:[%s1551_s25 + $0x1f8] sm:$0xff] }
  0x21   : > { %v339_v43 = vld [vmem:[%s1551_s25 + $0x168] sm:$0xff]  ;;  %v1353_v45 = vcombine.low %v315_v31, %v323_v32 }
  0x22   : > { %v355_v51 = vld [vmem:[%s1551_s25 + $0x1e8] sm:$0xff]  ;;  %v1369_v53 = vcombine.low %v331_v42, %v339_v43 }
  0x26   : > { %799 = vmatpush1.bf16.xpose.msra.mxu0 %v1359_v37  ;;  %839 = vmatpush1.bf16.xpose.msra.mxu1 %v1361_v38  ;;  %v1352_v37 = vcombine.high %v314_v29, %v322_v30  ;;  %v1354_v38 = vcombine.high %v315_v31, %v323_v32  ;;  %v1373_v29 = vcombine.low %v333_v18, %v341_v19 }
  0x27   : > { %800 = vmatprep.subr.bf16.mxu0 %v1376_v39  ;;  %840 = vmatprep.subr.bf16.mxu1 %v1378_v40  ;;  %v456_v39 = vcombine.high %v446_v33, %v446_v33  ;;  %v330_v40 = vld [vmem:[%s1551_s25 + $0x120] sm:$0xff] }
  0x28   : > { %v1368_v46 = vcombine.high %v330_v40, %v338_v41 }
  0x2e   : > { %801 = vmatpush1.bf16.xpose.msra.mxu0 %v1375_v47  ;;  %841 = vmatpush1.bf16.xpose.msra.mxu1 %v1377_v48  ;;  %v1370_v47 = vcombine.high %v331_v42, %v339_v43  ;;  %v346_v48 = vld [vmem:[%s1551_s25 + $0x1a0] sm:$0xff] }
  0x2f   : > { %874 = vmatprep.subr.bf16.mxu0 %v1332_v49  ;;  %914 = vmatprep.subr.bf16.mxu1 %v1334_v50  ;;  %v354_v49 = vld [vmem:[%s1551_s25 + $0x1e0] sm:$0xff]  ;;  %v347_v50 = vld [vmem:[%s1551_s25 + $0x1a8] sm:$0xff] }
  0x30   : > { %v1384_v54 = vcombine.high %v346_v48, %v354_v49  ;;  %v1386_v55 = vcombine.high %v347_v50, %v355_v51  ;;  %v1134_v43 = vld [vmem:[%s278_s5 + $0x20] sm:$0xff] }
  0x35   : > { %827 = vmatmul.mubr.bf16.vlgmr.msra.gmra.mrb[0].mxu0 %v383_v52  ;;  %867 = vmatmul.mubr.bf16.vlgmr.msra.gmra.mrb[0].mxu1 %v405_v58  ;;  %v1367_v52 = vcombine.low %v330_v40, %v338_v41  ;;  %v308_v58 = vld [vmem:[%s1551_s25 + $0x70] sm:$0xff]  ;;  %v1492_v40 = vmov 0.0|0.0   ;;  %v1133_v41 = vld [vmem:[%s278_s5 + $0x18] sm:$0xff] }
  0x36   : > { %875 = vmatpush1.bf16.xpose.msra.mxu0 %v1331_v59  ;;  %915 = vmatpush1.bf16.xpose.msra.mxu1 %v1333_v60  ;;  %v301_v59 = vld [vmem:[%s1551_s25 + $0x38] sm:$0xff] }
  0x37   : > { %876 = vmatprep.subr.bf16.mxu0 %v1348_v61  ;;  %916 = vmatprep.subr.bf16.mxu1 %v1350_v62  ;;  %v309_v60 = vld [vmem:[%s1551_s25 + $0x78] sm:$0xff]  ;;  %v423_v61 = vrot.slane %v409_v56, %v1546_v6  ;;  %v1383_v62 = vcombine.low %v346_v48, %v354_v49 }
  0x38   : > { %906 = vmatprep.mubr.bf16.mxu0 %v404_v57  ;;  %946 = vmatprep.mubr.bf16.mxu1 %v408_v63  ;;  %v300_v57 = vld [vmem:[%s1551_s25 + $0x30] sm:$0xff]  ;;  %v1385_v63 = vcombine.low %v347_v50, %v355_v51  ;;  %v1342_v1 = vcombine.high %v301_v59, %v309_v60  ;;  %v1341_v12 = vcombine.low %v301_v59, %v309_v60 }
  0x39   : > { %v1340_v0 = vcombine.high %v300_v57, %v308_v58  ;;  %v425_v2 = vcombine.high %v423_v61, %v423_v61  ;;  %v1339_v11 = vcombine.low %v300_v57, %v308_v58 }
  0x3b   : > { %v453_v9 = vrot.slane %v425_v2, %v1546_v6 }
  0x3e   : > { %877 = vmatpush1.bf16.xpose.msra.mxu0 %v1347_v4  ;;  %917 = vmatpush1.bf16.xpose.msra.mxu1 %v1349_v5  ;;  %v316_v4 = vld [vmem:[%s1551_s25 + $0xb0] sm:$0xff] }
  0x3f   : > { %878 = vmatprep.subr.bf16.mxu0 %v1364_v7  ;;  %918 = vmatprep.subr.bf16.mxu1 %v1366_v8  ;;  %v324_v5 = vld [vmem:[%s1551_s25 + $0xf0] sm:$0xff]  ;;  %v317_v7 = vld [vmem:[%s1551_s25 + $0xb8] sm:$0xff] }
  0x40   : > { %v325_v8 = vld [vmem:[%s1551_s25 + $0xf8] sm:$0xff]  ;;  %v1355_v20 = vcombine.low %v316_v4, %v324_v5 }
  0x41   : > { %v1357_v21 = vcombine.low %v317_v7, %v325_v8 }
  0x46   : > { %879 = vmatpush1.bf16.xpose.msra.mxu0 %v1363_v13  ;;  %919 = vmatpush1.bf16.xpose.msra.mxu1 %v1365_v14  ;;  %v1356_v13 = vcombine.high %v316_v4, %v324_v5  ;;  %v1358_v14 = vcombine.high %v317_v7, %v325_v8 }
  0x47   : > { %880 = vmatprep.subr.bf16.mxu0 %v1380_v15  ;;  %920 = vmatprep.subr.bf16.mxu1 %v1382_v16  ;;  %v457_v15 = vcombine.high %v453_v9, %v453_v9  ;;  %v332_v16 = vld [vmem:[%s1551_s25 + $0x130] sm:$0xff] }
  0x48   : > { %v1372_v22 = vcombine.high %v332_v16, %v340_v17 }
  0x4e   : > { %881 = vmatpush1.bf16.xpose.msra.mxu0 %v1379_v23  ;;  %921 = vmatpush1.bf16.xpose.msra.mxu1 %v1381_v24  ;;  %v1374_v23 = vcombine.high %v333_v18, %v341_v19  ;;  %v348_v24 = vld [vmem:[%s1551_s25 + $0x1b0] sm:$0xff] }
  0x4f   : > { %954 = vmatprep.subr.bf16.mxu0 %v1336_v25  ;;  %994 = vmatprep.subr.bf16.mxu1 %v1338_v26  ;;  %v356_v25 = vld [vmem:[%s1551_s25 + $0x1f0] sm:$0xff]  ;;  %v349_v26 = vld [vmem:[%s1551_s25 + $0x1b8] sm:$0xff] }
  0x50   : > { %v1388_v30 = vcombine.high %v348_v24, %v356_v25  ;;  %v1390_v31 = vcombine.high %v349_v26, %v357_v27  ;;  %v1387_v32 = vcombine.low %v348_v24, %v356_v25 }
  0x55   : > { %907 = vmatmul.mubr.bf16.vlgmr.msra.gmra.mrb[4].mxu0 %v390_v28  ;;  %947 = vmatmul.mubr.bf16.vlgmr.msra.gmra.mrb[4].mxu1 %v406_v34  ;;  %v1371_v28 = vcombine.low %v332_v16, %v340_v17  ;;  %v439_v34 = vrot.slane %v423_v61, %v1546_v6  ;;  %v1132_v6 = vld [vmem:[%s278_s5 + $0x10] sm:$0xff] }
  0x56   : > { %955 = vmatpush1.bf16.xpose.msra.mxu0 %v1335_v35  ;;  %995 = vmatpush1.bf16.xpose.msra.mxu1 %v1337_v36  ;;  %v1491_v36 = vmov 0.0   ;;  %v1428_v42 = vpack.c.bf16 %v1133_v41, %v1132_v6 }
  0x57   : > { %956 = vmatprep.subr.bf16.mxu0 %v1352_v37  ;;  %996 = vmatprep.subr.bf16.mxu1 %v1354_v38  ;;  %v455_v35 = vcombine.high %v439_v34, %v439_v34  ;;  %290 = vst.msk [vmem:[#allocation2] sm:$0x3] %vm289_vm0, %v1491_v36  ;;  %v1130_v37 = vld [vmem:[%s278_s5] sm:$0xff]  ;;  %v1131_v38 = vld [vmem:[%s278_s5 + $0x8] sm:$0xff] }
  0x58   : > { %986 = vmatprep.mubr.bf16.mxu0 %v446_v33  ;;  %1026 = vmatprep.mubr.bf16.mxu1 %v456_v39  ;;  %v1389_v33 = vcombine.low %v349_v26, %v357_v27  ;;  %v1425_v39 = vpack.c.bf16 %v1131_v38, %v1130_v37  ;;  %v1391_v27 = vld [vmem:[%s273_s8] ss:$0 sm:$0xff] }
  0x5e   : > { %957 = vmatpush1.bf16.xpose.msra.mxu0 %v1351_v44  ;;  %997 = vmatpush1.bf16.xpose.msra.mxu1 %v1353_v45  ;;  %v1135_v44 = vld [vmem:[%s278_s5 + $0x28] sm:$0xff]  ;;  %v291_v19 = vld [vmem:[#allocation2] sm:$0x3] }
  0x5f   : > { %958 = vmatprep.subr.bf16.mxu0 %v1368_v46  ;;  %998 = vmatprep.subr.bf16.mxu1 %v1370_v47  ;;  %v1431_v45 = vpack.c.bf16 %v1135_v44, %v1134_v43  ;;  %v1136_v46 = vld [vmem:[%s278_s5 + $0x30] sm:$0xff]  ;;  %v1137_v47 = vld [vmem:[%s278_s5 + $0x38] sm:$0xff] }
  0x60   : > { %v1434_v48 = vpack.c.bf16 %v1137_v47, %v1136_v46 }
  0x66   : > { %959 = vmatpush1.bf16.xpose.msra.mxu0 %v1367_v52  ;;  %999 = vmatpush1.bf16.xpose.msra.mxu1 %v1369_v53 }
  0x67   : > { %960 = vmatprep.subr.bf16.mxu0 %v1384_v54  ;;  %1000 = vmatprep.subr.bf16.mxu1 %v1386_v55 }
  0x6e   : > { %961 = vmatpush1.bf16.xpose.msra.mxu0 %v1383_v62  ;;  %1001 = vmatpush1.bf16.xpose.msra.mxu1 %v1385_v63 }
  0x6f   : > { %1034 = vmatprep.subr.bf16.mxu0 %v1340_v0  ;;  %1074 = vmatprep.subr.bf16.mxu1 %v1342_v1 }
  0x75   : > { %987 = vmatmul.mubr.bf16.vlgmr.msra.gmra.mrb[8].mxu0 %v432_v3  ;;  %1027 = vmatmul.mubr.bf16.vlgmr.msra.gmra.mrb[8].mxu1 %v454_v10 }
  0x76   : > { %1035 = vmatpush1.bf16.xpose.msra.mxu0 %v1339_v11  ;;  %1075 = vmatpush1.bf16.xpose.msra.mxu1 %v1341_v12 }
  0x77   : > { %1036 = vmatprep.subr.bf16.mxu0 %v1356_v13  ;;  %1076 = vmatprep.subr.bf16.mxu1 %v1358_v14 }
  0x78   : > { %1066 = vmatprep.mubr.bf16.mxu0 %v453_v9  ;;  %1106 = vmatprep.mubr.bf16.mxu1 %v457_v15 }
  0x7e   : > { %1037 = vmatpush1.bf16.xpose.msra.mxu0 %v1355_v20  ;;  %1077 = vmatpush1.bf16.xpose.msra.mxu1 %v1357_v21 }
  0x7f   : > { %1038 = vmatprep.subr.bf16.mxu0 %v1372_v22  ;;  %1078 = vmatprep.subr.bf16.mxu1 %v1374_v23 }
  0x86   : > { %1039 = vmatpush1.bf16.xpose.msra.mxu0 %v1371_v28  ;;  %1079 = vmatpush1.bf16.xpose.msra.mxu1 %v1373_v29 }
  0x87   : > { %1040 = vmatprep.subr.bf16.mxu0 %v1388_v30  ;;  %1080 = vmatprep.subr.bf16.mxu1 %v1390_v31 }
  0x8e   : > { %1041 = vmatpush1.bf16.xpose.msra.mxu0 %v1387_v32  ;;  %1081 = vmatpush1.bf16.xpose.msra.mxu1 %v1389_v33 }
  0x8f   : > { %1424 = vmatprep.subr.bf16.mxu0 %v1492_v40 }
  0x95   : > { %1067 = vmatmul.mubr.bf16.vlgmr.msra.gmra.mrb[12].mxu0 %v439_v34  ;;  %1107 = vmatmul.mubr.bf16.vlgmr.msra.gmra.mrb[12].mxu1 %v455_v35 }
  0x96   : > { %1426 = vmatpush3.bf16.msra.mxu0 %v1425_v39  ;;  %1421 = vmatprep.mubr.msk.f32.mxu0 %vm1493_vm1, %v1491_v36 }
  0x97   : > { %1427 = vmatprep.subr.bf16.mxu0 %v1492_v40 }
  0x9a   : > { %1429 = vmatpush3.bf16.msra.mxu0 %v1428_v42 }
  0x9b   : > { %1430 = vmatprep.subr.bf16.mxu0 %v1492_v40 }
  0x9e   : > { %1432 = vmatpush3.bf16.msra.mxu0 %v1431_v45 }
  0x9f   : > { %1433 = vmatprep.subr.bf16.mxu0 %v1492_v40 }
  0xa2   : > { %1435 = vmatpush3.bf16.msra.mxu0 %v1434_v48 }
 0x108   : > { %v828_v49 = vpop.f32.mrb[0].mxu0  ;;  %v868_v50 = vpop.f32.mrb[0].mxu1 }
 0x109   : > { %v830_v51 = vpop.f32.mrb[1].mxu0  ;;  %v869_v52 = vadd.f32 %v868_v50, %v828_v49  ;;  %v870_v53 = vpop.f32.mrb[1].mxu1 }
 0x10a   : > { %v831_v54 = vpop.f32.mrb[2].mxu0  ;;  %v871_v55 = vpop.f32.mrb[2].mxu1 }
 0x10b   : > { %v832_v56 = vpop.f32.mrb[3].mxu0  ;;  %v872_v57 = vpop.f32.mrb[3].mxu1 }
 0x128   : > { %v908_v58 = vpop.f32.mrb[4].mxu0  ;;  %v948_v60 = vpop.f32.mrb[4].mxu1 }
 0x129   : > { %v909_v59 = vadd.f32 %v908_v58, %v869_v52  ;;  %v910_v61 = vpop.f32.mrb[5].mxu0  ;;  %v950_v62 = vpop.f32.mrb[5].mxu1 }
 0x12a   : > { %v911_v63 = vpop.f32.mrb[6].mxu0  ;;  %v951_v1 = vpop.f32.mrb[6].mxu1 }
 0x12b   : > { %v949_v0 = vadd.f32 %v948_v60, %v909_v59  ;;  %v912_v2 = vpop.f32.mrb[7].mxu0  ;;  %v952_v3 = vpop.f32.mrb[7].mxu1 }
 0x148   : > { %v988_v4 = vpop.f32.mrb[8].mxu0  ;;  %v1028_v7 = vpop.f32.mrb[8].mxu1 }
 0x149   : > { %v989_v5 = vadd.f32 %v988_v4, %v949_v0  ;;  %v990_v8 = vpop.f32.mrb[9].mxu0  ;;  %v1030_v9 = vpop.f32.mrb[9].mxu1 }
 0x14a   : > { %v991_v10 = vpop.f32.mrb[10].mxu0  ;;  %v1031_v12 = vpop.f32.mrb[10].mxu1 }
 0x14b   : > { %v1029_v11 = vadd.f32 %v1028_v7, %v989_v5  ;;  %v992_v13 = vpop.f32.mrb[11].mxu0  ;;  %v1032_v14 = vpop.f32.mrb[11].mxu1 }
 0x168   : > { %v1068_v15 = vpop.f32.mrb[12].mxu0  ;;  %v1108_v17 = vpop.f32.mrb[12].mxu1 }
 0x169   : > { %v1069_v16 = vadd.f32 %v1068_v15, %v1029_v11  ;;  %v1070_v18 = vpop.f32.mrb[13].mxu0  ;;  %v1110_v20 = vpop.f32.mrb[13].mxu1 }
 0x16a   : > { %v1071_v21 = vpop.f32.mrb[14].mxu0  ;;  %v1111_v23 = vpop.f32.mrb[14].mxu1 }
 0x16b   : > { %v1109_v22 = vadd.f32 %v1108_v17, %v1069_v16  ;;  %v1072_v24 = vpop.f32.mrb[15].mxu0  ;;  %v1112_v25 = vpop.f32.mrb[15].mxu1 }
 0x16d   : > { %v1114_v26 = vadd.f32 %v1109_v22, %v291_v19 }
 0x16f   : > { %1116 = vst.msk [vmem:[#allocation2] sm:$0x3] %vm289_vm0, %v1114_v26 }
 0x176   : > { %v1120_v28 = vld [vmem:[#allocation2] sm:$0x3] }
 0x177   : > { %v1128_v29 = vadd.f32 %v1391_v27, %v1120_v28 }
 0x179   : > { %v1129_v30 = vmax.f32 %v1128_v29, 0.0 }
 0x17b   : > { %1422 = vmatmul.mubr.msk.f32.vlgmr.msra.gmra.mrb[16].mxu0 %vm1138_vm2, %v1129_v30 }
 0x24e   : > { %v1208_v31 = vpop.f32.mrb[16].mxu0 }
 0x24f   : > { %1213 = vst.msk [vmem:[%s283_s12] sm:$0x3] %vm1212_vm3, %v1208_v31  ;;  %v1423_v32 = vpop.f32.mrb[17].mxu0 }
 0x250 PF: > { %s14_s17 = sadd.s32 1, %s1488_s17   ;;  %s1675_s15 = smov %s1484_s16 }
 0x251   : > { %p11_p6 = scmp.ge.s32.totalorder %s14_s17, 4   ;;  %s1676_s16 = smov %s1678_s18 }
 0x253   :  { %13 = sbr.rel (!%p11_p6) target bundleno = 2 (0x2), region = 83 }

</bundles_post_ra>
